<compile_context>
chip_gen: v6e
topology: v6e:2x2x1
jax: 0.10.0
libtpu: 0.0.40
codegen_flags: <defaults>
</compile_context>

<pallas_src>
import functools

import jax
import jax.numpy as jnp
from jax import lax
from jax.experimental import pallas as pl
from jax.experimental.pallas import tpu as pltpu

LANE = 128

VMEM_SPEC = pl.BlockSpec(memory_space=pltpu.MemorySpace.VMEM)
SMEM_SPEC = pl.BlockSpec(memory_space=pltpu.MemorySpace.SMEM)


# ---------------------------------------------------------------------------
# Fused kernel: embed -> RK4 integration of the GNN dynamics -> (T, N, H)
# ---------------------------------------------------------------------------
def ndcn_fused_kernel(
    dts_ref,                                           # SMEM (T-1,) f32
    x0_ref,                                            # (N, 1)
    emb_w1_ref, emb_b1_ref, emb_w2_ref, emb_b2_ref,    # embed MLP(1,H,H,Tanh)
    w_fused_ref,      # (H, 3*LANE): [f_w1x | g_w1i | g_w1j], each lane-padded
    f_bias_ref,       # (N, LANE):  theta  @ f_w1t + f_b1, lane-padded
    g_bias_ref,       # (E, LANE):  edge_w @ g_w1w + g_b1, lane-padded
    s_comb_ref,       # (E, 2N):    [one_hot(tgt) | one_hot(src)]
    s_tgt_t_ref,      # (N, E):     scatter-add operator
    w2_stack_ref,     # (2*LANE, H): [pad(f_w2) ; pad(g_w2)]
    out_bias_ref,     # (N, H):     f_b2 + in_degree[:,None] * g_b2
    xs_ref,           # out: (T, N, H)
    *, n_sub,
):
    # ---- 1) embed: MLP(1, H, H, act=Tanh) ---------------------------------
    h0 = jnp.tanh(x0_ref[...] * emb_w1_ref[...] + emb_b1_ref[...])         # (N, H)
    x_emb = (
        jnp.dot(h0, emb_w2_ref[...], preferred_element_type=jnp.float32)
        + emb_b2_ref[...]
    )                                                                       # (N, H)
    xs_ref[0] = x_emb

    # ---- 2) graph-ODE dynamics: 4 matmuls per evaluation ------------------
    def dyn(xc):
        """dx/dt = F(cat[x, theta]) + scatter_add(G(cat[x_i, x_j, w]))."""
        # Fused first layer: f_w1x / g_w1i / g_w1j in one lane-padded matmul.
        xw = jnp.dot(xc, w_fused_ref[...],
                     preferred_element_type=jnp.float32)                    # (N, 3*LANE)
        hf = jnp.tanh(xw[:, 0:LANE] + f_bias_ref[...])                      # (N, LANE)
        # Sublane-stack the two projections; fused gather with [tgt | src].
        xw_stack = jnp.concatenate(
            [xw[:, LANE:2 * LANE], xw[:, 2 * LANE:3 * LANE]], axis=0)       # (2N, LANE)
        pre = (
            jnp.dot(s_comb_ref[...], xw_stack,
                    preferred_element_type=jnp.float32)
            + g_bias_ref[...]
        )                                                                    # (E, LANE)
        # Scatter-add reassociated past g_w2 (exact by linearity).
        sc = jnp.dot(s_tgt_t_ref[...], jnp.tanh(pre),
                     preferred_element_type=jnp.float32)                     # (N, LANE)
        # Stacked second layer: [hf | sc] @ [f_w2 ; g_w2] in one matmul;
        # f_b2 and the degree-weighted g_b2 are folded into out_bias.
        hs = jnp.concatenate([hf, sc], axis=-1)                              # (N, 2*LANE)
        return (
            jnp.dot(hs, w2_stack_ref[...], preferred_element_type=jnp.float32)
            + out_bias_ref[...]
        )                                                                    # (N, H)

    def rk4_step(xc, dt):
        k1 = dyn(xc)
        k2 = dyn(xc + 0.5 * dt * k1)
        k3 = dyn(xc + 0.5 * dt * k2)
        k4 = dyn(xc + dt * k3)
        return xc + (dt / 6.0) * (k1 + 2.0 * k2 + 2.0 * k3 + k4)

    n_t = xs_ref.shape[0]
    inv_sub = jnp.float32(1.0 / n_sub)

    # TODO(synk): torchdiffeq dopri5 adaptive step-size control (rtol/atol) has
    # no clean Pallas equivalent; fixed-step RK4 with n_sub sub-steps per
    # output interval is used instead.
    def interval(ti, xc):
        dt = dts_ref[ti - 1] * inv_sub
        # Short fixed trip-count: unroll so the LLO scheduler can interleave
        # the small matmuls / EUP tanh across RK4 stages and sub-steps.
        xn = lax.fori_loop(0, n_sub, lambda s, xv: rk4_step(xv, dt), xc,
                           unroll=True)
        xs_ref[ti] = xn
        return xn

    lax.fori_loop(1, n_t, interval, x_emb)


# ---------------------------------------------------------------------------
# Parameter init (deterministic; mirrors nn.Linear / torch.rand shapes)
# ---------------------------------------------------------------------------
def init_params(key, n_nodes, n_edges, h):
    ks = jax.random.split(key, 10)

    def lin(k, d_in, d_out):
        k1, k2 = jax.random.split(k)
        bound = 1.0 / jnp.sqrt(jnp.float32(d_in))
        w = jax.random.uniform(k1, (d_in, d_out), jnp.float32, -bound, bound)
        b = jax.random.uniform(k2, (1, d_out), jnp.float32, -bound, bound)
        return w, b

    p = {}
    # embed = MLP(1, H, H, act=Tanh)
    p["emb_w1"], p["emb_b1"] = lin(ks[0], 1, h)
    p["emb_w2"], p["emb_b2"] = lin(ks[1], h, h)
    # GNN parameters (torch.rand -> uniform[0,1))
    p["theta"] = jax.random.uniform(ks[2], (n_nodes, h), jnp.float32)
    p["edge_w"] = jax.random.uniform(ks[3], (n_edges, h), jnp.float32)
    # F = MLP(2H, H, H, act=Tanh); split first weight along input dim
    wf1, p["f_b1"] = lin(ks[4], 2 * h, h)
    p["f_w1x"], p["f_w1t"] = wf1[:h], wf1[h:]
    p["f_w2"], p["f_b2"] = lin(ks[5], h, h)
    # G = MLP(3H, H, H, act=Tanh)
    wg1, p["g_b1"] = lin(ks[6], 3 * h, h)
    p["g_w1i"], p["g_w1j"], p["g_w1w"] = wg1[:h], wg1[h:2 * h], wg1[2 * h:]
    p["g_w2"], p["g_b2"] = lin(ks[7], h, h)
    # out = MLP(H, 1)
    p["out_w"], p["out_b"] = lin(ks[8], h, 1)
    return p


# ---------------------------------------------------------------------------
# Forward
# ---------------------------------------------------------------------------
def _pad_lanes(w, width=LANE):
    return jnp.pad(w, ((0, 0), (0, width - w.shape[1])))


def _pad_rows(w, rows=LANE):
    return jnp.pad(w, ((0, rows - w.shape[0]), (0, 0)))


def ndcn_forward(params, t, x0, s_src, s_tgt, n_sub=4):
    n_nodes = x0.shape[0]
    h = params["theta"].shape[1]
    n_t = t.shape[0]

    dts = t[1:] - t[:-1]                                                   # (T-1,)

    # ---- one-time fusion / hoisting of loop-invariant operator algebra ----
    # First-layer projections fused into one lane-padded weight (3 -> 1 matmul).
    w_fused = jnp.concatenate([_pad_lanes(params["f_w1x"]),
                               _pad_lanes(params["g_w1i"]),
                               _pad_lanes(params["g_w1j"])], axis=1)       # (H, 3*128)
    # Loop-invariant first-layer biases (theta / edge_w never change).
    f_bias = _pad_lanes(params["theta"] @ params["f_w1t"] + params["f_b1"])    # (N, 128)
    g_bias = _pad_lanes(params["edge_w"] @ params["g_w1w"] + params["g_b1"])   # (E, 128)
    # Fused gather operator (x_i and x_j in one matmul) and scatter operator.
    s_comb = jnp.concatenate([s_tgt, s_src], axis=1)                       # (E, 2N)
    s_tgt_t = s_tgt.T                                                      # (N, E)
    # Second layers of F and G stacked -> one matmul; g_b2 reassociated past
    # the scatter-add as in_degree * g_b2 (exact by linearity).
    w2_stack = jnp.concatenate([_pad_rows(params["f_w2"]),
                                _pad_rows(params["g_w2"])], axis=0)        # (256, H)
    in_degree = jnp.sum(s_tgt, axis=0)                                     # (N,)
    out_bias = params["f_b2"] + in_degree[:, None] * params["g_b2"]        # (N, H)

    kernel = functools.partial(ndcn_fused_kernel, n_sub=n_sub)
    xs = pl.pallas_call(
        kernel,
        out_shape=jax.ShapeDtypeStruct((n_t, n_nodes, h), jnp.float32),
        in_specs=[SMEM_SPEC] + [VMEM_SPEC] * 12,
        out_specs=VMEM_SPEC,
        compiler_params=pltpu.CompilerParams(vmem_limit_bytes=32 * 1024 * 1024),
    )(
        dts,
        x0[:, None],
        params["emb_w1"], params["emb_b1"], params["emb_w2"], params["emb_b2"],
        w_fused, f_bias, g_bias, s_comb, s_tgt_t, w2_stack, out_bias,
    )

    # Readout: Linear(H, 1), squeeze(-1) -> (T, N).  One tiny XLA matmul.
    y = xs.reshape(n_t * n_nodes, h) @ params["out_w"] + params["out_b"]
    return y.reshape(n_t, n_nodes)


# ---------------------------------------------------------------------------
if __name__ == "__main__":
    key = jax.random.PRNGKey(0)
    N, H, T = 16, 32, 8          # nodes, hidden_dim=(32, 32), number of times

    # Bidirectional ring graph; PyG convention edge_index = [source; target].
    idx = jnp.arange(N)
    src = jnp.concatenate([idx, idx])
    tgt = jnp.concatenate([(idx + 1) % N, (idx - 1) % N])
    E = int(src.shape[0])

    # One-hot gather operators (make message passing MXU-friendly).
    s_src = jax.nn.one_hot(src, N, dtype=jnp.float32)     # (E, N): x_j = S_src @ x
    s_tgt = jax.nn.one_hot(tgt, N, dtype=jnp.float32)     # (E, N): x_i = S_tgt @ x

    k_p, k_x = jax.random.split(key)
    params = init_params(k_p, N, E, H)
    x0 = jax.random.uniform(k_x, (N,), jnp.float32)       # node states at t0
    t = jnp.linspace(0.0, 1.0, T, dtype=jnp.float32)      # evaluation times

    fwd = jax.jit(functools.partial(ndcn_forward, n_sub=4))
    out = fwd(params, t, x0, s_src, s_tgt)
    jax.block_until_ready(out)
    assert out.shape == (T, N) and out.dtype == jnp.float32
    assert bool(jnp.all(jnp.isfinite(out)))
    print("KERNEL_OK")
</pallas_src>

<mosaic_0001>
module attributes {stable_mosaic.version = 11 : i64} {
  func.func @ndcn_fused_kernel(%arg0: memref<7xf32, #tpu.memory_space<smem>>, %arg1: memref<16x1xf32, #tpu.memory_space<vmem>>, %arg2: memref<1x32xf32, #tpu.memory_space<vmem>>, %arg3: memref<1x32xf32, #tpu.memory_space<vmem>>, %arg4: memref<32x32xf32, #tpu.memory_space<vmem>>, %arg5: memref<1x32xf32, #tpu.memory_space<vmem>>, %arg6: memref<32x384xf32, #tpu.memory_space<vmem>>, %arg7: memref<16x128xf32, #tpu.memory_space<vmem>>, %arg8: memref<32x128xf32, #tpu.memory_space<vmem>>, %arg9: memref<32x32xf32, #tpu.memory_space<vmem>>, %arg10: memref<16x32xf32, #tpu.memory_space<vmem>>, %arg11: memref<256x32xf32, #tpu.memory_space<vmem>>, %arg12: memref<16x32xf32, #tpu.memory_space<vmem>>, %arg13: memref<8x16x32xf32, #tpu.memory_space<vmem>>) attributes {dimension_semantics = [], scalar_prefetch = 0 : i64, scratch_operands = 0 : i64, tpu.core_type = #tpu.core_type<tc>} {
    %c0 = arith.constant 0 : index
    %c0_0 = arith.constant 0 : index
    %0 = vector.load %arg1[%c0, %c0_0] : memref<16x1xf32, #tpu.memory_space<vmem>>, vector<16x1xf32>
    %c0_1 = arith.constant 0 : index
    %c0_2 = arith.constant 0 : index
    %1 = vector.load %arg2[%c0_1, %c0_2] : memref<1x32xf32, #tpu.memory_space<vmem>>, vector<1x32xf32>
    %2 = vector.broadcast %0 : vector<16x1xf32> to vector<16x32xf32>
    %3 = vector.broadcast %1 : vector<1x32xf32> to vector<16x32xf32>
    %4 = arith.mulf %2, %3 : vector<16x32xf32>
    %c0_3 = arith.constant 0 : index
    %c0_4 = arith.constant 0 : index
    %5 = vector.load %arg3[%c0_3, %c0_4] : memref<1x32xf32, #tpu.memory_space<vmem>>, vector<1x32xf32>
    %6 = vector.broadcast %5 : vector<1x32xf32> to vector<16x32xf32>
    %7 = arith.addf %4, %6 : vector<16x32xf32>
    %8 = math.tanh %7 : vector<16x32xf32>
    %c0_5 = arith.constant 0 : index
    %c0_6 = arith.constant 0 : index
    %9 = vector.load %arg4[%c0_5, %c0_6] : memref<32x32xf32, #tpu.memory_space<vmem>>, vector<32x32xf32>
    %cst = arith.constant dense<0.000000e+00> : vector<16x32xf32>
    %10 = tpu.matmul %8, %9, %cst {dimension_numbers = #tpu.dot_dimension_numbers<[1], [0], [0], [1], [0, 0, 1, 1], [], []>} : vector<16x32xf32>, vector<32x32xf32>, vector<16x32xf32> -> vector<16x32xf32>
    %c0_7 = arith.constant 0 : index
    %c0_8 = arith.constant 0 : index
    %11 = vector.load %arg5[%c0_7, %c0_8] : memref<1x32xf32, #tpu.memory_space<vmem>>, vector<1x32xf32>
    %12 = vector.broadcast %11 : vector<1x32xf32> to vector<16x32xf32>
    %13 = arith.addf %10, %12 : vector<16x32xf32>
    %c0_9 = arith.constant 0 : index
    %c0_10 = arith.constant 0 : index
    %c0_11 = arith.constant 0 : index
    %14 = vector.load %arg13[%c0_9, %c0_10, %c0_11] : memref<8x16x32xf32, #tpu.memory_space<vmem>>, vector<1x16x32xf32>
    %15 = vector.shape_cast %14 : vector<1x16x32xf32> to vector<16x32xf32>
    %16 = vector.shape_cast %13 : vector<16x32xf32> to vector<1x16x32xf32>
    tpu.vector_store %arg13[%c0_9, %c0_10, %c0_11], %16 {strides = array<i32>} : memref<8x16x32xf32, #tpu.memory_space<vmem>>, vector<1x16x32xf32>,
    %cst_12 = arith.constant 2.500000e-01 : f32
    %c1_i32 = arith.constant 1 : i32
    %c7_i32 = arith.constant 7 : i32
    %17 = arith.addi %c1_i32, %c7_i32 : i32
    %c1_i32_13 = arith.constant 1 : i32
    %18 = scf.for %arg14 = %c1_i32 to %17 step %c1_i32_13 iter_args(%arg15 = %13) -> (vector<16x32xf32>)  : i32 {
      %c1_i32_15 = arith.constant 1 : i32
      %19 = arith.subi %arg14, %c1_i32_15 : i32
      %20 = arith.index_cast %19 : i32 to index
      %21 = memref.load %arg0[%20] : memref<7xf32, #tpu.memory_space<smem>>
      %22 = arith.mulf %21, %cst_12 : f32
      %c0_i32 = arith.constant 0 : i32
      %c0_16 = arith.constant 0 : index
      %c0_17 = arith.constant 0 : index
      %23 = vector.load %arg6[%c0_16, %c0_17] : memref<32x384xf32, #tpu.memory_space<vmem>>, vector<32x384xf32>
      %cst_18 = arith.constant dense<0.000000e+00> : vector<16x384xf32>
      %24 = tpu.matmul %arg15, %23, %cst_18 {dimension_numbers = #tpu.dot_dimension_numbers<[1], [0], [0], [1], [0, 0, 1, 1], [], []>} : vector<16x32xf32>, vector<32x384xf32>, vector<16x384xf32> -> vector<16x384xf32>
      %25 = vector.extract_strided_slice %24 {offsets = [0, 0], sizes = [16, 128], strides = [1, 1]} : vector<16x384xf32> to vector<16x128xf32>
      %c0_19 = arith.constant 0 : index
      %c0_20 = arith.constant 0 : index
      %26 = vector.load %arg7[%c0_19, %c0_20] : memref<16x128xf32, #tpu.memory_space<vmem>>, vector<16x128xf32>
      %27 = arith.addf %25, %26 : vector<16x128xf32>
      %28 = math.tanh %27 : vector<16x128xf32>
      %29 = vector.extract_strided_slice %24 {offsets = [0, 128], sizes = [16, 128], strides = [1, 1]} : vector<16x384xf32> to vector<16x128xf32>
      %30 = vector.extract_strided_slice %24 {offsets = [0, 256], sizes = [16, 128], strides = [1, 1]} : vector<16x384xf32> to vector<16x128xf32>
      %31 = tpu.concatenate %29, %30 in 0 : vector<16x128xf32>, vector<16x128xf32> -> vector<32x128xf32>
      %c0_21 = arith.constant 0 : index
      %c0_22 = arith.constant 0 : index
      %32 = vector.load %arg9[%c0_21, %c0_22] : memref<32x32xf32, #tpu.memory_space<vmem>>, vector<32x32xf32>
      %cst_23 = arith.constant dense<0.000000e+00> : vector<32x128xf32>
      %33 = tpu.matmul %32, %31, %cst_23 {dimension_numbers = #tpu.dot_dimension_numbers<[1], [0], [0], [1], [0, 0, 1, 1], [], []>} : vector<32x32xf32>, vector<32x128xf32>, vector<32x128xf32> -> vector<32x128xf32>
      %c0_24 = arith.constant 0 : index
      %c0_25 = arith.constant 0 : index
      %34 = vector.load %arg8[%c0_24, %c0_25] : memref<32x128xf32, #tpu.memory_space<vmem>>, vector<32x128xf32>
      %35 = arith.addf %33, %34 : vector<32x128xf32>
      %c0_26 = arith.constant 0 : index
      %c0_27 = arith.constant 0 : index
      %36 = vector.load %arg10[%c0_26, %c0_27] : memref<16x32xf32, #tpu.memory_space<vmem>>, vector<16x32xf32>
      %37 = math.tanh %35 : vector<32x128xf32>
      %cst_28 = arith.constant dense<0.000000e+00> : vector<16x128xf32>
      %38 = tpu.matmul %36, %37, %cst_28 {dimension_numbers = #tpu.dot_dimension_numbers<[1], [0], [0], [1], [0, 0, 1, 1], [], []>} : vector<16x32xf32>, vector<32x128xf32>, vector<16x128xf32> -> vector<16x128xf32>
      %39 = tpu.concatenate %28, %38 in 1 : vector<16x128xf32>, vector<16x128xf32> -> vector<16x256xf32>
      %c0_29 = arith.constant 0 : index
      %c0_30 = arith.constant 0 : index
      %40 = vector.load %arg11[%c0_29, %c0_30] : memref<256x32xf32, #tpu.memory_space<vmem>>, vector<256x32xf32>
      %cst_31 = arith.constant dense<0.000000e+00> : vector<16x32xf32>
      %41 = tpu.matmul %39, %40, %cst_31 {dimension_numbers = #tpu.dot_dimension_numbers<[1], [0], [0], [1], [0, 0, 1, 1], [], []>} : vector<16x256xf32>, vector<256x32xf32>, vector<16x32xf32> -> vector<16x32xf32>
      %c0_32 = arith.constant 0 : index
      %c0_33 = arith.constant 0 : index
      %42 = vector.load %arg12[%c0_32, %c0_33] : memref<16x32xf32, #tpu.memory_space<vmem>>, vector<16x32xf32>
      %43 = arith.addf %41, %42 : vector<16x32xf32>
      %cst_34 = arith.constant 5.000000e-01 : f32
      %44 = arith.mulf %cst_34, %22 : f32
      %45 = vector.broadcast %44 : f32 to vector<16x32xf32>
      %46 = arith.mulf %45, %43 : vector<16x32xf32>
      %47 = arith.addf %arg15, %46 : vector<16x32xf32>
      %c0_35 = arith.constant 0 : index
      %c0_36 = arith.constant 0 : index
      %48 = vector.load %arg6[%c0_35, %c0_36] : memref<32x384xf32, #tpu.memory_space<vmem>>, vector<32x384xf32>
      %cst_37 = arith.constant dense<0.000000e+00> : vector<16x384xf32>
      %49 = tpu.matmul %47, %48, %cst_37 {dimension_numbers = #tpu.dot_dimension_numbers<[1], [0], [0], [1], [0, 0, 1, 1], [], []>} : vector<16x32xf32>, vector<32x384xf32>, vector<16x384xf32> -> vector<16x384xf32>
      %50 = vector.extract_strided_slice %49 {offsets = [0, 0], sizes = [16, 128], strides = [1, 1]} : vector<16x384xf32> to vector<16x128xf32>
      %c0_38 = arith.constant 0 : index
      %c0_39 = arith.constant 0 : index
      %51 = vector.load %arg7[%c0_38, %c0_39] : memref<16x128xf32, #tpu.memory_space<vmem>>, vector<16x128xf32>
      %52 = arith.addf %50, %51 : vector<16x128xf32>
      %53 = math.tanh %52 : vector<16x128xf32>
      %54 = vector.extract_strided_slice %49 {offsets = [0, 128], sizes = [16, 128], strides = [1, 1]} : vector<16x384xf32> to vector<16x128xf32>
      %55 = vector.extract_strided_slice %49 {offsets = [0, 256], sizes = [16, 128], strides = [1, 1]} : vector<16x384xf32> to vector<16x128xf32>
      %56 = tpu.concatenate %54, %55 in 0 : vector<16x128xf32>, vector<16x128xf32> -> vector<32x128xf32>
      %c0_40 = arith.constant 0 : index
      %c0_41 = arith.constant 0 : index
      %57 = vector.load %arg9[%c0_40, %c0_41] : memref<32x32xf32, #tpu.memory_space<vmem>>, vector<32x32xf32>
      %cst_42 = arith.constant dense<0.000000e+00> : vector<32x128xf32>
      %58 = tpu.matmul %57, %56, %cst_42 {dimension_numbers = #tpu.dot_dimension_numbers<[1], [0], [0], [1], [0, 0, 1, 1], [], []>} : vector<32x32xf32>, vector<32x128xf32>, vector<32x128xf32> -> vector<32x128xf32>
      %c0_43 = arith.constant 0 : index
      %c0_44 = arith.constant 0 : index
      %59 = vector.load %arg8[%c0_43, %c0_44] : memref<32x128xf32, #tpu.memory_space<vmem>>, vector<32x128xf32>
      %60 = arith.addf %58, %59 : vector<32x128xf32>
      %c0_45 = arith.constant 0 : index
      %c0_46 = arith.constant 0 : index
      %61 = vector.load %arg10[%c0_45, %c0_46] : memref<16x32xf32, #tpu.memory_space<vmem>>, vector<16x32xf32>
      %62 = math.tanh %60 : vector<32x128xf32>
      %cst_47 = arith.constant dense<0.000000e+00> : vector<16x128xf32>
      %63 = tpu.matmul %61, %62, %cst_47 {dimension_numbers = #tpu.dot_dimension_numbers<[1], [0], [0], [1], [0, 0, 1, 1], [], []>} : vector<16x32xf32>, vector<32x128xf32>, vector<16x128xf32> -> vector<16x128xf32>
      %64 = tpu.concatenate %53, %63 in 1 : vector<16x128xf32>, vector<16x128xf32> -> vector<16x256xf32>
      %c0_48 = arith.constant 0 : index
      %c0_49 = arith.constant 0 : index
      %65 = vector.load %arg11[%c0_48, %c0_49] : memref<256x32xf32, #tpu.memory_space<vmem>>, vector<256x32xf32>
      %cst_50 = arith.constant dense<0.000000e+00> : vector<16x32xf32>
      %66 = tpu.matmul %64, %65, %cst_50 {dimension_numbers = #tpu.dot_dimension_numbers<[1], [0], [0], [1], [0, 0, 1, 1], [], []>} : vector<16x256xf32>, vector<256x32xf32>, vector<16x32xf32> -> vector<16x32xf32>
      %c0_51 = arith.constant 0 : index
      %c0_52 = arith.constant 0 : index
      %67 = vector.load %arg12[%c0_51, %c0_52] : memref<16x32xf32, #tpu.memory_space<vmem>>, vector<16x32xf32>
      %68 = arith.addf %66, %67 : vector<16x32xf32>
      %cst_53 = arith.constant 5.000000e-01 : f32
      %69 = arith.mulf %cst_53, %22 : f32
      %70 = vector.broadcast %69 : f32 to vector<16x32xf32>
      %71 = arith.mulf %70, %68 : vector<16x32xf32>
      %72 = arith.addf %arg15, %71 : vector<16x32xf32>
      %c0_54 = arith.constant 0 : index
      %c0_55 = arith.constant 0 : index
      %73 = vector.load %arg6[%c0_54, %c0_55] : memref<32x384xf32, #tpu.memory_space<vmem>>, vector<32x384xf32>
      %cst_56 = arith.constant dense<0.000000e+00> : vector<16x384xf32>
      %74 = tpu.matmul %72, %73, %cst_56 {dimension_numbers = #tpu.dot_dimension_numbers<[1], [0], [0], [1], [0, 0, 1, 1], [], []>} : vector<16x32xf32>, vector<32x384xf32>, vector<16x384xf32> -> vector<16x384xf32>
      %75 = vector.extract_strided_slice %74 {offsets = [0, 0], sizes = [16, 128], strides = [1, 1]} : vector<16x384xf32> to vector<16x128xf32>
      %c0_57 = arith.constant 0 : index
      %c0_58 = arith.constant 0 : index
      %76 = vector.load %arg7[%c0_57, %c0_58] : memref<16x128xf32, #tpu.memory_space<vmem>>, vector<16x128xf32>
      %77 = arith.addf %75, %76 : vector<16x128xf32>
      %78 = math.tanh %77 : vector<16x128xf32>
      %79 = vector.extract_strided_slice %74 {offsets = [0, 128], sizes = [16, 128], strides = [1, 1]} : vector<16x384xf32> to vector<16x128xf32>
      %80 = vector.extract_strided_slice %74 {offsets = [0, 256], sizes = [16, 128], strides = [1, 1]} : vector<16x384xf32> to vector<16x128xf32>
      %81 = tpu.concatenate %79, %80 in 0 : vector<16x128xf32>, vector<16x128xf32> -> vector<32x128xf32>
      %c0_59 = arith.constant 0 : index
      %c0_60 = arith.constant 0 : index
      %82 = vector.load %arg9[%c0_59, %c0_60] : memref<32x32xf32, #tpu.memory_space<vmem>>, vector<32x32xf32>
      %cst_61 = arith.constant dense<0.000000e+00> : vector<32x128xf32>
      %83 = tpu.matmul %82, %81, %cst_61 {dimension_numbers = #tpu.dot_dimension_numbers<[1], [0], [0], [1], [0, 0, 1, 1], [], []>} : vector<32x32xf32>, vector<32x128xf32>, vector<32x128xf32> -> vector<32x128xf32>
      %c0_62 = arith.constant 0 : index
      %c0_63 = arith.constant 0 : index
      %84 = vector.load %arg8[%c0_62, %c0_63] : memref<32x128xf32, #tpu.memory_space<vmem>>, vector<32x128xf32>
      %85 = arith.addf %83, %84 : vector<32x128xf32>
      %c0_64 = arith.constant 0 : index
      %c0_65 = arith.constant 0 : index
      %86 = vector.load %arg10[%c0_64, %c0_65] : memref<16x32xf32, #tpu.memory_space<vmem>>, vector<16x32xf32>
      %87 = math.tanh %85 : vector<32x128xf32>
      %cst_66 = arith.constant dense<0.000000e+00> : vector<16x128xf32>
      %88 = tpu.matmul %86, %87, %cst_66 {dimension_numbers = #tpu.dot_dimension_numbers<[1], [0], [0], [1], [0, 0, 1, 1], [], []>} : vector<16x32xf32>, vector<32x128xf32>, vector<16x128xf32> -> vector<16x128xf32>
      %89 = tpu.concatenate %78, %88 in 1 : vector<16x128xf32>, vector<16x128xf32> -> vector<16x256xf32>
      %c0_67 = arith.constant 0 : index
      %c0_68 = arith.constant 0 : index
      %90 = vector.load %arg11[%c0_67, %c0_68] : memref<256x32xf32, #tpu.memory_space<vmem>>, vector<256x32xf32>
      %cst_69 = arith.constant dense<0.000000e+00> : vector<16x32xf32>
      %91 = tpu.matmul %89, %90, %cst_69 {dimension_numbers = #tpu.dot_dimension_numbers<[1], [0], [0], [1], [0, 0, 1, 1], [], []>} : vector<16x256xf32>, vector<256x32xf32>, vector<16x32xf32> -> vector<16x32xf32>
      %c0_70 = arith.constant 0 : index
      %c0_71 = arith.constant 0 : index
      %92 = vector.load %arg12[%c0_70, %c0_71] : memref<16x32xf32, #tpu.memory_space<vmem>>, vector<16x32xf32>
      %93 = arith.addf %91, %92 : vector<16x32xf32>
      %94 = vector.broadcast %22 : f32 to vector<16x32xf32>
      %95 = arith.mulf %94, %93 : vector<16x32xf32>
      %96 = arith.addf %arg15, %95 : vector<16x32xf32>
      %c0_72 = arith.constant 0 : index
      %c0_73 = arith.constant 0 : index
      %97 = vector.load %arg6[%c0_72, %c0_73] : memref<32x384xf32, #tpu.memory_space<vmem>>, vector<32x384xf32>
      %cst_74 = arith.constant dense<0.000000e+00> : vector<16x384xf32>
      %98 = tpu.matmul %96, %97, %cst_74 {dimension_numbers = #tpu.dot_dimension_numbers<[1], [0], [0], [1], [0, 0, 1, 1], [], []>} : vector<16x32xf32>, vector<32x384xf32>, vector<16x384xf32> -> vector<16x384xf32>
      %99 = vector.extract_strided_slice %98 {offsets = [0, 0], sizes = [16, 128], strides = [1, 1]} : vector<16x384xf32> to vector<16x128xf32>
      %c0_75 = arith.constant 0 : index
      %c0_76 = arith.constant 0 : index
      %100 = vector.load %arg7[%c0_75, %c0_76] : memref<16x128xf32, #tpu.memory_space<vmem>>, vector<16x128xf32>
      %101 = arith.addf %99, %100 : vector<16x128xf32>
      %102 = math.tanh %101 : vector<16x128xf32>
      %103 = vector.extract_strided_slice %98 {offsets = [0, 128], sizes = [16, 128], strides = [1, 1]} : vector<16x384xf32> to vector<16x128xf32>
      %104 = vector.extract_strided_slice %98 {offsets = [0, 256], sizes = [16, 128], strides = [1, 1]} : vector<16x384xf32> to vector<16x128xf32>
      %105 = tpu.concatenate %103, %104 in 0 : vector<16x128xf32>, vector<16x128xf32> -> vector<32x128xf32>
      %c0_77 = arith.constant 0 : index
      %c0_78 = arith.constant 0 : index
      %106 = vector.load %arg9[%c0_77, %c0_78] : memref<32x32xf32, #tpu.memory_space<vmem>>, vector<32x32xf32>
      %cst_79 = arith.constant dense<0.000000e+00> : vector<32x128xf32>
      %107 = tpu.matmul %106, %105, %cst_79 {dimension_numbers = #tpu.dot_dimension_numbers<[1], [0], [0], [1], [0, 0, 1, 1], [], []>} : vector<32x32xf32>, vector<32x128xf32>, vector<32x128xf32> -> vector<32x128xf32>
      %c0_80 = arith.constant 0 : index
      %c0_81 = arith.constant 0 : index
      %108 = vector.load %arg8[%c0_80, %c0_81] : memref<32x128xf32, #tpu.memory_space<vmem>>, vector<32x128xf32>
      %109 = arith.addf %107, %108 : vector<32x128xf32>
      %c0_82 = arith.constant 0 : index
      %c0_83 = arith.constant 0 : index
      %110 = vector.load %arg10[%c0_82, %c0_83] : memref<16x32xf32, #tpu.memory_space<vmem>>, vector<16x32xf32>
      %111 = math.tanh %109 : vector<32x128xf32>
      %cst_84 = arith.constant dense<0.000000e+00> : vector<16x128xf32>
      %112 = tpu.matmul %110, %111, %cst_84 {dimension_numbers = #tpu.dot_dimension_numbers<[1], [0], [0], [1], [0, 0, 1, 1], [], []>} : vector<16x32xf32>, vector<32x128xf32>, vector<16x128xf32> -> vector<16x128xf32>
      %113 = tpu.concatenate %102, %112 in 1 : vector<16x128xf32>, vector<16x128xf32> -> vector<16x256xf32>
      %c0_85 = arith.constant 0 : index
      %c0_86 = arith.constant 0 : index
      %114 = vector.load %arg11[%c0_85, %c0_86] : memref<256x32xf32, #tpu.memory_space<vmem>>, vector<256x32xf32>
      %cst_87 = arith.constant dense<0.000000e+00> : vector<16x32xf32>
      %115 = tpu.matmul %113, %114, %cst_87 {dimension_numbers = #tpu.dot_dimension_numbers<[1], [0], [0], [1], [0, 0, 1, 1], [], []>} : vector<16x256xf32>, vector<256x32xf32>, vector<16x32xf32> -> vector<16x32xf32>
      %c0_88 = arith.constant 0 : index
      %c0_89 = arith.constant 0 : index
      %116 = vector.load %arg12[%c0_88, %c0_89] : memref<16x32xf32, #tpu.memory_space<vmem>>, vector<16x32xf32>
      %117 = arith.addf %115, %116 : vector<16x32xf32>
      %cst_90 = arith.constant 6.000000e+00 : f32
      %118 = arith.divf %22, %cst_90 : f32
      %cst_91 = arith.constant 2.000000e+00 : f32
      %119 = vector.broadcast %cst_91 : f32 to vector<16x32xf32>
      %120 = arith.mulf %119, %68 : vector<16x32xf32>
      %121 = arith.addf %43, %120 : vector<16x32xf32>
      %cst_92 = arith.constant 2.000000e+00 : f32
      %122 = vector.broadcast %cst_92 : f32 to vector<16x32xf32>
      %123 = arith.mulf %122, %93 : vector<16x32xf32>
      %124 = arith.addf %121, %123 : vector<16x32xf32>
      %125 = arith.addf %124, %117 : vector<16x32xf32>
      %126 = vector.broadcast %118 : f32 to vector<16x32xf32>
      %127 = arith.mulf %126, %125 : vector<16x32xf32>
      %128 = arith.addf %arg15, %127 : vector<16x32xf32>
      %c1_i32_93 = arith.constant 1 : i32
      %c0_94 = arith.constant 0 : index
      %c0_95 = arith.constant 0 : index
      %129 = vector.load %arg6[%c0_94, %c0_95] : memref<32x384xf32, #tpu.memory_space<vmem>>, vector<32x384xf32>
      %cst_96 = arith.constant dense<0.000000e+00> : vector<16x384xf32>
      %130 = tpu.matmul %128, %129, %cst_96 {dimension_numbers = #tpu.dot_dimension_numbers<[1], [0], [0], [1], [0, 0, 1, 1], [], []>} : vector<16x32xf32>, vector<32x384xf32>, vector<16x384xf32> -> vector<16x384xf32>
      %131 = vector.extract_strided_slice %130 {offsets = [0, 0], sizes = [16, 128], strides = [1, 1]} : vector<16x384xf32> to vector<16x128xf32>
      %c0_97 = arith.constant 0 : index
      %c0_98 = arith.constant 0 : index
      %132 = vector.load %arg7[%c0_97, %c0_98] : memref<16x128xf32, #tpu.memory_space<vmem>>, vector<16x128xf32>
      %133 = arith.addf %131, %132 : vector<16x128xf32>
      %134 = math.tanh %133 : vector<16x128xf32>
      %135 = vector.extract_strided_slice %130 {offsets = [0, 128], sizes = [16, 128], strides = [1, 1]} : vector<16x384xf32> to vector<16x128xf32>
      %136 = vector.extract_strided_slice %130 {offsets = [0, 256], sizes = [16, 128], strides = [1, 1]} : vector<16x384xf32> to vector<16x128xf32>
      %137 = tpu.concatenate %135, %136 in 0 : vector<16x128xf32>, vector<16x128xf32> -> vector<32x128xf32>
      %c0_99 = arith.constant 0 : index
      %c0_100 = arith.constant 0 : index
      %138 = vector.load %arg9[%c0_99, %c0_100] : memref<32x32xf32, #tpu.memory_space<vmem>>, vector<32x32xf32>
      %cst_101 = arith.constant dense<0.000000e+00> : vector<32x128xf32>
      %139 = tpu.matmul %138, %137, %cst_101 {dimension_numbers = #tpu.dot_dimension_numbers<[1], [0], [0], [1], [0, 0, 1, 1], [], []>} : vector<32x32xf32>, vector<32x128xf32>, vector<32x128xf32> -> vector<32x128xf32>
      %c0_102 = arith.constant 0 : index
      %c0_103 = arith.constant 0 : index
      %140 = vector.load %arg8[%c0_102, %c0_103] : memref<32x128xf32, #tpu.memory_space<vmem>>, vector<32x128xf32>
      %141 = arith.addf %139, %140 : vector<32x128xf32>
      %c0_104 = arith.constant 0 : index
      %c0_105 = arith.constant 0 : index
      %142 = vector.load %arg10[%c0_104, %c0_105] : memref<16x32xf32, #tpu.memory_space<vmem>>, vector<16x32xf32>
      %143 = math.tanh %141 : vector<32x128xf32>
      %cst_106 = arith.constant dense<0.000000e+00> : vector<16x128xf32>
      %144 = tpu.matmul %142, %143, %cst_106 {dimension_numbers = #tpu.dot_dimension_numbers<[1], [0], [0], [1], [0, 0, 1, 1], [], []>} : vector<16x32xf32>, vector<32x128xf32>, vector<16x128xf32> -> vector<16x128xf32>
      %145 = tpu.concatenate %134, %144 in 1 : vector<16x128xf32>, vector<16x128xf32> -> vector<16x256xf32>
      %c0_107 = arith.constant 0 : index
      %c0_108 = arith.constant 0 : index
      %146 = vector.load %arg11[%c0_107, %c0_108] : memref<256x32xf32, #tpu.memory_space<vmem>>, vector<256x32xf32>
      %cst_109 = arith.constant dense<0.000000e+00> : vector<16x32xf32>
      %147 = tpu.matmul %145, %146, %cst_109 {dimension_numbers = #tpu.dot_dimension_numbers<[1], [0], [0], [1], [0, 0, 1, 1], [], []>} : vector<16x256xf32>, vector<256x32xf32>, vector<16x32xf32> -> vector<16x32xf32>
      %c0_110 = arith.constant 0 : index
      %c0_111 = arith.constant 0 : index
      %148 = vector.load %arg12[%c0_110, %c0_111] : memref<16x32xf32, #tpu.memory_space<vmem>>, vector<16x32xf32>
      %149 = arith.addf %147, %148 : vector<16x32xf32>
      %cst_112 = arith.constant 5.000000e-01 : f32
      %150 = arith.mulf %cst_112, %22 : f32
      %151 = vector.broadcast %150 : f32 to vector<16x32xf32>
      %152 = arith.mulf %151, %149 : vector<16x32xf32>
      %153 = arith.addf %128, %152 : vector<16x32xf32>
      %c0_113 = arith.constant 0 : index
      %c0_114 = arith.constant 0 : index
      %154 = vector.load %arg6[%c0_113, %c0_114] : memref<32x384xf32, #tpu.memory_space<vmem>>, vector<32x384xf32>
      %cst_115 = arith.constant dense<0.000000e+00> : vector<16x384xf32>
      %155 = tpu.matmul %153, %154, %cst_115 {dimension_numbers = #tpu.dot_dimension_numbers<[1], [0], [0], [1], [0, 0, 1, 1], [], []>} : vector<16x32xf32>, vector<32x384xf32>, vector<16x384xf32> -> vector<16x384xf32>
      %156 = vector.extract_strided_slice %155 {offsets = [0, 0], sizes = [16, 128], strides = [1, 1]} : vector<16x384xf32> to vector<16x128xf32>
      %c0_116 = arith.constant 0 : index
      %c0_117 = arith.constant 0 : index
      %157 = vector.load %arg7[%c0_116, %c0_117] : memref<16x128xf32, #tpu.memory_space<vmem>>, vector<16x128xf32>
      %158 = arith.addf %156, %157 : vector<16x128xf32>
      %159 = math.tanh %158 : vector<16x128xf32>
      %160 = vector.extract_strided_slice %155 {offsets = [0, 128], sizes = [16, 128], strides = [1, 1]} : vector<16x384xf32> to vector<16x128xf32>
      %161 = vector.extract_strided_slice %155 {offsets = [0, 256], sizes = [16, 128], strides = [1, 1]} : vector<16x384xf32> to vector<16x128xf32>
      %162 = tpu.concatenate %160, %161 in 0 : vector<16x128xf32>, vector<16x128xf32> -> vector<32x128xf32>
      %c0_118 = arith.constant 0 : index
      %c0_119 = arith.constant 0 : index
      %163 = vector.load %arg9[%c0_118, %c0_119] : memref<32x32xf32, #tpu.memory_space<vmem>>, vector<32x32xf32>
      %cst_120 = arith.constant dense<0.000000e+00> : vector<32x128xf32>
      %164 = tpu.matmul %163, %162, %cst_120 {dimension_numbers = #tpu.dot_dimension_numbers<[1], [0], [0], [1], [0, 0, 1, 1], [], []>} : vector<32x32xf32>, vector<32x128xf32>, vector<32x128xf32> -> vector<32x128xf32>
      %c0_121 = arith.constant 0 : index
      %c0_122 = arith.constant 0 : index
      %165 = vector.load %arg8[%c0_121, %c0_122] : memref<32x128xf32, #tpu.memory_space<vmem>>, vector<32x128xf32>
      %166 = arith.addf %164, %165 : vector<32x128xf32>
      %c0_123 = arith.constant 0 : index
      %c0_124 = arith.constant 0 : index
      %167 = vector.load %arg10[%c0_123, %c0_124] : memref<16x32xf32, #tpu.memory_space<vmem>>, vector<16x32xf32>
      %168 = math.tanh %166 : vector<32x128xf32>
      %cst_125 = arith.constant dense<0.000000e+00> : vector<16x128xf32>
      %169 = tpu.matmul %167, %168, %cst_125 {dimension_numbers = #tpu.dot_dimension_numbers<[1], [0], [0], [1], [0, 0, 1, 1], [], []>} : vector<16x32xf32>, vector<32x128xf32>, vector<16x128xf32> -> vector<16x128xf32>
      %170 = tpu.concatenate %159, %169 in 1 : vector<16x128xf32>, vector<16x128xf32> -> vector<16x256xf32>
      %c0_126 = arith.constant 0 : index
      %c0_127 = arith.constant 0 : index
      %171 = vector.load %arg11[%c0_126, %c0_127] : memref<256x32xf32, #tpu.memory_space<vmem>>, vector<256x32xf32>
      %cst_128 = arith.constant dense<0.000000e+00> : vector<16x32xf32>
      %172 = tpu.matmul %170, %171, %cst_128 {dimension_numbers = #tpu.dot_dimension_numbers<[1], [0], [0], [1], [0, 0, 1, 1], [], []>} : vector<16x256xf32>, vector<256x32xf32>, vector<16x32xf32> -> vector<16x32xf32>
      %c0_129 = arith.constant 0 : index
      %c0_130 = arith.constant 0 : index
      %173 = vector.load %arg12[%c0_129, %c0_130] : memref<16x32xf32, #tpu.memory_space<vmem>>, vector<16x32xf32>
      %174 = arith.addf %172, %173 : vector<16x32xf32>
      %cst_131 = arith.constant 5.000000e-01 : f32
      %175 = arith.mulf %cst_131, %22 : f32
      %176 = vector.broadcast %175 : f32 to vector<16x32xf32>
      %177 = arith.mulf %176, %174 : vector<16x32xf32>
      %178 = arith.addf %128, %177 : vector<16x32xf32>
      %c0_132 = arith.constant 0 : index
      %c0_133 = arith.constant 0 : index
      %179 = vector.load %arg6[%c0_132, %c0_133] : memref<32x384xf32, #tpu.memory_space<vmem>>, vector<32x384xf32>
      %cst_134 = arith.constant dense<0.000000e+00> : vector<16x384xf32>
      %180 = tpu.matmul %178, %179, %cst_134 {dimension_numbers = #tpu.dot_dimension_numbers<[1], [0], [0], [1], [0, 0, 1, 1], [], []>} : vector<16x32xf32>, vector<32x384xf32>, vector<16x384xf32> -> vector<16x384xf32>
      %181 = vector.extract_strided_slice %180 {offsets = [0, 0], sizes = [16, 128], strides = [1, 1]} : vector<16x384xf32> to vector<16x128xf32>
      %c0_135 = arith.constant 0 : index
      %c0_136 = arith.constant 0 : index
      %182 = vector.load %arg7[%c0_135, %c0_136] : memref<16x128xf32, #tpu.memory_space<vmem>>, vector<16x128xf32>
      %183 = arith.addf %181, %182 : vector<16x128xf32>
      %184 = math.tanh %183 : vector<16x128xf32>
      %185 = vector.extract_strided_slice %180 {offsets = [0, 128], sizes = [16, 128], strides = [1, 1]} : vector<16x384xf32> to vector<16x128xf32>
      %186 = vector.extract_strided_slice %180 {offsets = [0, 256], sizes = [16, 128], strides = [1, 1]} : vector<16x384xf32> to vector<16x128xf32>
      %187 = tpu.concatenate %185, %186 in 0 : vector<16x128xf32>, vector<16x128xf32> -> vector<32x128xf32>
      %c0_137 = arith.constant 0 : index
      %c0_138 = arith.constant 0 : index
      %188 = vector.load %arg9[%c0_137, %c0_138] : memref<32x32xf32, #tpu.memory_space<vmem>>, vector<32x32xf32>
      %cst_139 = arith.constant dense<0.000000e+00> : vector<32x128xf32>
      %189 = tpu.matmul %188, %187, %cst_139 {dimension_numbers = #tpu.dot_dimension_numbers<[1], [0], [0], [1], [0, 0, 1, 1], [], []>} : vector<32x32xf32>, vector<32x128xf32>, vector<32x128xf32> -> vector<32x128xf32>
      %c0_140 = arith.constant 0 : index
      %c0_141 = arith.constant 0 : index
      %190 = vector.load %arg8[%c0_140, %c0_141] : memref<32x128xf32, #tpu.memory_space<vmem>>, vector<32x128xf32>
      %191 = arith.addf %189, %190 : vector<32x128xf32>
      %c0_142 = arith.constant 0 : index
      %c0_143 = arith.constant 0 : index
      %192 = vector.load %arg10[%c0_142, %c0_143] : memref<16x32xf32, #tpu.memory_space<vmem>>, vector<16x32xf32>
      %193 = math.tanh %191 : vector<32x128xf32>
      %cst_144 = arith.constant dense<0.000000e+00> : vector<16x128xf32>
      %194 = tpu.matmul %192, %193, %cst_144 {dimension_numbers = #tpu.dot_dimension_numbers<[1], [0], [0], [1], [0, 0, 1, 1], [], []>} : vector<16x32xf32>, vector<32x128xf32>, vector<16x128xf32> -> vector<16x128xf32>
      %195 = tpu.concatenate %184, %194 in 1 : vector<16x128xf32>, vector<16x128xf32> -> vector<16x256xf32>
      %c0_145 = arith.constant 0 : index
      %c0_146 = arith.constant 0 : index
      %196 = vector.load %arg11[%c0_145, %c0_146] : memref<256x32xf32, #tpu.memory_space<vmem>>, vector<256x32xf32>
      %cst_147 = arith.constant dense<0.000000e+00> : vector<16x32xf32>
      %197 = tpu.matmul %195, %196, %cst_147 {dimension_numbers = #tpu.dot_dimension_numbers<[1], [0], [0], [1], [0, 0, 1, 1], [], []>} : vector<16x256xf32>, vector<256x32xf32>, vector<16x32xf32> -> vector<16x32xf32>
      %c0_148 = arith.constant 0 : index
      %c0_149 = arith.constant 0 : index
      %198 = vector.load %arg12[%c0_148, %c0_149] : memref<16x32xf32, #tpu.memory_space<vmem>>, vector<16x32xf32>
      %199 = arith.addf %197, %198 : vector<16x32xf32>
      %200 = vector.broadcast %22 : f32 to vector<16x32xf32>
      %201 = arith.mulf %200, %199 : vector<16x32xf32>
      %202 = arith.addf %128, %201 : vector<16x32xf32>
      %c0_150 = arith.constant 0 : index
      %c0_151 = arith.constant 0 : index
      %203 = vector.load %arg6[%c0_150, %c0_151] : memref<32x384xf32, #tpu.memory_space<vmem>>, vector<32x384xf32>
      %cst_152 = arith.constant dense<0.000000e+00> : vector<16x384xf32>
      %204 = tpu.matmul %202, %203, %cst_152 {dimension_numbers = #tpu.dot_dimension_numbers<[1], [0], [0], [1], [0, 0, 1, 1], [], []>} : vector<16x32xf32>, vector<32x384xf32>, vector<16x384xf32> -> vector<16x384xf32>
      %205 = vector.extract_strided_slice %204 {offsets = [0, 0], sizes = [16, 128], strides = [1, 1]} : vector<16x384xf32> to vector<16x128xf32>
      %c0_153 = arith.constant 0 : index
      %c0_154 = arith.constant 0 : index
      %206 = vector.load %arg7[%c0_153, %c0_154] : memref<16x128xf32, #tpu.memory_space<vmem>>, vector<16x128xf32>
      %207 = arith.addf %205, %206 : vector<16x128xf32>
      %208 = math.tanh %207 : vector<16x128xf32>
      %209 = vector.extract_strided_slice %204 {offsets = [0, 128], sizes = [16, 128], strides = [1, 1]} : vector<16x384xf32> to vector<16x128xf32>
      %210 = vector.extract_strided_slice %204 {offsets = [0, 256], sizes = [16, 128], strides = [1, 1]} : vector<16x384xf32> to vector<16x128xf32>
      %211 = tpu.concatenate %209, %210 in 0 : vector<16x128xf32>, vector<16x128xf32> -> vector<32x128xf32>
      %c0_155 = arith.constant 0 : index
      %c0_156 = arith.constant 0 : index
      %212 = vector.load %arg9[%c0_155, %c0_156] : memref<32x32xf32, #tpu.memory_space<vmem>>, vector<32x32xf32>
      %cst_157 = arith.constant dense<0.000000e+00> : vector<32x128xf32>
      %213 = tpu.matmul %212, %211, %cst_157 {dimension_numbers = #tpu.dot_dimension_numbers<[1], [0], [0], [1], [0, 0, 1, 1], [], []>} : vector<32x32xf32>, vector<32x128xf32>, vector<32x128xf32> -> vector<32x128xf32>
      %c0_158 = arith.constant 0 : index
      %c0_159 = arith.constant 0 : index
      %214 = vector.load %arg8[%c0_158, %c0_159] : memref<32x128xf32, #tpu.memory_space<vmem>>, vector<32x128xf32>
      %215 = arith.addf %213, %214 : vector<32x128xf32>
      %c0_160 = arith.constant 0 : index
      %c0_161 = arith.constant 0 : index
      %216 = vector.load %arg10[%c0_160, %c0_161] : memref<16x32xf32, #tpu.memory_space<vmem>>, vector<16x32xf32>
      %217 = math.tanh %215 : vector<32x128xf32>
      %cst_162 = arith.constant dense<0.000000e+00> : vector<16x128xf32>
      %218 = tpu.matmul %216, %217, %cst_162 {dimension_numbers = #tpu.dot_dimension_numbers<[1], [0], [0], [1], [0, 0, 1, 1], [], []>} : vector<16x32xf32>, vector<32x128xf32>, vector<16x128xf32> -> vector<16x128xf32>
      %219 = tpu.concatenate %208, %218 in 1 : vector<16x128xf32>, vector<16x128xf32> -> vector<16x256xf32>
      %c0_163 = arith.constant 0 : index
      %c0_164 = arith.constant 0 : index
      %220 = vector.load %arg11[%c0_163, %c0_164] : memref<256x32xf32, #tpu.memory_space<vmem>>, vector<256x32xf32>
      %cst_165 = arith.constant dense<0.000000e+00> : vector<16x32xf32>
      %221 = tpu.matmul %219, %220, %cst_165 {dimension_numbers = #tpu.dot_dimension_numbers<[1], [0], [0], [1], [0, 0, 1, 1], [], []>} : vector<16x256xf32>, vector<256x32xf32>, vector<16x32xf32> -> vector<16x32xf32>
      %c0_166 = arith.constant 0 : index
      %c0_167 = arith.constant 0 : index
      %222 = vector.load %arg12[%c0_166, %c0_167] : memref<16x32xf32, #tpu.memory_space<vmem>>, vector<16x32xf32>
      %223 = arith.addf %221, %222 : vector<16x32xf32>
      %cst_168 = arith.constant 6.000000e+00 : f32
      %224 = arith.divf %22, %cst_168 : f32
      %cst_169 = arith.constant 2.000000e+00 : f32
      %225 = vector.broadcast %cst_169 : f32 to vector<16x32xf32>
      %226 = arith.mulf %225, %174 : vector<16x32xf32>
      %227 = arith.addf %149, %226 : vector<16x32xf32>
      %cst_170 = arith.constant 2.000000e+00 : f32
      %228 = vector.broadcast %cst_170 : f32 to vector<16x32xf32>
      %229 = arith.mulf %228, %199 : vector<16x32xf32>
      %230 = arith.addf %227, %229 : vector<16x32xf32>
      %231 = arith.addf %230, %223 : vector<16x32xf32>
      %232 = vector.broadcast %224 : f32 to vector<16x32xf32>
      %233 = arith.mulf %232, %231 : vector<16x32xf32>
      %234 = arith.addf %128, %233 : vector<16x32xf32>
      %c2_i32 = arith.constant 2 : i32
      %c0_171 = arith.constant 0 : index
      %c0_172 = arith.constant 0 : index
      %235 = vector.load %arg6[%c0_171, %c0_172] : memref<32x384xf32, #tpu.memory_space<vmem>>, vector<32x384xf32>
      %cst_173 = arith.constant dense<0.000000e+00> : vector<16x384xf32>
      %236 = tpu.matmul %234, %235, %cst_173 {dimension_numbers = #tpu.dot_dimension_numbers<[1], [0], [0], [1], [0, 0, 1, 1], [], []>} : vector<16x32xf32>, vector<32x384xf32>, vector<16x384xf32> -> vector<16x384xf32>
      %237 = vector.extract_strided_slice %236 {offsets = [0, 0], sizes = [16, 128], strides = [1, 1]} : vector<16x384xf32> to vector<16x128xf32>
      %c0_174 = arith.constant 0 : index
      %c0_175 = arith.constant 0 : index
      %238 = vector.load %arg7[%c0_174, %c0_175] : memref<16x128xf32, #tpu.memory_space<vmem>>, vector<16x128xf32>
      %239 = arith.addf %237, %238 : vector<16x128xf32>
      %240 = math.tanh %239 : vector<16x128xf32>
      %241 = vector.extract_strided_slice %236 {offsets = [0, 128], sizes = [16, 128], strides = [1, 1]} : vector<16x384xf32> to vector<16x128xf32>
      %242 = vector.extract_strided_slice %236 {offsets = [0, 256], sizes = [16, 128], strides = [1, 1]} : vector<16x384xf32> to vector<16x128xf32>
      %243 = tpu.concatenate %241, %242 in 0 : vector<16x128xf32>, vector<16x128xf32> -> vector<32x128xf32>
      %c0_176 = arith.constant 0 : index
      %c0_177 = arith.constant 0 : index
      %244 = vector.load %arg9[%c0_176, %c0_177] : memref<32x32xf32, #tpu.memory_space<vmem>>, vector<32x32xf32>
      %cst_178 = arith.constant dense<0.000000e+00> : vector<32x128xf32>
      %245 = tpu.matmul %244, %243, %cst_178 {dimension_numbers = #tpu.dot_dimension_numbers<[1], [0], [0], [1], [0, 0, 1, 1], [], []>} : vector<32x32xf32>, vector<32x128xf32>, vector<32x128xf32> -> vector<32x128xf32>
      %c0_179 = arith.constant 0 : index
      %c0_180 = arith.constant 0 : index
      %246 = vector.load %arg8[%c0_179, %c0_180] : memref<32x128xf32, #tpu.memory_space<vmem>>, vector<32x128xf32>
      %247 = arith.addf %245, %246 : vector<32x128xf32>
      %c0_181 = arith.constant 0 : index
      %c0_182 = arith.constant 0 : index
      %248 = vector.load %arg10[%c0_181, %c0_182] : memref<16x32xf32, #tpu.memory_space<vmem>>, vector<16x32xf32>
      %249 = math.tanh %247 : vector<32x128xf32>
      %cst_183 = arith.constant dense<0.000000e+00> : vector<16x128xf32>
      %250 = tpu.matmul %248, %249, %cst_183 {dimension_numbers = #tpu.dot_dimension_numbers<[1], [0], [0], [1], [0, 0, 1, 1], [], []>} : vector<16x32xf32>, vector<32x128xf32>, vector<16x128xf32> -> vector<16x128xf32>
      %251 = tpu.concatenate %240, %250 in 1 : vector<16x128xf32>, vector<16x128xf32> -> vector<16x256xf32>
      %c0_184 = arith.constant 0 : index
      %c0_185 = arith.constant 0 : index
      %252 = vector.load %arg11[%c0_184, %c0_185] : memref<256x32xf32, #tpu.memory_space<vmem>>, vector<256x32xf32>
      %cst_186 = arith.constant dense<0.000000e+00> : vector<16x32xf32>
      %253 = tpu.matmul %251, %252, %cst_186 {dimension_numbers = #tpu.dot_dimension_numbers<[1], [0], [0], [1], [0, 0, 1, 1], [], []>} : vector<16x256xf32>, vector<256x32xf32>, vector<16x32xf32> -> vector<16x32xf32>
      %c0_187 = arith.constant 0 : index
      %c0_188 = arith.constant 0 : index
      %254 = vector.load %arg12[%c0_187, %c0_188] : memref<16x32xf32, #tpu.memory_space<vmem>>, vector<16x32xf32>
      %255 = arith.addf %253, %254 : vector<16x32xf32>
      %cst_189 = arith.constant 5.000000e-01 : f32
      %256 = arith.mulf %cst_189, %22 : f32
      %257 = vector.broadcast %256 : f32 to vector<16x32xf32>
      %258 = arith.mulf %257, %255 : vector<16x32xf32>
      %259 = arith.addf %234, %258 : vector<16x32xf32>
      %c0_190 = arith.constant 0 : index
      %c0_191 = arith.constant 0 : index
      %260 = vector.load %arg6[%c0_190, %c0_191] : memref<32x384xf32, #tpu.memory_space<vmem>>, vector<32x384xf32>
      %cst_192 = arith.constant dense<0.000000e+00> : vector<16x384xf32>
      %261 = tpu.matmul %259, %260, %cst_192 {dimension_numbers = #tpu.dot_dimension_numbers<[1], [0], [0], [1], [0, 0, 1, 1], [], []>} : vector<16x32xf32>, vector<32x384xf32>, vector<16x384xf32> -> vector<16x384xf32>
      %262 = vector.extract_strided_slice %261 {offsets = [0, 0], sizes = [16, 128], strides = [1, 1]} : vector<16x384xf32> to vector<16x128xf32>
      %c0_193 = arith.constant 0 : index
      %c0_194 = arith.constant 0 : index
      %263 = vector.load %arg7[%c0_193, %c0_194] : memref<16x128xf32, #tpu.memory_space<vmem>>, vector<16x128xf32>
      %264 = arith.addf %262, %263 : vector<16x128xf32>
      %265 = math.tanh %264 : vector<16x128xf32>
      %266 = vector.extract_strided_slice %261 {offsets = [0, 128], sizes = [16, 128], strides = [1, 1]} : vector<16x384xf32> to vector<16x128xf32>
      %267 = vector.extract_strided_slice %261 {offsets = [0, 256], sizes = [16, 128], strides = [1, 1]} : vector<16x384xf32> to vector<16x128xf32>
      %268 = tpu.concatenate %266, %267 in 0 : vector<16x128xf32>, vector<16x128xf32> -> vector<32x128xf32>
      %c0_195 = arith.constant 0 : index
      %c0_196 = arith.constant 0 : index
      %269 = vector.load %arg9[%c0_195, %c0_196] : memref<32x32xf32, #tpu.memory_space<vmem>>, vector<32x32xf32>
      %cst_197 = arith.constant dense<0.000000e+00> : vector<32x128xf32>
      %270 = tpu.matmul %269, %268, %cst_197 {dimension_numbers = #tpu.dot_dimension_numbers<[1], [0], [0], [1], [0, 0, 1, 1], [], []>} : vector<32x32xf32>, vector<32x128xf32>, vector<32x128xf32> -> vector<32x128xf32>
      %c0_198 = arith.constant 0 : index
      %c0_199 = arith.constant 0 : index
      %271 = vector.load %arg8[%c0_198, %c0_199] : memref<32x128xf32, #tpu.memory_space<vmem>>, vector<32x128xf32>
      %272 = arith.addf %270, %271 : vector<32x128xf32>
      %c0_200 = arith.constant 0 : index
      %c0_201 = arith.constant 0 : index
      %273 = vector.load %arg10[%c0_200, %c0_201] : memref<16x32xf32, #tpu.memory_space<vmem>>, vector<16x32xf32>
      %274 = math.tanh %272 : vector<32x128xf32>
      %cst_202 = arith.constant dense<0.000000e+00> : vector<16x128xf32>
      %275 = tpu.matmul %273, %274, %cst_202 {dimension_numbers = #tpu.dot_dimension_numbers<[1], [0], [0], [1], [0, 0, 1, 1], [], []>} : vector<16x32xf32>, vector<32x128xf32>, vector<16x128xf32> -> vector<16x128xf32>
      %276 = tpu.concatenate %265, %275 in 1 : vector<16x128xf32>, vector<16x128xf32> -> vector<16x256xf32>
      %c0_203 = arith.constant 0 : index
      %c0_204 = arith.constant 0 : index
      %277 = vector.load %arg11[%c0_203, %c0_204] : memref<256x32xf32, #tpu.memory_space<vmem>>, vector<256x32xf32>
      %cst_205 = arith.constant dense<0.000000e+00> : vector<16x32xf32>
      %278 = tpu.matmul %276, %277, %cst_205 {dimension_numbers = #tpu.dot_dimension_numbers<[1], [0], [0], [1], [0, 0, 1, 1], [], []>} : vector<16x256xf32>, vector<256x32xf32>, vector<16x32xf32> -> vector<16x32xf32>
      %c0_206 = arith.constant 0 : index
      %c0_207 = arith.constant 0 : index
      %279 = vector.load %arg12[%c0_206, %c0_207] : memref<16x32xf32, #tpu.memory_space<vmem>>, vector<16x32xf32>
      %280 = arith.addf %278, %279 : vector<16x32xf32>
      %cst_208 = arith.constant 5.000000e-01 : f32
      %281 = arith.mulf %cst_208, %22 : f32
      %282 = vector.broadcast %281 : f32 to vector<16x32xf32>
      %283 = arith.mulf %282, %280 : vector<16x32xf32>
      %284 = arith.addf %234, %283 : vector<16x32xf32>
      %c0_209 = arith.constant 0 : index
      %c0_210 = arith.constant 0 : index
      %285 = vector.load %arg6[%c0_209, %c0_210] : memref<32x384xf32, #tpu.memory_space<vmem>>, vector<32x384xf32>
      %cst_211 = arith.constant dense<0.000000e+00> : vector<16x384xf32>
      %286 = tpu.matmul %284, %285, %cst_211 {dimension_numbers = #tpu.dot_dimension_numbers<[1], [0], [0], [1], [0, 0, 1, 1], [], []>} : vector<16x32xf32>, vector<32x384xf32>, vector<16x384xf32> -> vector<16x384xf32>
      %287 = vector.extract_strided_slice %286 {offsets = [0, 0], sizes = [16, 128], strides = [1, 1]} : vector<16x384xf32> to vector<16x128xf32>
      %c0_212 = arith.constant 0 : index
      %c0_213 = arith.constant 0 : index
      %288 = vector.load %arg7[%c0_212, %c0_213] : memref<16x128xf32, #tpu.memory_space<vmem>>, vector<16x128xf32>
      %289 = arith.addf %287, %288 : vector<16x128xf32>
      %290 = math.tanh %289 : vector<16x128xf32>
      %291 = vector.extract_strided_slice %286 {offsets = [0, 128], sizes = [16, 128], strides = [1, 1]} : vector<16x384xf32> to vector<16x128xf32>
      %292 = vector.extract_strided_slice %286 {offsets = [0, 256], sizes = [16, 128], strides = [1, 1]} : vector<16x384xf32> to vector<16x128xf32>
      %293 = tpu.concatenate %291, %292 in 0 : vector<16x128xf32>, vector<16x128xf32> -> vector<32x128xf32>
      %c0_214 = arith.constant 0 : index
      %c0_215 = arith.constant 0 : index
      %294 = vector.load %arg9[%c0_214, %c0_215] : memref<32x32xf32, #tpu.memory_space<vmem>>, vector<32x32xf32>
      %cst_216 = arith.constant dense<0.000000e+00> : vector<32x128xf32>
      %295 = tpu.matmul %294, %293, %cst_216 {dimension_numbers = #tpu.dot_dimension_numbers<[1], [0], [0], [1], [0, 0, 1, 1], [], []>} : vector<32x32xf32>, vector<32x128xf32>, vector<32x128xf32> -> vector<32x128xf32>
      %c0_217 = arith.constant 0 : index
      %c0_218 = arith.constant 0 : index
      %296 = vector.load %arg8[%c0_217, %c0_218] : memref<32x128xf32, #tpu.memory_space<vmem>>, vector<32x128xf32>
      %297 = arith.addf %295, %296 : vector<32x128xf32>
      %c0_219 = arith.constant 0 : index
      %c0_220 = arith.constant 0 : index
      %298 = vector.load %arg10[%c0_219, %c0_220] : memref<16x32xf32, #tpu.memory_space<vmem>>, vector<16x32xf32>
      %299 = math.tanh %297 : vector<32x128xf32>
      %cst_221 = arith.constant dense<0.000000e+00> : vector<16x128xf32>
      %300 = tpu.matmul %298, %299, %cst_221 {dimension_numbers = #tpu.dot_dimension_numbers<[1], [0], [0], [1], [0, 0, 1, 1], [], []>} : vector<16x32xf32>, vector<32x128xf32>, vector<16x128xf32> -> vector<16x128xf32>
      %301 = tpu.concatenate %290, %300 in 1 : vector<16x128xf32>, vector<16x128xf32> -> vector<16x256xf32>
      %c0_222 = arith.constant 0 : index
      %c0_223 = arith.constant 0 : index
      %302 = vector.load %arg11[%c0_222, %c0_223] : memref<256x32xf32, #tpu.memory_space<vmem>>, vector<256x32xf32>
      %cst_224 = arith.constant dense<0.000000e+00> : vector<16x32xf32>
      %303 = tpu.matmul %301, %302, %cst_224 {dimension_numbers = #tpu.dot_dimension_numbers<[1], [0], [0], [1], [0, 0, 1, 1], [], []>} : vector<16x256xf32>, vector<256x32xf32>, vector<16x32xf32> -> vector<16x32xf32>
      %c0_225 = arith.constant 0 : index
      %c0_226 = arith.constant 0 : index
      %304 = vector.load %arg12[%c0_225, %c0_226] : memref<16x32xf32, #tpu.memory_space<vmem>>, vector<16x32xf32>
      %305 = arith.addf %303, %304 : vector<16x32xf32>
      %306 = vector.broadcast %22 : f32 to vector<16x32xf32>
      %307 = arith.mulf %306, %305 : vector<16x32xf32>
      %308 = arith.addf %234, %307 : vector<16x32xf32>
      %c0_227 = arith.constant 0 : index
      %c0_228 = arith.constant 0 : index
      %309 = vector.load %arg6[%c0_227, %c0_228] : memref<32x384xf32, #tpu.memory_space<vmem>>, vector<32x384xf32>
      %cst_229 = arith.constant dense<0.000000e+00> : vector<16x384xf32>
      %310 = tpu.matmul %308, %309, %cst_229 {dimension_numbers = #tpu.dot_dimension_numbers<[1], [0], [0], [1], [0, 0, 1, 1], [], []>} : vector<16x32xf32>, vector<32x384xf32>, vector<16x384xf32> -> vector<16x384xf32>
      %311 = vector.extract_strided_slice %310 {offsets = [0, 0], sizes = [16, 128], strides = [1, 1]} : vector<16x384xf32> to vector<16x128xf32>
      %c0_230 = arith.constant 0 : index
      %c0_231 = arith.constant 0 : index
      %312 = vector.load %arg7[%c0_230, %c0_231] : memref<16x128xf32, #tpu.memory_space<vmem>>, vector<16x128xf32>
      %313 = arith.addf %311, %312 : vector<16x128xf32>
      %314 = math.tanh %313 : vector<16x128xf32>
      %315 = vector.extract_strided_slice %310 {offsets = [0, 128], sizes = [16, 128], strides = [1, 1]} : vector<16x384xf32> to vector<16x128xf32>
      %316 = vector.extract_strided_slice %310 {offsets = [0, 256], sizes = [16, 128], strides = [1, 1]} : vector<16x384xf32> to vector<16x128xf32>
      %317 = tpu.concatenate %315, %316 in 0 : vector<16x128xf32>, vector<16x128xf32> -> vector<32x128xf32>
      %c0_232 = arith.constant 0 : index
      %c0_233 = arith.constant 0 : index
      %318 = vector.load %arg9[%c0_232, %c0_233] : memref<32x32xf32, #tpu.memory_space<vmem>>, vector<32x32xf32>
      %cst_234 = arith.constant dense<0.000000e+00> : vector<32x128xf32>
      %319 = tpu.matmul %318, %317, %cst_234 {dimension_numbers = #tpu.dot_dimension_numbers<[1], [0], [0], [1], [0, 0, 1, 1], [], []>} : vector<32x32xf32>, vector<32x128xf32>, vector<32x128xf32> -> vector<32x128xf32>
      %c0_235 = arith.constant 0 : index
      %c0_236 = arith.constant 0 : index
      %320 = vector.load %arg8[%c0_235, %c0_236] : memref<32x128xf32, #tpu.memory_space<vmem>>, vector<32x128xf32>
      %321 = arith.addf %319, %320 : vector<32x128xf32>
      %c0_237 = arith.constant 0 : index
      %c0_238 = arith.constant 0 : index
      %322 = vector.load %arg10[%c0_237, %c0_238] : memref<16x32xf32, #tpu.memory_space<vmem>>, vector<16x32xf32>
      %323 = math.tanh %321 : vector<32x128xf32>
      %cst_239 = arith.constant dense<0.000000e+00> : vector<16x128xf32>
      %324 = tpu.matmul %322, %323, %cst_239 {dimension_numbers = #tpu.dot_dimension_numbers<[1], [0], [0], [1], [0, 0, 1, 1], [], []>} : vector<16x32xf32>, vector<32x128xf32>, vector<16x128xf32> -> vector<16x128xf32>
      %325 = tpu.concatenate %314, %324 in 1 : vector<16x128xf32>, vector<16x128xf32> -> vector<16x256xf32>
      %c0_240 = arith.constant 0 : index
      %c0_241 = arith.constant 0 : index
      %326 = vector.load %arg11[%c0_240, %c0_241] : memref<256x32xf32, #tpu.memory_space<vmem>>, vector<256x32xf32>
      %cst_242 = arith.constant dense<0.000000e+00> : vector<16x32xf32>
      %327 = tpu.matmul %325, %326, %cst_242 {dimension_numbers = #tpu.dot_dimension_numbers<[1], [0], [0], [1], [0, 0, 1, 1], [], []>} : vector<16x256xf32>, vector<256x32xf32>, vector<16x32xf32> -> vector<16x32xf32>
      %c0_243 = arith.constant 0 : index
      %c0_244 = arith.constant 0 : index
      %328 = vector.load %arg12[%c0_243, %c0_244] : memref<16x32xf32, #tpu.memory_space<vmem>>, vector<16x32xf32>
      %329 = arith.addf %327, %328 : vector<16x32xf32>
      %cst_245 = arith.constant 6.000000e+00 : f32
      %330 = arith.divf %22, %cst_245 : f32
      %cst_246 = arith.constant 2.000000e+00 : f32
      %331 = vector.broadcast %cst_246 : f32 to vector<16x32xf32>
      %332 = arith.mulf %331, %280 : vector<16x32xf32>
      %333 = arith.addf %255, %332 : vector<16x32xf32>
      %cst_247 = arith.constant 2.000000e+00 : f32
      %334 = vector.broadcast %cst_247 : f32 to vector<16x32xf32>
      %335 = arith.mulf %334, %305 : vector<16x32xf32>
      %336 = arith.addf %333, %335 : vector<16x32xf32>
      %337 = arith.addf %336, %329 : vector<16x32xf32>
      %338 = vector.broadcast %330 : f32 to vector<16x32xf32>
      %339 = arith.mulf %338, %337 : vector<16x32xf32>
      %340 = arith.addf %234, %339 : vector<16x32xf32>
      %c3_i32 = arith.constant 3 : i32
      %c0_248 = arith.constant 0 : index
      %c0_249 = arith.constant 0 : index
      %341 = vector.load %arg6[%c0_248, %c0_249] : memref<32x384xf32, #tpu.memory_space<vmem>>, vector<32x384xf32>
      %cst_250 = arith.constant dense<0.000000e+00> : vector<16x384xf32>
      %342 = tpu.matmul %340, %341, %cst_250 {dimension_numbers = #tpu.dot_dimension_numbers<[1], [0], [0], [1], [0, 0, 1, 1], [], []>} : vector<16x32xf32>, vector<32x384xf32>, vector<16x384xf32> -> vector<16x384xf32>
      %343 = vector.extract_strided_slice %342 {offsets = [0, 0], sizes = [16, 128], strides = [1, 1]} : vector<16x384xf32> to vector<16x128xf32>
      %c0_251 = arith.constant 0 : index
      %c0_252 = arith.constant 0 : index
      %344 = vector.load %arg7[%c0_251, %c0_252] : memref<16x128xf32, #tpu.memory_space<vmem>>, vector<16x128xf32>
      %345 = arith.addf %343, %344 : vector<16x128xf32>
      %346 = math.tanh %345 : vector<16x128xf32>
      %347 = vector.extract_strided_slice %342 {offsets = [0, 128], sizes = [16, 128], strides = [1, 1]} : vector<16x384xf32> to vector<16x128xf32>
      %348 = vector.extract_strided_slice %342 {offsets = [0, 256], sizes = [16, 128], strides = [1, 1]} : vector<16x384xf32> to vector<16x128xf32>
      %349 = tpu.concatenate %347, %348 in 0 : vector<16x128xf32>, vector<16x128xf32> -> vector<32x128xf32>
      %c0_253 = arith.constant 0 : index
      %c0_254 = arith.constant 0 : index
      %350 = vector.load %arg9[%c0_253, %c0_254] : memref<32x32xf32, #tpu.memory_space<vmem>>, vector<32x32xf32>
      %cst_255 = arith.constant dense<0.000000e+00> : vector<32x128xf32>
      %351 = tpu.matmul %350, %349, %cst_255 {dimension_numbers = #tpu.dot_dimension_numbers<[1], [0], [0], [1], [0, 0, 1, 1], [], []>} : vector<32x32xf32>, vector<32x128xf32>, vector<32x128xf32> -> vector<32x128xf32>
      %c0_256 = arith.constant 0 : index
      %c0_257 = arith.constant 0 : index
      %352 = vector.load %arg8[%c0_256, %c0_257] : memref<32x128xf32, #tpu.memory_space<vmem>>, vector<32x128xf32>
      %353 = arith.addf %351, %352 : vector<32x128xf32>
      %c0_258 = arith.constant 0 : index
      %c0_259 = arith.constant 0 : index
      %354 = vector.load %arg10[%c0_258, %c0_259] : memref<16x32xf32, #tpu.memory_space<vmem>>, vector<16x32xf32>
      %355 = math.tanh %353 : vector<32x128xf32>
      %cst_260 = arith.constant dense<0.000000e+00> : vector<16x128xf32>
      %356 = tpu.matmul %354, %355, %cst_260 {dimension_numbers = #tpu.dot_dimension_numbers<[1], [0], [0], [1], [0, 0, 1, 1], [], []>} : vector<16x32xf32>, vector<32x128xf32>, vector<16x128xf32> -> vector<16x128xf32>
      %357 = tpu.concatenate %346, %356 in 1 : vector<16x128xf32>, vector<16x128xf32> -> vector<16x256xf32>
      %c0_261 = arith.constant 0 : index
      %c0_262 = arith.constant 0 : index
      %358 = vector.load %arg11[%c0_261, %c0_262] : memref<256x32xf32, #tpu.memory_space<vmem>>, vector<256x32xf32>
      %cst_263 = arith.constant dense<0.000000e+00> : vector<16x32xf32>
      %359 = tpu.matmul %357, %358, %cst_263 {dimension_numbers = #tpu.dot_dimension_numbers<[1], [0], [0], [1], [0, 0, 1, 1], [], []>} : vector<16x256xf32>, vector<256x32xf32>, vector<16x32xf32> -> vector<16x32xf32>
      %c0_264 = arith.constant 0 : index
      %c0_265 = arith.constant 0 : index
      %360 = vector.load %arg12[%c0_264, %c0_265] : memref<16x32xf32, #tpu.memory_space<vmem>>, vector<16x32xf32>
      %361 = arith.addf %359, %360 : vector<16x32xf32>
      %cst_266 = arith.constant 5.000000e-01 : f32
      %362 = arith.mulf %cst_266, %22 : f32
      %363 = vector.broadcast %362 : f32 to vector<16x32xf32>
      %364 = arith.mulf %363, %361 : vector<16x32xf32>
      %365 = arith.addf %340, %364 : vector<16x32xf32>
      %c0_267 = arith.constant 0 : index
      %c0_268 = arith.constant 0 : index
      %366 = vector.load %arg6[%c0_267, %c0_268] : memref<32x384xf32, #tpu.memory_space<vmem>>, vector<32x384xf32>
      %cst_269 = arith.constant dense<0.000000e+00> : vector<16x384xf32>
      %367 = tpu.matmul %365, %366, %cst_269 {dimension_numbers = #tpu.dot_dimension_numbers<[1], [0], [0], [1], [0, 0, 1, 1], [], []>} : vector<16x32xf32>, vector<32x384xf32>, vector<16x384xf32> -> vector<16x384xf32>
      %368 = vector.extract_strided_slice %367 {offsets = [0, 0], sizes = [16, 128], strides = [1, 1]} : vector<16x384xf32> to vector<16x128xf32>
      %c0_270 = arith.constant 0 : index
      %c0_271 = arith.constant 0 : index
      %369 = vector.load %arg7[%c0_270, %c0_271] : memref<16x128xf32, #tpu.memory_space<vmem>>, vector<16x128xf32>
      %370 = arith.addf %368, %369 : vector<16x128xf32>
      %371 = math.tanh %370 : vector<16x128xf32>
      %372 = vector.extract_strided_slice %367 {offsets = [0, 128], sizes = [16, 128], strides = [1, 1]} : vector<16x384xf32> to vector<16x128xf32>
      %373 = vector.extract_strided_slice %367 {offsets = [0, 256], sizes = [16, 128], strides = [1, 1]} : vector<16x384xf32> to vector<16x128xf32>
      %374 = tpu.concatenate %372, %373 in 0 : vector<16x128xf32>, vector<16x128xf32> -> vector<32x128xf32>
      %c0_272 = arith.constant 0 : index
      %c0_273 = arith.constant 0 : index
      %375 = vector.load %arg9[%c0_272, %c0_273] : memref<32x32xf32, #tpu.memory_space<vmem>>, vector<32x32xf32>
      %cst_274 = arith.constant dense<0.000000e+00> : vector<32x128xf32>
      %376 = tpu.matmul %375, %374, %cst_274 {dimension_numbers = #tpu.dot_dimension_numbers<[1], [0], [0], [1], [0, 0, 1, 1], [], []>} : vector<32x32xf32>, vector<32x128xf32>, vector<32x128xf32> -> vector<32x128xf32>
      %c0_275 = arith.constant 0 : index
      %c0_276 = arith.constant 0 : index
      %377 = vector.load %arg8[%c0_275, %c0_276] : memref<32x128xf32, #tpu.memory_space<vmem>>, vector<32x128xf32>
      %378 = arith.addf %376, %377 : vector<32x128xf32>
      %c0_277 = arith.constant 0 : index
      %c0_278 = arith.constant 0 : index
      %379 = vector.load %arg10[%c0_277, %c0_278] : memref<16x32xf32, #tpu.memory_space<vmem>>, vector<16x32xf32>
      %380 = math.tanh %378 : vector<32x128xf32>
      %cst_279 = arith.constant dense<0.000000e+00> : vector<16x128xf32>
      %381 = tpu.matmul %379, %380, %cst_279 {dimension_numbers = #tpu.dot_dimension_numbers<[1], [0], [0], [1], [0, 0, 1, 1], [], []>} : vector<16x32xf32>, vector<32x128xf32>, vector<16x128xf32> -> vector<16x128xf32>
      %382 = tpu.concatenate %371, %381 in 1 : vector<16x128xf32>, vector<16x128xf32> -> vector<16x256xf32>
      %c0_280 = arith.constant 0 : index
      %c0_281 = arith.constant 0 : index
      %383 = vector.load %arg11[%c0_280, %c0_281] : memref<256x32xf32, #tpu.memory_space<vmem>>, vector<256x32xf32>
      %cst_282 = arith.constant dense<0.000000e+00> : vector<16x32xf32>
      %384 = tpu.matmul %382, %383, %cst_282 {dimension_numbers = #tpu.dot_dimension_numbers<[1], [0], [0], [1], [0, 0, 1, 1], [], []>} : vector<16x256xf32>, vector<256x32xf32>, vector<16x32xf32> -> vector<16x32xf32>
      %c0_283 = arith.constant 0 : index
      %c0_284 = arith.constant 0 : index
      %385 = vector.load %arg12[%c0_283, %c0_284] : memref<16x32xf32, #tpu.memory_space<vmem>>, vector<16x32xf32>
      %386 = arith.addf %384, %385 : vector<16x32xf32>
      %cst_285 = arith.constant 5.000000e-01 : f32
      %387 = arith.mulf %cst_285, %22 : f32
      %388 = vector.broadcast %387 : f32 to vector<16x32xf32>
      %389 = arith.mulf %388, %386 : vector<16x32xf32>
      %390 = arith.addf %340, %389 : vector<16x32xf32>
      %c0_286 = arith.constant 0 : index
      %c0_287 = arith.constant 0 : index
      %391 = vector.load %arg6[%c0_286, %c0_287] : memref<32x384xf32, #tpu.memory_space<vmem>>, vector<32x384xf32>
      %cst_288 = arith.constant dense<0.000000e+00> : vector<16x384xf32>
      %392 = tpu.matmul %390, %391, %cst_288 {dimension_numbers = #tpu.dot_dimension_numbers<[1], [0], [0], [1], [0, 0, 1, 1], [], []>} : vector<16x32xf32>, vector<32x384xf32>, vector<16x384xf32> -> vector<16x384xf32>
      %393 = vector.extract_strided_slice %392 {offsets = [0, 0], sizes = [16, 128], strides = [1, 1]} : vector<16x384xf32> to vector<16x128xf32>
      %c0_289 = arith.constant 0 : index
      %c0_290 = arith.constant 0 : index
      %394 = vector.load %arg7[%c0_289, %c0_290] : memref<16x128xf32, #tpu.memory_space<vmem>>, vector<16x128xf32>
      %395 = arith.addf %393, %394 : vector<16x128xf32>
      %396 = math.tanh %395 : vector<16x128xf32>
      %397 = vector.extract_strided_slice %392 {offsets = [0, 128], sizes = [16, 128], strides = [1, 1]} : vector<16x384xf32> to vector<16x128xf32>
      %398 = vector.extract_strided_slice %392 {offsets = [0, 256], sizes = [16, 128], strides = [1, 1]} : vector<16x384xf32> to vector<16x128xf32>
      %399 = tpu.concatenate %397, %398 in 0 : vector<16x128xf32>, vector<16x128xf32> -> vector<32x128xf32>
      %c0_291 = arith.constant 0 : index
      %c0_292 = arith.constant 0 : index
      %400 = vector.load %arg9[%c0_291, %c0_292] : memref<32x32xf32, #tpu.memory_space<vmem>>, vector<32x32xf32>
      %cst_293 = arith.constant dense<0.000000e+00> : vector<32x128xf32>
      %401 = tpu.matmul %400, %399, %cst_293 {dimension_numbers = #tpu.dot_dimension_numbers<[1], [0], [0], [1], [0, 0, 1, 1], [], []>} : vector<32x32xf32>, vector<32x128xf32>, vector<32x128xf32> -> vector<32x128xf32>
      %c0_294 = arith.constant 0 : index
      %c0_295 = arith.constant 0 : index
      %402 = vector.load %arg8[%c0_294, %c0_295] : memref<32x128xf32, #tpu.memory_space<vmem>>, vector<32x128xf32>
      %403 = arith.addf %401, %402 : vector<32x128xf32>
      %c0_296 = arith.constant 0 : index
      %c0_297 = arith.constant 0 : index
      %404 = vector.load %arg10[%c0_296, %c0_297] : memref<16x32xf32, #tpu.memory_space<vmem>>, vector<16x32xf32>
      %405 = math.tanh %403 : vector<32x128xf32>
      %cst_298 = arith.constant dense<0.000000e+00> : vector<16x128xf32>
      %406 = tpu.matmul %404, %405, %cst_298 {dimension_numbers = #tpu.dot_dimension_numbers<[1], [0], [0], [1], [0, 0, 1, 1], [], []>} : vector<16x32xf32>, vector<32x128xf32>, vector<16x128xf32> -> vector<16x128xf32>
      %407 = tpu.concatenate %396, %406 in 1 : vector<16x128xf32>, vector<16x128xf32> -> vector<16x256xf32>
      %c0_299 = arith.constant 0 : index
      %c0_300 = arith.constant 0 : index
      %408 = vector.load %arg11[%c0_299, %c0_300] : memref<256x32xf32, #tpu.memory_space<vmem>>, vector<256x32xf32>
      %cst_301 = arith.constant dense<0.000000e+00> : vector<16x32xf32>
      %409 = tpu.matmul %407, %408, %cst_301 {dimension_numbers = #tpu.dot_dimension_numbers<[1], [0], [0], [1], [0, 0, 1, 1], [], []>} : vector<16x256xf32>, vector<256x32xf32>, vector<16x32xf32> -> vector<16x32xf32>
      %c0_302 = arith.constant 0 : index
      %c0_303 = arith.constant 0 : index
      %410 = vector.load %arg12[%c0_302, %c0_303] : memref<16x32xf32, #tpu.memory_space<vmem>>, vector<16x32xf32>
      %411 = arith.addf %409, %410 : vector<16x32xf32>
      %412 = vector.broadcast %22 : f32 to vector<16x32xf32>
      %413 = arith.mulf %412, %411 : vector<16x32xf32>
      %414 = arith.addf %340, %413 : vector<16x32xf32>
      %c0_304 = arith.constant 0 : index
      %c0_305 = arith.constant 0 : index
      %415 = vector.load %arg6[%c0_304, %c0_305] : memref<32x384xf32, #tpu.memory_space<vmem>>, vector<32x384xf32>
      %cst_306 = arith.constant dense<0.000000e+00> : vector<16x384xf32>
      %416 = tpu.matmul %414, %415, %cst_306 {dimension_numbers = #tpu.dot_dimension_numbers<[1], [0], [0], [1], [0, 0, 1, 1], [], []>} : vector<16x32xf32>, vector<32x384xf32>, vector<16x384xf32> -> vector<16x384xf32>
      %417 = vector.extract_strided_slice %416 {offsets = [0, 0], sizes = [16, 128], strides = [1, 1]} : vector<16x384xf32> to vector<16x128xf32>
      %c0_307 = arith.constant 0 : index
      %c0_308 = arith.constant 0 : index
      %418 = vector.load %arg7[%c0_307, %c0_308] : memref<16x128xf32, #tpu.memory_space<vmem>>, vector<16x128xf32>
      %419 = arith.addf %417, %418 : vector<16x128xf32>
      %420 = math.tanh %419 : vector<16x128xf32>
      %421 = vector.extract_strided_slice %416 {offsets = [0, 128], sizes = [16, 128], strides = [1, 1]} : vector<16x384xf32> to vector<16x128xf32>
      %422 = vector.extract_strided_slice %416 {offsets = [0, 256], sizes = [16, 128], strides = [1, 1]} : vector<16x384xf32> to vector<16x128xf32>
      %423 = tpu.concatenate %421, %422 in 0 : vector<16x128xf32>, vector<16x128xf32> -> vector<32x128xf32>
      %c0_309 = arith.constant 0 : index
      %c0_310 = arith.constant 0 : index
      %424 = vector.load %arg9[%c0_309, %c0_310] : memref<32x32xf32, #tpu.memory_space<vmem>>, vector<32x32xf32>
      %cst_311 = arith.constant dense<0.000000e+00> : vector<32x128xf32>
      %425 = tpu.matmul %424, %423, %cst_311 {dimension_numbers = #tpu.dot_dimension_numbers<[1], [0], [0], [1], [0, 0, 1, 1], [], []>} : vector<32x32xf32>, vector<32x128xf32>, vector<32x128xf32> -> vector<32x128xf32>
      %c0_312 = arith.constant 0 : index
      %c0_313 = arith.constant 0 : index
      %426 = vector.load %arg8[%c0_312, %c0_313] : memref<32x128xf32, #tpu.memory_space<vmem>>, vector<32x128xf32>
      %427 = arith.addf %425, %426 : vector<32x128xf32>
      %c0_314 = arith.constant 0 : index
      %c0_315 = arith.constant 0 : index
      %428 = vector.load %arg10[%c0_314, %c0_315] : memref<16x32xf32, #tpu.memory_space<vmem>>, vector<16x32xf32>
      %429 = math.tanh %427 : vector<32x128xf32>
      %cst_316 = arith.constant dense<0.000000e+00> : vector<16x128xf32>
      %430 = tpu.matmul %428, %429, %cst_316 {dimension_numbers = #tpu.dot_dimension_numbers<[1], [0], [0], [1], [0, 0, 1, 1], [], []>} : vector<16x32xf32>, vector<32x128xf32>, vector<16x128xf32> -> vector<16x128xf32>
      %431 = tpu.concatenate %420, %430 in 1 : vector<16x128xf32>, vector<16x128xf32> -> vector<16x256xf32>
      %c0_317 = arith.constant 0 : index
      %c0_318 = arith.constant 0 : index
      %432 = vector.load %arg11[%c0_317, %c0_318] : memref<256x32xf32, #tpu.memory_space<vmem>>, vector<256x32xf32>
      %cst_319 = arith.constant dense<0.000000e+00> : vector<16x32xf32>
      %433 = tpu.matmul %431, %432, %cst_319 {dimension_numbers = #tpu.dot_dimension_numbers<[1], [0], [0], [1], [0, 0, 1, 1], [], []>} : vector<16x256xf32>, vector<256x32xf32>, vector<16x32xf32> -> vector<16x32xf32>
      %c0_320 = arith.constant 0 : index
      %c0_321 = arith.constant 0 : index
      %434 = vector.load %arg12[%c0_320, %c0_321] : memref<16x32xf32, #tpu.memory_space<vmem>>, vector<16x32xf32>
      %435 = arith.addf %433, %434 : vector<16x32xf32>
      %cst_322 = arith.constant 6.000000e+00 : f32
      %436 = arith.divf %22, %cst_322 : f32
      %cst_323 = arith.constant 2.000000e+00 : f32
      %437 = vector.broadcast %cst_323 : f32 to vector<16x32xf32>
      %438 = arith.mulf %437, %386 : vector<16x32xf32>
      %439 = arith.addf %361, %438 : vector<16x32xf32>
      %cst_324 = arith.constant 2.000000e+00 : f32
      %440 = vector.broadcast %cst_324 : f32 to vector<16x32xf32>
      %441 = arith.mulf %440, %411 : vector<16x32xf32>
      %442 = arith.addf %439, %441 : vector<16x32xf32>
      %443 = arith.addf %442, %435 : vector<16x32xf32>
      %444 = vector.broadcast %436 : f32 to vector<16x32xf32>
      %445 = arith.mulf %444, %443 : vector<16x32xf32>
      %446 = arith.addf %340, %445 : vector<16x32xf32>
      %447 = arith.index_cast %arg14 : i32 to index
      %c0_325 = arith.constant 0 : index
      %c0_326 = arith.constant 0 : index
      %448 = vector.load %arg13[%447, %c0_325, %c0_326] : memref<8x16x32xf32, #tpu.memory_space<vmem>>, vector<1x16x32xf32>
      %449 = vector.shape_cast %448 : vector<1x16x32xf32> to vector<16x32xf32>
      %450 = vector.shape_cast %446 : vector<16x32xf32> to vector<1x16x32xf32>
      tpu.vector_store %arg13[%447, %c0_325, %c0_326], %450 {strides = array<i32>} : memref<8x16x32xf32, #tpu.memory_space<vmem>>, vector<1x16x32xf32>,
      scf.yield %446 : vector<16x32xf32>
    }
    %c7_i32_14 = arith.constant 7 : i32
    return
  }
}

</mosaic_0001>

<bundles_post_ra>
// kernel: ndcn_forward.1
= control target key start
LH: loop header
LB: loop body
LE: loop exit
PB: predicated region body
PF: predicated region fallthrough
CT: control target
= control target key end

     0   :  { %18 = vsyncpa [#allocation3], 0  ;;  %s11543_s0 = inlined_call_operand.vmem [shape: f32[7], index: 0, kind: input, shape index: {}]   ;;  %s11544_s1 = inlined_call_operand.vmem [shape: f32[16,1], index: 1, kind: input, shape index: {}]   ;;  %s11545_s2 = inlined_call_operand.vmem [shape: f32[1,32], index: 2, kind: input, shape index: {}]   ;;  %s11546_s3 = inlined_call_operand.vmem [shape: f32[1,32], index: 3, kind: input, shape index: {}]   ;;  %s11547_s4 = inlined_call_operand.vmem [shape: f32[32,32], index: 4, kind: input, shape index: {}]   ;;  %s11548_s5 = inlined_call_operand.vmem [shape: f32[1,32], index: 5, kind: input, shape index: {}]   ;;  %s11549_s6 = inlined_call_operand.vmem [shape: f32[32,384], index: 6, kind: input, shape index: {}]   ;;  %s11550_s7 = inlined_call_operand.vmem [shape: f32[16,128], index: 7, kind: input, shape index: {}]   ;;  %s11551_s8 = inlined_call_operand.vmem [shape: f32[32,128], index: 8, kind: input, shape index: {}]   ;;  %s11552_s9 = inlined_call_operand.vmem [shape: f32[32,32], index: 9, kind: input, shape index: {}]   ;;  %s11553_s10 = inlined_call_operand.vmem [shape: f32[16,32], index: 10, kind: input, shape index: {}]   ;;  %s11554_s11 = inlined_call_operand.vmem [shape: f32[256,32], index: 11, kind: input, shape index: {}]   ;;  %s11555_s12 = inlined_call_operand.vmem [shape: f32[16,32], index: 12, kind: input, shape index: {}]   ;;  %s11556_s13 = inlined_call_operand.vmem [shape: f32[8,16,32], index: 13, kind: output, shape index: {}]  }
   0x1   :  { %s25_s27 = sshll.u32 %s11543_s0, 4  ;;  %s26_s27 = int_to_ptr.vmem [resolvable:$true] %s25_s27 }
   0x2   :  { %s8906_s28 = scalar_lea.vmem %s26_s27, 16  ;;  %p8911_p1 = scmp.lt.s32.totalorder %s26_s27, %s26_s27 }
   0x3   :  { %p8907_p0 = scmp.ne.s32.totalorder %s26_s27, %s8906_s28  ;;  %p8912_p2 = scmp.lt.s32.totalorder %s8906_s28, %s8906_s28 }
   0x5   :  { %p8913_p3 = por %p8912_p2, %p8911_p1 }
   0x7   :  { %p8914_p4 = pnand %p8913_p3, %p8907_p0 }
   0x9   :  { %8917 = shalt.err (!%p8914_p4)
}
   0xa   :  { %s8944_s29 = smov [#allocation2]  }
   0xb   :  { %28 = dma.vmem_to_smem %s26_s27, 16, %s8944_s29, [#allocation3]  }
   0xc   :  { %8930 = dma.done.wait [#allocation3], 16  }
   0xd   :  { %8931 = vsyncadd [#allocation3], 4294967280 }
   0xe   :  { %56 = sfence }
   0xf   :  { %v57_v0 = vld [vmem:[%s11544_s1] sm:$0xff]  ;;  %v8945_v1 = vmov 0   ;;  %v58_v2 = vld [vmem:[%s11544_s1 + $0x8] sm:$0xff]  ;;  %v92_v3 = vld [vmem:[%s11547_s4 + $0x18] sm:$0xff]  ;;  %vm100_vm0 = vcmask 261120   ;;  %s9061_s30 = smov 1  }
  0x10   :  { %8535 = vset.pattern.permute.xlu0 %v8945_v1  ;;  %v91_v4 = vld [vmem:[%s11547_s4 + $0x10] sm:$0xff]  ;;  %7921 = vmatprep.subr.mxu0 %v92_v3  ;;  %v90_v5 = vld [vmem:[%s11547_s4 + $0x8] sm:$0xff]  ;;  %v89_v6 = vld [vmem:[%s11547_s4] sm:$0xff] }
  0x11   :  { %62 = vperm.xlu0 %8535, %v57_v0   ;;  %7922 = vmatpush3.msra.mxu0 %v92_v3  ;;  %v6820_v7 = vld [vmem:[%s11545_s2] ss:$0 sm:$0xff] }
  0x12   :  { %7923 = vmatprep.subr.mxu0 %v91_v4  ;;  %v6821_v8 = vld [vmem:[%s11546_s3] ss:$0 sm:$0xff] }
  0x13   :  { %7924 = vmatpush3.msra.mxu0 %v91_v4  ;;  %v6822_v17 = vld [vmem:[%s11548_s5] ss:$0 sm:$0xff] }
  0x14   :  { %7925 = vmatprep.subr.mxu0 %v90_v5 }
  0x15   :  { %67 = vperm.xlu0 %8535, %v58_v2   ;;  %7926 = vmatpush3.msra.mxu0 %v90_v5 }
  0x16   :  { %7927 = vmatprep.subr.mxu0 %v89_v6 }
  0x17   :  { %7928 = vmatpush3.msra.mxu0 %v89_v6 }
  0x8c   :  { %v63_v9 = vpop.permute.xlu0 %62 }
  0x8d   :  { %v76_v10 = vmul.f32 %v6820_v7, %v63_v9 }
  0x8f   :  { %v85_v11 = vadd.f32 %v6821_v8, %v76_v10 }
  0x90   :  { %v68_v12 = vpop.permute.xlu0 %67 }
  0x91   :  { %8536 = vtanh.f32 %v85_v11  ;;  %v77_v13 = vmul.f32 %v6820_v7, %v68_v12 }
  0x93   :  { %v86_v14 = vadd.f32 %v6821_v8, %v77_v13 }
  0x95   :  { %8538 = vtanh.f32 %v86_v14 }
  0x9e   :  { %v8537_v15 = vpop.eup %8536 }
  0x9f   :  { %7929 = vmatprep.mubr.msk.f32.mxu0 %vm100_vm0, %v8537_v15 }
  0xa2   :  { %v8539_v16 = vpop.eup %8538 }
  0xa3   :  { %7930 = vmatmul.mubr.msk.f32.vlgmr.msra.gmra.mxu0 %vm100_vm0, %v8539_v16 }
 0x163   :  { %v7931_v18 = vpop.f32.mrf.mxu0 }
 0x164   :  { %v179_v19 = vadd.f32 %v7931_v18, %v6822_v17  }
 0x165   :  { %v173_v20 = vpop.f32.mrf.mxu0 }
 0x166   :  { %183 = vst.msk [vmem:[%s11556_s13 + $0x8] sm:$0xff] %vm100_vm0, %v179_v19  ;;  %v174_v21 = vadd.f32 %v6822_v17, %v173_v20  }
 0x168   :  { %182 = vst.msk [vmem:[%s11556_s13] sm:$0xff] %vm100_vm0, %v174_v21 }
 0x169 LB: > { %v9075_v22 = vld [vmem:[%s11549_s6 + $0x50] sm:$0xff]  ;;  %v9080_v23 = vld [vmem:[%s11549_s6 + $0x48] sm:$0xff]  ;;  %v9085_v24 = vld [vmem:[%s11549_s6 + $0x38] sm:$0xff]  ;;  %v11557_v26 = vmov 0.0   ;;  %s6825_s0 = sadd.s32 4294967295, %s8942_s30  ;;  %s6986_s18 = sshll.u32 %s8942_s30, 4  ;;  %s8942_s30 = sphi %s9061_s30, %s189_s30   ;;  %v8938_v21 = vphi %v174_v21, %v6796_v21   ;;  %v8934_v19 = vphi %v179_v19, %v6797_v19  }
 0x16a   : > { %237 = vmatprep.subr.mxu1 %v9075_v22  ;;  %v9091_v25 = vld [vmem:[%s11549_s6 + $0x30] sm:$0xff]  ;;  %277 = vmatprep.mubr.f32.mxu1 %v11557_v26  ;;  %v9098_v27 = vld [vmem:[%s11549_s6 + $0x20] sm:$0xff]  ;;  %v9104_v28 = vld [vmem:[%s11549_s6 + $0x18] sm:$0xff]  ;;  %s193_s15 = sld [smem:[#allocation2 + %s6825_s0]]  ;;  %s6799_s1 = scalar_lea.vmem %s11556_s13, %s6986_s18 }
 0x16b   : > { %238 = vmatpush1.msra.mxu1 %v9080_v23  ;;  %v9110_v29 = vld [vmem:[%s11549_s6 + $0x8] sm:$0xff]  ;;  %v9116_v30 = vld [vmem:[%s11549_s6] sm:$0xff]  ;;  %v9122_v31 = vld [vmem:[%s11549_s6 + $0x58] sm:$0xff]  ;;  %s189_s30 = sadd.s32 1, %s8942_s30  }
 0x16c   : > { %239 = vmatprep.subr.mxu1 %v9085_v24  ;;  %11669 = vst [vmem:[#allocation5_spill] sm:$0xff] %v9110_v29  ;;  %11670 = vst [vmem:[#allocation6_spill] sm:$0xff] %v9116_v30  ;;  %v9129_v32 = vld [vmem:[%s11549_s6 + $0x40] sm:$0xff]  ;;  %v9139_v33 = vld [vmem:[%s11549_s6 + $0x28] sm:$0xff]  ;;  %p186_p5 = scmp.ge.s32.totalorder %s189_s30, 8  }
 0x16d   : > { %240 = vmatpush1.msra.mxu1 %v9091_v25  ;;  %11671 = vst [vmem:[#allocation7_spill] sm:$0xff] %v9139_v33  ;;  %v9146_v34 = vld [vmem:[%s11549_s6 + $0x10] sm:$0xff]  ;;  %v9161_v35 = vld [vmem:[%s11552_s9] sm:$0xff]  ;;  %v9172_v42 = vld [vmem:[%s11552_s9 + $0x8] sm:$0xff] }
 0x16e   : > { %241 = vmatprep.subr.mxu1 %v9098_v27  ;;  %11672 = vst [vmem:[#allocation8_spill] sm:$0xff] %v9146_v34  ;;  %11673 = vst [vmem:[#allocation9_spill] sm:$0xff] %v9161_v35  ;;  %v9177_v43 = vld [vmem:[%s11552_s9 + $0x10] sm:$0xff]  ;;  %v9186_v44 = vld [vmem:[%s11552_s9 + $0x18] sm:$0xff] }
 0x16f   : > { %242 = vmatpush1.msra.mxu1 %v9104_v28  ;;  %11674 = vst [vmem:[#allocation10_spill] sm:$0xff] %v9172_v42  ;;  %11675 = vst [vmem:[#allocation11_spill] sm:$0xff] %v9177_v43  ;;  %v9193_v45 = vld [vmem:[%s11553_s10] sm:$0xff]  ;;  %v9200_v46 = vld [vmem:[%s11554_s11 + $0xf8] sm:$0xff] }
 0x170   : > { %243 = vmatprep.subr.mxu1 %v9110_v29  ;;  %11676 = vst [vmem:[#allocation12_spill] sm:$0xff] %v9186_v44  ;;  %11677 = vst [vmem:[#allocation13_spill] sm:$0xff] %v9193_v45  ;;  %v9205_v47 = vld [vmem:[%s11554_s11 + $0x78] sm:$0xff]  ;;  %v9210_v48 = vld [vmem:[%s11554_s11 + $0xf0] sm:$0xff]  ;;  %7013 = vmatprep.subr.mxu0 %v9200_v46  ;;  %s9478_s16 = smul.f32 0.25, %s193_s15 }
 0x171   : > { %244 = vmatpush1.msra.mxu1 %v9116_v30  ;;  %11678 = vst [vmem:[#allocation14_spill] sm:$0xff] %v9200_v46  ;;  %v9216_v49 = vld [vmem:[%s11554_s11 + $0x70] sm:$0xff]  ;;  %7014 = vmatpush3.msra.mxu0 %v9205_v47  ;;  %v9222_v50 = vld [vmem:[%s11554_s11 + $0xe8] sm:$0xff]  ;;  %v9234_v52 = vld [vmem:[%s11554_s11 + $0xe0] sm:$0xff] }
 0x172   : > { %6826 = vmatmul.mubr.msk.f32.vlgmr.msra.gmra.mxu1 %vm100_vm0, %v8938_v21  ;;  %7932 = vmatprep.subr.mxu1 %v9122_v31  ;;  %v9228_v51 = vld [vmem:[%s11554_s11 + $0x68] sm:$0xff]  ;;  %v9240_v53 = vld [vmem:[%s11554_s11 + $0x60] sm:$0xff]  ;;  %v9246_v54 = vld [vmem:[%s11554_s11 + $0xd8] sm:$0xff]  ;;  %s672_s17 = smul.f32 0.5, %s9478_s16 }
 0x173   : > { %7933 = vmatpush3.msra.mxu1 %v9122_v31  ;;  %283 = vmatprep.mubr.f32.mxu1 %v11557_v26  ;;  %v9252_v55 = vld [vmem:[%s11554_s11 + $0x58] sm:$0xff]  ;;  %v9258_v56 = vld [vmem:[%s11554_s11 + $0xd0] sm:$0xff]  ;;  %v9270_v58 = vld [vmem:[%s11554_s11 + $0xc8] sm:$0xff]  ;;  %s1892_s21 = smul.f32 0.16666667, %s9478_s16 }
 0x174   : > { %7934 = vmatprep.subr.mxu1 %v9129_v32  ;;  %7015 = vmatprep.subr.mxu0 %v9210_v48  ;;  %v9264_v57 = vld [vmem:[%s11554_s11 + $0x50] sm:$0xff]  ;;  %v9276_v59 = vld [vmem:[%s11554_s11 + $0x48] sm:$0xff]  ;;  %v9282_v60 = vld [vmem:[%s11554_s11 + $0xc0] sm:$0xff] }
 0x175   : > { %7935 = vmatpush3.msra.mxu1 %v9129_v32  ;;  %7016 = vmatpush3.msra.mxu0 %v9216_v49  ;;  %v9288_v61 = vld [vmem:[%s11554_s11 + $0x40] sm:$0xff]  ;;  %v9294_v62 = vld [vmem:[%s11554_s11 + $0xb8] sm:$0xff]  ;;  %v9306_v0 = vld [vmem:[%s11554_s11 + $0xb0] sm:$0xff] }
 0x176   : > { %6827 = vmatmul.mubr.msk.f32.gmra.mxu1 %vm100_vm0, %v8934_v19  ;;  %7936 = vmatprep.subr.mxu1 %v9139_v33  ;;  %v9300_v63 = vld [vmem:[%s11554_s11 + $0x38] sm:$0xff]  ;;  %v9312_v1 = vld [vmem:[%s11554_s11 + $0x30] sm:$0xff]  ;;  %v9318_v2 = vld [vmem:[%s11554_s11 + $0xa8] sm:$0xff] }
 0x177   : > { %7937 = vmatpush3.msra.mxu1 %v9139_v33  ;;  %7940 = vmatprep.mubr.msk.f32.mxu1 %vm100_vm0, %v8938_v21  ;;  %v9324_v3 = vld [vmem:[%s11554_s11 + $0x28] sm:$0xff]  ;;  %v9330_v4 = vld [vmem:[%s11554_s11 + $0xa0] sm:$0xff]  ;;  %v9342_v6 = vld [vmem:[%s11554_s11 + $0x98] sm:$0xff] }
 0x178   : > { %7938 = vmatprep.subr.mxu1 %v9146_v34  ;;  %7017 = vmatprep.subr.mxu0 %v9222_v50  ;;  %v9336_v5 = vld [vmem:[%s11554_s11 + $0x20] sm:$0xff]  ;;  %v9348_v7 = vld [vmem:[%s11554_s11 + $0x18] sm:$0xff]  ;;  %v9354_v8 = vld [vmem:[%s11554_s11 + $0x90] sm:$0xff] }
 0x179   : > { %7939 = vmatpush3.msra.mxu1 %v9146_v34  ;;  %7018 = vmatpush3.msra.mxu0 %v9228_v51  ;;  %v9360_v9 = vld [vmem:[%s11554_s11 + $0x10] sm:$0xff]  ;;  %v9368_v12 = vld [vmem:[%s11551_s8 + $0x18] sm:$0xff]  ;;  %v9373_v13 = vld [vmem:[%s11551_s8 + $0x8] sm:$0xff] }
 0x17a   : > { %7941 = vmatmul.mubr.msk.f32.vlgmr.msra.gmra.mxu1 %vm100_vm0, %v8934_v19  ;;  %7019 = vmatprep.subr.mxu0 %v9234_v52  ;;  %11679 = vst [vmem:[#allocation15_spill] sm:$0xff] %v9360_v9  ;;  %v9378_v15 = vld [vmem:[%s11551_s8 + $0x10] sm:$0xff]  ;;  %v9384_v17 = vld [vmem:[%s11551_s8] sm:$0xff] }
 0x17b   : > { %7951 = vmatprep.mubr.msk.f32.mxu1 %vm100_vm0, %v9161_v35  ;;  %7020 = vmatpush3.msra.mxu0 %v9240_v53 }
 0x17c   : > { %7021 = vmatprep.subr.mxu0 %v9246_v54 }
 0x17d   : > { %7022 = vmatpush3.msra.mxu0 %v9252_v55 }
 0x17e   : > { %7023 = vmatprep.subr.mxu0 %v9258_v56 }
 0x17f   : > { %7024 = vmatpush3.msra.mxu0 %v9264_v57 }
 0x180   : > { %7025 = vmatprep.subr.mxu0 %v9270_v58 }
 0x181   : > { %7026 = vmatpush3.msra.mxu0 %v9276_v59 }
 0x182   : > { %7027 = vmatprep.subr.mxu0 %v9282_v60 }
 0x183   : > { %7028 = vmatpush3.msra.mxu0 %v9288_v61 }
 0x184   : > { %7029 = vmatprep.subr.mxu0 %v9294_v62 }
 0x185   : > { %7030 = vmatpush3.msra.mxu0 %v9300_v63 }
 0x186   : > { %7031 = vmatprep.subr.mxu0 %v9306_v0 }
 0x187   : > { %7032 = vmatpush3.msra.mxu0 %v9312_v1 }
 0x188   : > { %7033 = vmatprep.subr.mxu0 %v9318_v2 }
 0x189   : > { %7034 = vmatpush3.msra.mxu0 %v9324_v3 }
 0x18a   : > { %7035 = vmatprep.subr.mxu0 %v9330_v4 }
 0x18b   : > { %7036 = vmatpush3.msra.mxu0 %v9336_v5 }
 0x18c   : > { %7037 = vmatprep.subr.mxu0 %v9342_v6 }
 0x18d   : > { %7038 = vmatpush3.msra.mxu0 %v9348_v7 }
 0x18e   : > { %7039 = vmatprep.subr.mxu0 %v9354_v8 }
 0x18f   : > { %7040 = vmatpush3.msra.mxu0 %v9360_v9 }
 0x232   : > { %v9165_v36 = vpop.f32.mrf.mxu1 }
 0x234   : > { %v281_v37 = vpop.f32.mrf.mxu1 }
 0x236   : > { %v9167_v38 = vpop.f32.mrf.mxu1 }
 0x238   : > { %v287_v39 = vpop.f32.mrf.mxu1 }
 0x23a   : > { %v7942_v40 = vpop.f32.mrf.mxu1 }
 0x23b   : > { %7943 = vmatprep.subr.mxu1 %v7942_v40 }
 0x23c   : > { %v356_v41 = vpop.f32.mrf.mxu1  ;;  %7944 = vmatpush3.msra.mxu1 %v7942_v40 }
 0x23d   : > { %7945 = vmatprep.subr.mxu1 %v356_v41 }
 0x23e   : > { %7946 = vmatpush3.msra.mxu1 %v356_v41 }
 0x23f   : > { %7947 = vmatprep.subr.mxu1 %v287_v39 }
 0x240   : > { %7948 = vmatpush3.msra.mxu1 %v287_v39 }
 0x241   : > { %7949 = vmatprep.subr.mxu1 %v281_v37 }
 0x242   : > { %7950 = vmatpush3.msra.mxu1 %v281_v37 }
 0x243   : > { %7952 = vmatmul.mubr.msk.f32.vlgmr.msra.gmra.mxu1 %vm100_vm0, %v9172_v42 }
 0x244   : > { %7954 = vmatprep.mubr.msk.f32.mxu1 %vm100_vm0, %v9177_v43 }
 0x247   : > { %7955 = vmatmul.mubr.msk.f32.gmra.mxu1 %vm100_vm0, %v9186_v44 }
 0x248   : > { %7965 = vmatprep.mubr.msk.f32.mxu1 %vm100_vm0, %v9193_v45 }
 0x303   : > { %v7953_v10 = vpop.f32.mrf.mxu1 }
 0x304   : > { %v463_v20 = vadd.f32 %v7953_v10, %v9373_v13  ;;  %v9392_v10 = vld [vmem:[%s11553_s10 + $0x8] sm:$0xff] }
 0x305   : > { %v457_v11 = vpop.f32.mrf.mxu1 }
 0x306   : > { %v458_v39 = vadd.f32 %v457_v11, %v9384_v17  ;;  %v11680_v11 = vmov 0.0  }
 0x307   : > { %v7956_v14 = vpop.f32.mrf.mxu1 }
 0x308   : > { %v473_v16 = vadd.f32 %v7956_v14, %v9368_v12 }
 0x309   : > { %v467_v18 = vpop.f32.mrf.mxu1 }
 0x30a   : > { %8540 = vtanh.f32 %v473_v16  ;;  %v468_v37 = vadd.f32 %v467_v18, %v9378_v15  ;;  %v9415_v16 = vld [vmem:[%s11554_s11 + $0x8] sm:$0xff]  ;;  %v9421_v18 = vld [vmem:[%s11554_s11 + $0x80] sm:$0xff] }
 0x30b   : > { %11682 = vst [vmem:[#allocation17_spill] sm:$0xff] %v9415_v16  ;;  %11683 = vst [vmem:[#allocation18_spill] sm:$0xff] %v9421_v18 }
 0x30c   : > { %8542 = vtanh.f32 %v468_v37  ;;  %v9434_v37 = vld [vmem:[%s11550_s7] sm:$0xff] }
 0x30d   : > { %8544 = vtanh.f32 %v463_v20  ;;  %v9427_v20 = vld [vmem:[%s11554_s11] sm:$0xff] }
 0x30e   : > { %8546 = vtanh.f32 %v458_v39  ;;  %11684 = vst [vmem:[#allocation19_spill] sm:$0xff] %v9427_v20  ;;  %v367_v39 = vadd.f32 %v9434_v37, %v9165_v36 }
 0x310   : > { %8548 = vtanh.f32 %v367_v39 }
 0x317   : > { %v8541_v40 = vpop.eup %8540 }
 0x318   : > { %7957 = vmatprep.subr.mxu1 %v8541_v40 }
 0x319   : > { %v8543_v41 = vpop.eup %8542  ;;  %7958 = vmatpush3.msra.mxu1 %v8541_v40  ;;  %v9441_v40 = vld [vmem:[%s11550_s7 + $0x8] sm:$0xff] }
 0x31a   : > { %7959 = vmatprep.subr.mxu1 %v8543_v41  ;;  %v8545_v14 = vpop.eup %8544 }
 0x31b   : > { %7960 = vmatpush3.msra.mxu1 %v8543_v41  ;;  %v8547_v26 = vpop.eup %8546  ;;  %v368_v41 = vadd.f32 %v9441_v40, %v9167_v38 }
 0x31c   : > { %7961 = vmatprep.subr.mxu1 %v8545_v14 }
 0x31d   : > { %7962 = vmatpush3.msra.mxu1 %v8545_v14  ;;  %8550 = vtanh.f32 %v368_v41  ;;  %v9486_v41 = vstv %s672_s17 }
 0x31e   : > { %7963 = vmatprep.subr.mxu1 %v8547_v26  ;;  %11685 = vst [vmem:[#allocation20_spill] sm:$0xff] %v9486_v41 }
 0x31f   : > { %7964 = vmatpush3.msra.mxu1 %v8547_v26  ;;  %v9409_v26 = vld [vmem:[%s11554_s11 + $0x88] sm:$0xff] }
 0x320   : > { %7966 = vmatmul.mubr.msk.f32.vlgmr.msra.gmra.mxu1 %vm100_vm0, %v9392_v10  ;;  %708 = vmatprep.subr.mxu1 %v9075_v22  ;;  %11681 = vst [vmem:[#allocation16_spill] sm:$0xff] %v9409_v26 }
 0x321   : > { %709 = vmatpush1.msra.mxu1 %v9080_v23  ;;  %748 = vmatprep.mubr.f32.mxu1 %v11680_v11 }
 0x322   : > { %710 = vmatprep.subr.mxu1 %v9085_v24  ;;  %7041 = vmatprep.subr.mxu0 %v9409_v26 }
 0x323   : > { %711 = vmatpush1.msra.mxu1 %v9091_v25  ;;  %7042 = vmatpush3.msra.mxu0 %v9415_v16 }
 0x324   : > { %712 = vmatprep.subr.mxu1 %v9098_v27  ;;  %7043 = vmatprep.subr.mxu0 %v9421_v18 }
 0x325   : > { %713 = vmatpush1.msra.mxu1 %v9104_v28  ;;  %7044 = vmatpush3.msra.mxu0 %v9427_v20 }
 0x326   : > { %714 = vmatprep.subr.mxu1 %v9110_v29  ;;  %7071 = vmatprep.subr.mxu0 %v9200_v46  ;;  %v8549_v29 = vpop.eup %8548 }
 0x327   : > { %715 = vmatpush1.msra.mxu1 %v9116_v30 }
 0x328   : > { %7968 = vmatprep.subr.mxu1 %v9122_v31 }
 0x32a   : > { %v8551_v36 = vpop.eup %8550 }
 0x3e0   : > { %v7967_v14 = vpop.f32.mrf.mxu1 }
 0x3e2   : > { %v554_v30 = vpop.f32.mrf.mxu1 }
 0x3e3   : > { %661 = vmatprep.mubr.f32.mxu0 %v554_v30  ;;  %v9484_v30 = vld [vmem:[%s11555_s12] sm:$0xff] }
 0x3e4   : > { %662 = vmatmul.mubr.f32.vlgmr.msra.gmra.mxu0 %v8549_v29 }
 0x3e5   : > { %666 = vmatprep.mubr.f32.mxu0 %v7967_v14  ;;  %7072 = vmatpush3.msra.mxu0 %v9205_v47 }
 0x3e6   : > { %7073 = vmatprep.subr.mxu0 %v9210_v48 }
 0x3e7   : > { %7074 = vmatpush3.msra.mxu0 %v9216_v49 }
 0x3e8   : > { %667 = vmatmul.mubr.f32.gmra.mxu0 %v8551_v36  ;;  %7075 = vmatprep.subr.mxu0 %v9222_v50 }
 0x3e9   : > { %7076 = vmatpush3.msra.mxu0 %v9228_v51 }
 0x3ea   : > { %7077 = vmatprep.subr.mxu0 %v9234_v52 }
 0x3eb   : > { %7078 = vmatpush3.msra.mxu0 %v9240_v53 }
 0x3ec   : > { %7079 = vmatprep.subr.mxu0 %v9246_v54 }
 0x3ed   : > { %7080 = vmatpush3.msra.mxu0 %v9252_v55 }
 0x3ee   : > { %7081 = vmatprep.subr.mxu0 %v9258_v56 }
 0x3ef   : > { %7082 = vmatpush3.msra.mxu0 %v9264_v57 }
 0x3f0   : > { %7083 = vmatprep.subr.mxu0 %v9270_v58 }
 0x3f1   : > { %7084 = vmatpush3.msra.mxu0 %v9276_v59 }
 0x3f2   : > { %7085 = vmatprep.subr.mxu0 %v9282_v60 }
 0x3f3   : > { %7086 = vmatpush3.msra.mxu0 %v9288_v61 }
 0x3f4   : > { %7087 = vmatprep.subr.mxu0 %v9294_v62 }
 0x3f5   : > { %7088 = vmatpush3.msra.mxu0 %v9300_v63 }
 0x3f6   : > { %7089 = vmatprep.subr.mxu0 %v9306_v0 }
 0x3f7   : > { %7090 = vmatpush3.msra.mxu0 %v9312_v1 }
 0x3f8   : > { %7091 = vmatprep.subr.mxu0 %v9318_v2 }
 0x3f9   : > { %7092 = vmatpush3.msra.mxu0 %v9324_v3 }
 0x3fa   : > { %7093 = vmatprep.subr.mxu0 %v9330_v4 }
 0x3fb   : > { %7094 = vmatpush3.msra.mxu0 %v9336_v5 }
 0x3fc   : > { %7095 = vmatprep.subr.mxu0 %v9342_v6 }
 0x3fd   : > { %7096 = vmatpush3.msra.mxu0 %v9348_v7 }
 0x3fe   : > { %7097 = vmatprep.subr.mxu0 %v9354_v8 }
 0x3ff   : > { %7098 = vmatpush3.msra.mxu0 %v9360_v9 }
 0x400   : > { %7099 = vmatprep.subr.mxu0 %v9409_v26 }
 0x401   : > { %7100 = vmatpush3.msra.mxu0 %v9415_v16 }
 0x402   : > { %7101 = vmatprep.subr.mxu0 %v9421_v18 }
 0x403   : > { %7102 = vmatpush3.msra.mxu0 %v9427_v20 }
 0x404   : > { %7129 = vmatprep.subr.mxu0 %v9200_v46  ;;  %v9494_v46 = vld [vmem:[%s11555_s12 + $0x8] sm:$0xff] }
 0x4a4   : > { %v7045_v29 = vpop.f32.mrf.mxu0 }
 0x4a6   : > { %v7046_v38 = vpop.f32.mrf.mxu0 }
 0x4a7   : > { %v7047_v39 = vadd.f32 %v7046_v38, %v7045_v29 }
 0x4a8   : > { %v7048_v14 = vpop.f32.mrf.mxu0 }
 0x4a9   : > { %v9489_v36 = vadd.f32 %v7047_v39, %v9484_v30 }
 0x4aa   : > { %v7049_v20 = vpop.f32.mrf.mxu0 }
 0x4ab   : > { %11686 = vst [vmem:[#allocation21_spill] sm:$0xff] %v9489_v36  ;;  %v674_v18 = vmul.f32 %v9486_v41, %v9489_v36  ;;  %v7050_v16 = vadd.f32 %v7049_v20, %v7048_v14 }
 0x4ad   : > { %v676_v26 = vadd.f32 %v8938_v21, %v674_v18  ;;  %v9500_v29 = vadd.f32 %v7050_v16, %v9494_v46 }
 0x4af   : > { %11687 = vst [vmem:[#allocation22_spill] sm:$0xff] %v9500_v29  ;;  %v675_v38 = vmul.f32 %v9486_v41, %v9500_v29  ;;  %6836 = vmatmul.mubr.msk.f32.vlgmr.msra.gmra.mxu1 %vm100_vm0, %v676_v26 }
 0x4b0   : > { %7969 = vmatpush3.msra.mxu1 %v9122_v31  ;;  %754 = vmatprep.mubr.f32.mxu1 %v11680_v11 }
 0x4b1   : > { %7970 = vmatprep.subr.mxu1 %v9129_v32  ;;  %v677_v39 = vadd.f32 %v8934_v19, %v675_v38 }
 0x4b2   : > { %7971 = vmatpush3.msra.mxu1 %v9129_v32 }
 0x4b3   : > { %6837 = vmatmul.mubr.msk.f32.gmra.mxu1 %vm100_vm0, %v677_v39  ;;  %7972 = vmatprep.subr.mxu1 %v9139_v33 }
 0x4b4   : > { %7973 = vmatpush3.msra.mxu1 %v9139_v33  ;;  %7976 = vmatprep.mubr.msk.f32.mxu1 %vm100_vm0, %v676_v26 }
 0x4b5   : > { %7974 = vmatprep.subr.mxu1 %v9146_v34 }
 0x4b6   : > { %7975 = vmatpush3.msra.mxu1 %v9146_v34 }
 0x4b7   : > { %7977 = vmatmul.mubr.msk.f32.vlgmr.msra.gmra.mxu1 %vm100_vm0, %v677_v39 }
 0x4b8   : > { %7987 = vmatprep.mubr.msk.f32.mxu1 %vm100_vm0, %v9161_v35 }
 0x56f   : > { %v750_v16 = vpop.f32.mrf.mxu1 }
 0x571   : > { %v752_v18 = vpop.f32.mrf.mxu1 }
 0x573   : > { %v756_v20 = vpop.f32.mrf.mxu1 }
 0x575   : > { %v758_v14 = vpop.f32.mrf.mxu1 }
 0x577   : > { %v7978_v38 = vpop.f32.mrf.mxu1 }
 0x578   : > { %7979 = vmatprep.subr.mxu1 %v7978_v38 }
 0x579   : > { %v827_v29 = vpop.f32.mrf.mxu1  ;;  %7980 = vmatpush3.msra.mxu1 %v7978_v38 }
 0x57a   : > { %7981 = vmatprep.subr.mxu1 %v827_v29 }
 0x57b   : > { %7982 = vmatpush3.msra.mxu1 %v827_v29 }
 0x57c   : > { %7983 = vmatprep.subr.mxu1 %v758_v14 }
 0x57d   : > { %7984 = vmatpush3.msra.mxu1 %v758_v14 }
 0x57e   : > { %7985 = vmatprep.subr.mxu1 %v752_v18 }
 0x57f   : > { %7986 = vmatpush3.msra.mxu1 %v752_v18 }
 0x580   : > { %7988 = vmatmul.mubr.msk.f32.vlgmr.msra.gmra.mxu1 %vm100_vm0, %v9172_v42 }
 0x581   : > { %7990 = vmatprep.mubr.msk.f32.mxu1 %vm100_vm0, %v9177_v43 }
 0x584   : > { %7991 = vmatmul.mubr.msk.f32.gmra.mxu1 %vm100_vm0, %v9186_v44 }
 0x585   : > { %8001 = vmatprep.mubr.msk.f32.mxu1 %vm100_vm0, %v9193_v45 }
 0x640   : > { %v7989_v26 = vpop.f32.mrf.mxu1 }
 0x641   : > { %v912_v18 = vadd.f32 %v7989_v26, %v9373_v13 }
 0x642   : > { %v906_v39 = vpop.f32.mrf.mxu1 }
 0x643   : > { %v907_v42 = vadd.f32 %v906_v39, %v9384_v17 }
 0x644   : > { %v7992_v38 = vpop.f32.mrf.mxu1 }
 0x645   : > { %v922_v29 = vadd.f32 %v7992_v38, %v9368_v12 }
 0x646   : > { %v916_v14 = vpop.f32.mrf.mxu1 }
 0x647   : > { %8552 = vtanh.f32 %v922_v29  ;;  %v917_v36 = vadd.f32 %v916_v14, %v9378_v15  ;;  %v11692_v14 = vld [vmem:[#allocation18_spill] sm:$0xff] }
 0x649   : > { %8554 = vtanh.f32 %v917_v36 }
 0x64a   : > { %8556 = vtanh.f32 %v912_v18  ;;  %v11693_v18 = vld [vmem:[#allocation19_spill] sm:$0xff] }
 0x64b   : > { %8558 = vtanh.f32 %v907_v42  ;;  %v11688_v42 = vld [vmem:[#allocation5_spill] sm:$0xff] }
 0x654   : > { %v8553_v44 = vpop.eup %8552 }
 0x655   : > { %7993 = vmatprep.subr.mxu1 %v8553_v44 }
 0x656   : > { %v8555_v43 = vpop.eup %8554  ;;  %7994 = vmatpush3.msra.mxu1 %v8553_v44  ;;  %v836_v44 = vadd.f32 %v750_v16, %v9434_v37  ;;  %v11690_v16 = vld [vmem:[#allocation16_spill] sm:$0xff] }
 0x657   : > { %7995 = vmatprep.subr.mxu1 %v8555_v43  ;;  %v8557_v45 = vpop.eup %8556 }
 0x658   : > { %7996 = vmatpush3.msra.mxu1 %v8555_v43  ;;  %v8559_v38 = vpop.eup %8558  ;;  %v11689_v43 = vld [vmem:[#allocation6_spill] sm:$0xff]  ;;  %8560 = vtanh.f32 %v836_v44 }
 0x659   : > { %7997 = vmatprep.subr.mxu1 %v8557_v45 }
 0x65a   : > { %7998 = vmatpush3.msra.mxu1 %v8557_v45  ;;  %v837_v45 = vadd.f32 %v756_v20, %v9441_v40  ;;  %v11691_v20 = vld [vmem:[#allocation17_spill] sm:$0xff] }
 0x65b   : > { %7999 = vmatprep.subr.mxu1 %v8559_v38 }
 0x65c   : > { %8000 = vmatpush3.msra.mxu1 %v8559_v38  ;;  %8562 = vtanh.f32 %v837_v45  ;;  %v11694_v38 = vld [vmem:[#allocation14_spill] sm:$0xff] }
 0x65d   : > { %8002 = vmatmul.mubr.msk.f32.vlgmr.msra.gmra.mxu1 %vm100_vm0, %v9392_v10  ;;  %1113 = vmatprep.subr.mxu1 %v9075_v22 }
 0x65e   : > { %1114 = vmatpush1.msra.mxu1 %v9080_v23  ;;  %1153 = vmatprep.mubr.f32.mxu1 %v11680_v11 }
 0x65f   : > { %1115 = vmatprep.subr.mxu1 %v9085_v24 }
 0x660   : > { %1116 = vmatpush1.msra.mxu1 %v9091_v25 }
 0x661   : > { %1117 = vmatprep.subr.mxu1 %v9098_v27 }
 0x662   : > { %1118 = vmatpush1.msra.mxu1 %v9104_v28 }
 0x663   : > { %1119 = vmatprep.subr.mxu1 %v11688_v42 }
 0x664   : > { %1120 = vmatpush1.msra.mxu1 %v11689_v43 }
 0x665   : > { %8004 = vmatprep.subr.mxu1 %v9122_v31  ;;  %v8561_v39 = vpop.eup %8560 }
 0x669   : > { %v8563_v29 = vpop.eup %8562 }
 0x71d   : > { %v8003_v36 = vpop.f32.mrf.mxu1 }
 0x71f   : > { %v995_v26 = vpop.f32.mrf.mxu1 }
 0x720   : > { %1068 = vmatprep.mubr.f32.mxu0 %v995_v26 }
 0x721   : > { %1069 = vmatmul.mubr.f32.vlgmr.msra.gmra.mxu0 %v8561_v39 }
 0x722   : > { %1073 = vmatprep.mubr.f32.mxu0 %v8003_v36  ;;  %7130 = vmatpush3.msra.mxu0 %v9205_v47 }
 0x723   : > { %7131 = vmatprep.subr.mxu0 %v9210_v48 }
 0x724   : > { %7132 = vmatpush3.msra.mxu0 %v9216_v49 }
 0x725   : > { %1074 = vmatmul.mubr.f32.gmra.mxu0 %v8563_v29  ;;  %7133 = vmatprep.subr.mxu0 %v9222_v50 }
 0x726   : > { %7134 = vmatpush3.msra.mxu0 %v9228_v51 }
 0x727   : > { %7135 = vmatprep.subr.mxu0 %v9234_v52 }
 0x728   : > { %7136 = vmatpush3.msra.mxu0 %v9240_v53 }
 0x729   : > { %7137 = vmatprep.subr.mxu0 %v9246_v54 }
 0x72a   : > { %7138 = vmatpush3.msra.mxu0 %v9252_v55 }
 0x72b   : > { %7139 = vmatprep.subr.mxu0 %v9258_v56 }
 0x72c   : > { %7140 = vmatpush3.msra.mxu0 %v9264_v57 }
 0x72d   : > { %7141 = vmatprep.subr.mxu0 %v9270_v58 }
 0x72e   : > { %7142 = vmatpush3.msra.mxu0 %v9276_v59 }
 0x72f   : > { %7143 = vmatprep.subr.mxu0 %v9282_v60 }
 0x730   : > { %7144 = vmatpush3.msra.mxu0 %v9288_v61 }
 0x731   : > { %7145 = vmatprep.subr.mxu0 %v9294_v62 }
 0x732   : > { %7146 = vmatpush3.msra.mxu0 %v9300_v63 }
 0x733   : > { %7147 = vmatprep.subr.mxu0 %v9306_v0 }
 0x734   : > { %7148 = vmatpush3.msra.mxu0 %v9312_v1 }
 0x735   : > { %7149 = vmatprep.subr.mxu0 %v9318_v2 }
 0x736   : > { %7150 = vmatpush3.msra.mxu0 %v9324_v3 }
 0x737   : > { %7151 = vmatprep.subr.mxu0 %v9330_v4 }
 0x738   : > { %7152 = vmatpush3.msra.mxu0 %v9336_v5 }
 0x739   : > { %7153 = vmatprep.subr.mxu0 %v9342_v6 }
 0x73a   : > { %7154 = vmatpush3.msra.mxu0 %v9348_v7 }
 0x73b   : > { %7155 = vmatprep.subr.mxu0 %v9354_v8 }
 0x73c   : > { %7156 = vmatpush3.msra.mxu0 %v9360_v9 }
 0x73d   : > { %7157 = vmatprep.subr.mxu0 %v11690_v16 }
 0x73e   : > { %7158 = vmatpush3.msra.mxu0 %v11691_v20 }
 0x73f   : > { %7159 = vmatprep.subr.mxu0 %v11692_v14 }
 0x740   : > { %7160 = vmatpush3.msra.mxu0 %v11693_v18 }
 0x741   : > { %7187 = vmatprep.subr.mxu0 %v11694_v38 }
 0x7e1   : > { %v7103_v44 = vpop.f32.mrf.mxu0 }
 0x7e3   : > { %v7104_v45 = vpop.f32.mrf.mxu0 }
 0x7e4   : > { %v7105_v36 = vadd.f32 %v7104_v45, %v7103_v44 }
 0x7e5   : > { %v7106_v26 = vpop.f32.mrf.mxu0 }
 0x7e6   : > { %v9578_v39 = vadd.f32 %v7105_v36, %v9484_v30 }
 0x7e7   : > { %v7107_v29 = vpop.f32.mrf.mxu0 }
 0x7e8   : > { %v1079_v9 = vmul.f32 %v9578_v39, %v9486_v41  ;;  %v7108_v16 = vadd.f32 %v7107_v29, %v7106_v26  ;;  %v11696_v29 = vld [vmem:[#allocation11_spill] sm:$0xff] }
 0x7ea   : > { %v1081_v20 = vadd.f32 %v8938_v21, %v1079_v9  ;;  %v9584_v14 = vadd.f32 %v7108_v16, %v9494_v46 }
 0x7ec   : > { %v1080_v38 = vmul.f32 %v9584_v14, %v9486_v41  ;;  %6846 = vmatmul.mubr.msk.f32.vlgmr.msra.gmra.mxu1 %vm100_vm0, %v1081_v20  ;;  %v11698_v41 = vld [vmem:[#allocation13_spill] sm:$0xff] }
 0x7ed   : > { %8005 = vmatpush3.msra.mxu1 %v9122_v31  ;;  %1159 = vmatprep.mubr.f32.mxu1 %v11680_v11 }
 0x7ee   : > { %8006 = vmatprep.subr.mxu1 %v9129_v32  ;;  %v1082_v44 = vadd.f32 %v8934_v19, %v1080_v38 }
 0x7ef   : > { %8007 = vmatpush3.msra.mxu1 %v9129_v32 }
 0x7f0   : > { %6847 = vmatmul.mubr.msk.f32.gmra.mxu1 %vm100_vm0, %v1082_v44  ;;  %8008 = vmatprep.subr.mxu1 %v9139_v33 }
 0x7f1   : > { %8009 = vmatpush3.msra.mxu1 %v9139_v33  ;;  %8012 = vmatprep.mubr.msk.f32.mxu1 %vm100_vm0, %v1081_v20  ;;  %v11695_v20 = vld [vmem:[#allocation10_spill] sm:$0xff] }
 0x7f2   : > { %8010 = vmatprep.subr.mxu1 %v9146_v34 }
 0x7f3   : > { %8011 = vmatpush3.msra.mxu1 %v9146_v34 }
 0x7f4   : > { %8013 = vmatmul.mubr.msk.f32.vlgmr.msra.gmra.mxu1 %vm100_vm0, %v1082_v44  ;;  %v11697_v44 = vld [vmem:[#allocation12_spill] sm:$0xff] }
 0x7f5   : > { %8023 = vmatprep.mubr.msk.f32.mxu1 %vm100_vm0, %v9161_v35 }
 0x8ac   : > { %v1155_v9 = vpop.f32.mrf.mxu1 }
 0x8ae   : > { %v1157_v16 = vpop.f32.mrf.mxu1 }
 0x8b0   : > { %v1161_v38 = vpop.f32.mrf.mxu1 }
 0x8b2   : > { %v1163_v45 = vpop.f32.mrf.mxu1 }
 0x8b4   : > { %v8014_v36 = vpop.f32.mrf.mxu1 }
 0x8b5   : > { %8015 = vmatprep.subr.mxu1 %v8014_v36 }
 0x8b6   : > { %v1232_v26 = vpop.f32.mrf.mxu1  ;;  %8016 = vmatpush3.msra.mxu1 %v8014_v36 }
 0x8b7   : > { %8017 = vmatprep.subr.mxu1 %v1232_v26 }
 0x8b8   : > { %8018 = vmatpush3.msra.mxu1 %v1232_v26 }
 0x8b9   : > { %8019 = vmatprep.subr.mxu1 %v1163_v45 }
 0x8ba   : > { %8020 = vmatpush3.msra.mxu1 %v1163_v45 }
 0x8bb   : > { %8021 = vmatprep.subr.mxu1 %v1157_v16 }
 0x8bc   : > { %8022 = vmatpush3.msra.mxu1 %v1157_v16 }
 0x8bd   : > { %8024 = vmatmul.mubr.msk.f32.vlgmr.msra.gmra.mxu1 %vm100_vm0, %v11695_v20 }
 0x8be   : > { %8026 = vmatprep.mubr.msk.f32.mxu1 %vm100_vm0, %v11696_v29 }
 0x8c1   : > { %8027 = vmatmul.mubr.msk.f32.gmra.mxu1 %vm100_vm0, %v11697_v44 }
 0x8c2   : > { %8037 = vmatprep.mubr.msk.f32.mxu1 %vm100_vm0, %v11698_v41 }
 0x97d   : > { %v8025_v35 = vpop.f32.mrf.mxu1 }
 0x97e   : > { %v1317_v16 = vadd.f32 %v8025_v35, %v9373_v13 }
 0x97f   : > { %v1311_v36 = vpop.f32.mrf.mxu1 }
 0x980   : > { %v1312_v33 = vadd.f32 %v1311_v36, %v9384_v17 }
 0x981   : > { %v8028_v34 = vpop.f32.mrf.mxu1 }
 0x982   : > { %v1327_v26 = vadd.f32 %v8028_v34, %v9368_v12 }
 0x983   : > { %v1321_v45 = vpop.f32.mrf.mxu1 }
 0x984   : > { %8564 = vtanh.f32 %v1327_v26  ;;  %v1322_v20 = vadd.f32 %v1321_v45, %v9378_v15  ;;  %v11705_v45 = vld [vmem:[#allocation21_spill] sm:$0xff] }
 0x986   : > { %8566 = vtanh.f32 %v1322_v20 }
 0x987   : > { %8568 = vtanh.f32 %v1317_v16 }
 0x988   : > { %8570 = vtanh.f32 %v1312_v33 }
 0x991   : > { %v8565_v44 = vpop.eup %8564 }
 0x992   : > { %8029 = vmatprep.subr.mxu1 %v8565_v44 }
 0x993   : > { %v8567_v29 = vpop.eup %8566  ;;  %8030 = vmatpush3.msra.mxu1 %v8565_v44  ;;  %v9663_v44 = vstv %s9478_s16 }
 0x994   : > { %8031 = vmatprep.subr.mxu1 %v8567_v29  ;;  %v8569_v41 = vpop.eup %8568  ;;  %11704 = vst [vmem:[#allocation5_spill] sm:$0xff] %v9663_v44 }
 0x995   : > { %8032 = vmatpush3.msra.mxu1 %v8567_v29  ;;  %v8571_v34 = vpop.eup %8570 }
 0x996   : > { %8033 = vmatprep.subr.mxu1 %v8569_v41 }
 0x997   : > { %8034 = vmatpush3.msra.mxu1 %v8569_v41  ;;  %v11701_v41 = vld [vmem:[#allocation17_spill] sm:$0xff] }
 0x998   : > { %8035 = vmatprep.subr.mxu1 %v8571_v34 }
 0x999   : > { %8036 = vmatpush3.msra.mxu1 %v8571_v34 }
 0x99a   : > { %8038 = vmatmul.mubr.msk.f32.vlgmr.msra.gmra.mxu1 %vm100_vm0, %v9392_v10  ;;  %1519 = vmatprep.subr.mxu1 %v9075_v22  ;;  %v1241_v22 = vadd.f32 %v1155_v9, %v9434_v37 }
 0x99b   : > { %1520 = vmatpush1.msra.mxu1 %v9080_v23  ;;  %1559 = vmatprep.mubr.f32.mxu1 %v11680_v11  ;;  %v1242_v23 = vadd.f32 %v1161_v38, %v9441_v40  ;;  %v1893_v38 = vmul.f32 2.0, %v9578_v39 }
 0x99c   : > { %1521 = vmatprep.subr.mxu1 %v9085_v24  ;;  %8572 = vtanh.f32 %v1241_v22  ;;  %v1894_v22 = vmul.f32 2.0, %v9584_v14 }
 0x99d   : > { %1522 = vmatpush1.msra.mxu1 %v9091_v25  ;;  %8574 = vtanh.f32 %v1242_v23  ;;  %v1895_v16 = vadd.f32 %v1893_v38, %v11705_v45 }
 0x99e   : > { %1523 = vmatprep.subr.mxu1 %v9098_v27  ;;  %v11699_v27 = vld [vmem:[#allocation15_spill] sm:$0xff] }
 0x99f   : > { %1524 = vmatpush1.msra.mxu1 %v9104_v28  ;;  %v11700_v28 = vld [vmem:[#allocation16_spill] sm:$0xff] }
 0x9a0   : > { %1525 = vmatprep.subr.mxu1 %v11688_v42  ;;  %v11702_v42 = vld [vmem:[#allocation18_spill] sm:$0xff] }
 0x9a1   : > { %1526 = vmatpush1.msra.mxu1 %v11689_v43  ;;  %v11703_v43 = vld [vmem:[#allocation14_spill] sm:$0xff] }
 0x9a2   : > { %8040 = vmatprep.subr.mxu1 %v9122_v31 }
 0x9a9   : > { %v8573_v35 = vpop.eup %8572 }
 0x9aa   : > { %v8575_v25 = vpop.eup %8574 }
 0xa5a   : > { %v8039_v33 = vpop.f32.mrf.mxu1 }
 0xa5c   : > { %v1400_v24 = vpop.f32.mrf.mxu1 }
 0xa5d   : > { %1473 = vmatprep.mubr.f32.mxu0 %v1400_v24 }
 0xa5e   : > { %1474 = vmatmul.mubr.f32.vlgmr.msra.gmra.mxu0 %v8573_v35 }
 0xa5f   : > { %1478 = vmatprep.mubr.f32.mxu0 %v8039_v33  ;;  %7188 = vmatpush3.msra.mxu0 %v9205_v47 }
 0xa60   : > { %7189 = vmatprep.subr.mxu0 %v9210_v48 }
 0xa61   : > { %7190 = vmatpush3.msra.mxu0 %v9216_v49 }
 0xa62   : > { %1479 = vmatmul.mubr.f32.gmra.mxu0 %v8575_v25  ;;  %7191 = vmatprep.subr.mxu0 %v9222_v50 }
 0xa63   : > { %7192 = vmatpush3.msra.mxu0 %v9228_v51 }
 0xa64   : > { %7193 = vmatprep.subr.mxu0 %v9234_v52 }
 0xa65   : > { %7194 = vmatpush3.msra.mxu0 %v9240_v53 }
 0xa66   : > { %7195 = vmatprep.subr.mxu0 %v9246_v54 }
 0xa67   : > { %7196 = vmatpush3.msra.mxu0 %v9252_v55 }
 0xa68   : > { %7197 = vmatprep.subr.mxu0 %v9258_v56 }
 0xa69   : > { %7198 = vmatpush3.msra.mxu0 %v9264_v57 }
 0xa6a   : > { %7199 = vmatprep.subr.mxu0 %v9270_v58 }
 0xa6b   : > { %7200 = vmatpush3.msra.mxu0 %v9276_v59 }
 0xa6c   : > { %7201 = vmatprep.subr.mxu0 %v9282_v60 }
 0xa6d   : > { %7202 = vmatpush3.msra.mxu0 %v9288_v61 }
 0xa6e   : > { %7203 = vmatprep.subr.mxu0 %v9294_v62 }
 0xa6f   : > { %7204 = vmatpush3.msra.mxu0 %v9300_v63 }
 0xa70   : > { %7205 = vmatprep.subr.mxu0 %v9306_v0 }
 0xa71   : > { %7206 = vmatpush3.msra.mxu0 %v9312_v1 }
 0xa72   : > { %7207 = vmatprep.subr.mxu0 %v9318_v2 }
 0xa73   : > { %7208 = vmatpush3.msra.mxu0 %v9324_v3 }
 0xa74   : > { %7209 = vmatprep.subr.mxu0 %v9330_v4 }
 0xa75   : > { %7210 = vmatpush3.msra.mxu0 %v9336_v5 }
 0xa76   : > { %7211 = vmatprep.subr.mxu0 %v9342_v6 }
 0xa77   : > { %7212 = vmatpush3.msra.mxu0 %v9348_v7 }
 0xa78   : > { %7213 = vmatprep.subr.mxu0 %v9354_v8 }
 0xa79   : > { %7214 = vmatpush3.msra.mxu0 %v11699_v27 }
 0xa7a   : > { %7215 = vmatprep.subr.mxu0 %v11700_v28 }
 0xa7b   : > { %7216 = vmatpush3.msra.mxu0 %v11701_v41 }
 0xa7c   : > { %7217 = vmatprep.subr.mxu0 %v11702_v42 }
 0xa7d   : > { %7218 = vmatpush3.msra.mxu0 %v11693_v18 }
 0xa7e   : > { %7245 = vmatprep.subr.mxu0 %v11703_v43  ;;  %v11706_v43 = vld [vmem:[#allocation22_spill] sm:$0xff] }
 0xb1e   : > { %v7161_v9 = vpop.f32.mrf.mxu0 }
 0xb20   : > { %v7162_v20 = vpop.f32.mrf.mxu0 }
 0xb21   : > { %v7163_v29 = vadd.f32 %v7162_v20, %v7161_v9  ;;  %v1896_v9 = vadd.f32 %v1894_v22, %v11706_v43 }
 0xb22   : > { %v7164_v36 = vpop.f32.mrf.mxu0 }
 0xb23   : > { %v1476_v26 = vadd.f32 %v7163_v29, %v9484_v30 }
 0xb24   : > { %v7165_v34 = vpop.f32.mrf.mxu0 }
 0xb25   : > { %v1485_v23 = vmul.f32 %v9663_v44, %v1476_v26  ;;  %v1897_v33 = vmul.f32 2.0, %v1476_v26  ;;  %v7166_v24 = vadd.f32 %v7165_v34, %v7164_v36  ;;  %v11707_v36 = vld [vmem:[#allocation7_spill] sm:$0xff]  ;;  %v11708_v26 = vld [vmem:[#allocation8_spill] sm:$0xff] }
 0xb27   : > { %v1487_v35 = vadd.f32 %v8938_v21, %v1485_v23  ;;  %v1481_v39 = vadd.f32 %v7166_v24, %v9494_v46  ;;  %v9671_v25 = vadd.f32 %v1897_v33, %v1895_v16  ;;  %v11710_v33 = vld [vmem:[#allocation10_spill] sm:$0xff]  ;;  %v11711_v24 = vld [vmem:[#allocation11_spill] sm:$0xff] }
 0xb29   : > { %v1486_v20 = vmul.f32 %v9663_v44, %v1481_v39  ;;  %v1898_v29 = vmul.f32 2.0, %v1481_v39  ;;  %6856 = vmatmul.mubr.msk.f32.vlgmr.msra.gmra.mxu1 %vm100_vm0, %v1487_v35  ;;  %v11713_v39 = vld [vmem:[#allocation13_spill] sm:$0xff] }
 0xb2a   : > { %8041 = vmatpush3.msra.mxu1 %v9122_v31  ;;  %1565 = vmatprep.mubr.f32.mxu1 %v11680_v11  ;;  %v11709_v31 = vld [vmem:[#allocation9_spill] sm:$0xff] }
 0xb2b   : > { %8042 = vmatprep.subr.mxu1 %v9129_v32  ;;  %v1488_v14 = vadd.f32 %v8934_v19, %v1486_v20  ;;  %v9680_v38 = vadd.f32 %v1898_v29, %v1896_v9 }
 0xb2c   : > { %8043 = vmatpush3.msra.mxu1 %v9129_v32 }
 0xb2d   : > { %6857 = vmatmul.mubr.msk.f32.gmra.mxu1 %vm100_vm0, %v1488_v14  ;;  %8044 = vmatprep.subr.mxu1 %v11707_v36 }
 0xb2e   : > { %8045 = vmatpush3.msra.mxu1 %v11707_v36  ;;  %8048 = vmatprep.mubr.msk.f32.mxu1 %vm100_vm0, %v1487_v35  ;;  %v11712_v35 = vld [vmem:[#allocation12_spill] sm:$0xff] }
 0xb2f   : > { %8046 = vmatprep.subr.mxu1 %v11708_v26 }
 0xb30   : > { %8047 = vmatpush3.msra.mxu1 %v11708_v26 }
 0xb31   : > { %8049 = vmatmul.mubr.msk.f32.vlgmr.msra.gmra.mxu1 %vm100_vm0, %v1488_v14 }
 0xb32   : > { %8059 = vmatprep.mubr.msk.f32.mxu1 %vm100_vm0, %v11709_v31 }
 0xbe9   : > { %v1561_v45 = vpop.f32.mrf.mxu1 }
 0xbeb   : > { %v1563_v16 = vpop.f32.mrf.mxu1 }
 0xbed   : > { %v1567_v32 = vpop.f32.mrf.mxu1 }
 0xbef   : > { %v1569_v34 = vpop.f32.mrf.mxu1 }
 0xbf1   : > { %v8050_v22 = vpop.f32.mrf.mxu1 }
 0xbf2   : > { %8051 = vmatprep.subr.mxu1 %v8050_v22 }
 0xbf3   : > { %v1638_v23 = vpop.f32.mrf.mxu1  ;;  %8052 = vmatpush3.msra.mxu1 %v8050_v22 }
 0xbf4   : > { %8053 = vmatprep.subr.mxu1 %v1638_v23 }
 0xbf5   : > { %8054 = vmatpush3.msra.mxu1 %v1638_v23  ;;  %v9734_v23 = vld [vmem:[%s11549_s6 + $0x20] sm:$0xff] }
 0xbf6   : > { %8055 = vmatprep.subr.mxu1 %v1569_v34 }
 0xbf7   : > { %8056 = vmatpush3.msra.mxu1 %v1569_v34 }
 0xbf8   : > { %8057 = vmatprep.subr.mxu1 %v1563_v16 }
 0xbf9   : > { %8058 = vmatpush3.msra.mxu1 %v1563_v16 }
 0xbfa   : > { %8060 = vmatmul.mubr.msk.f32.vlgmr.msra.gmra.mxu1 %vm100_vm0, %v11710_v33  ;;  %v9740_v33 = vld [vmem:[%s11549_s6 + $0x18] sm:$0xff] }
 0xbfb   : > { %8062 = vmatprep.mubr.msk.f32.mxu1 %vm100_vm0, %v11711_v24  ;;  %v9746_v24 = vld [vmem:[%s11549_s6 + $0x8] sm:$0xff] }
 0xbfe   : > { %8063 = vmatmul.mubr.msk.f32.gmra.mxu1 %vm100_vm0, %v11712_v35  ;;  %v9752_v35 = vld [vmem:[%s11549_s6] sm:$0xff] }
 0xbff   : > { %8073 = vmatprep.mubr.msk.f32.mxu1 %vm100_vm0, %v11713_v39  ;;  %v9758_v39 = vld [vmem:[%s11549_s6 + $0x58] sm:$0xff] }
 0xcba   : > { %v8061_v43 = vpop.f32.mrf.mxu1 }
 0xcbb   : > { %v1723_v36 = vadd.f32 %v8061_v43, %v9373_v13  ;;  %v9709_v13 = vld [vmem:[%s11549_s6 + $0x50] sm:$0xff]  ;;  %v1647_v43 = vadd.f32 %v1561_v45, %v9434_v37  ;;  %v9874_v37 = vld [vmem:[%s11552_s9 + $0x18] sm:$0xff] }
 0xcbc   : > { %v1717_v9 = vpop.f32.mrf.mxu1  ;;  %11719 = vst [vmem:[#allocation18_spill] sm:$0xff] %v9874_v37 }
 0xcbd   : > { %v1718_v31 = vadd.f32 %v1717_v9, %v9384_v17  ;;  %v9722_v17 = vld [vmem:[%s11549_s6 + $0x38] sm:$0xff]  ;;  %v1648_v9 = vadd.f32 %v1567_v32, %v9441_v40  ;;  %v9881_v40 = vld [vmem:[%s11553_s10] sm:$0xff]  ;;  %v9900_v32 = vld [vmem:[%s11551_s8 + $0x10] sm:$0xff] }
 0xcbe   : > { %v8064_v20 = vpop.f32.mrf.mxu1  ;;  %11720 = vst [vmem:[#allocation14_spill] sm:$0xff] %v9881_v40 }
 0xcbf   : > { %v1733_v29 = vadd.f32 %v8064_v20, %v9368_v12 }
 0xcc0   : > { %v1727_v14 = vpop.f32.mrf.mxu1 }
 0xcc1   : > { %8576 = vtanh.f32 %v1733_v29  ;;  %v1728_v26 = vadd.f32 %v1727_v14, %v9378_v15  ;;  %v9715_v15 = vld [vmem:[%s11549_s6 + $0x48] sm:$0xff] }
 0xcc3   : > { %8578 = vtanh.f32 %v1728_v26 }
 0xcc4   : > { %8580 = vtanh.f32 %v1723_v36 }
 0xcc5   : > { %8582 = vtanh.f32 %v1718_v31  ;;  %v9906_v31 = vld [vmem:[%s11551_s8] sm:$0xff] }
 0xcc6   : > { %8584 = vtanh.f32 %v1647_v43 }
 0xcc7   : > { %8586 = vtanh.f32 %v1648_v9  ;;  %v9912_v9 = vld [vmem:[%s11553_s10 + $0x8] sm:$0xff] }
 0xcce   : > { %v8577_v16 = vpop.eup %8576 }
 0xccf   : > { %8065 = vmatprep.subr.mxu1 %v8577_v16 }
 0xcd0   : > { %v8579_v34 = vpop.eup %8578  ;;  %8066 = vmatpush3.msra.mxu1 %v8577_v16 }
 0xcd1   : > { %8067 = vmatprep.subr.mxu1 %v8579_v34  ;;  %v8581_v22 = vpop.eup %8580 }
 0xcd2   : > { %8068 = vmatpush3.msra.mxu1 %v8579_v34  ;;  %v8583_v12 = vpop.eup %8582 }
 0xcd3   : > { %8069 = vmatprep.subr.mxu1 %v8581_v22  ;;  %v8585_v14 = vpop.eup %8584 }
 0xcd4   : > { %8070 = vmatpush3.msra.mxu1 %v8581_v22  ;;  %v8587_v36 = vpop.eup %8586 }
 0xcd5   : > { %8071 = vmatprep.subr.mxu1 %v8583_v12 }
 0xcd6   : > { %8072 = vmatpush3.msra.mxu1 %v8583_v12 }
 0xcd7   : > { %8074 = vmatmul.mubr.msk.f32.vlgmr.msra.gmra.mxu1 %vm100_vm0, %v9392_v10  ;;  %1938 = vmatprep.subr.mxu1 %v9709_v13  ;;  %v9728_v10 = vld [vmem:[%s11549_s6 + $0x30] sm:$0xff] }
 0xcd8   : > { %1939 = vmatpush1.msra.mxu1 %v9715_v15  ;;  %1978 = vmatprep.mubr.f32.mxu1 %v11680_v11 }
 0xcd9   : > { %1940 = vmatprep.subr.mxu1 %v9722_v17 }
 0xcda   : > { %1941 = vmatpush1.msra.mxu1 %v9728_v10 }
 0xcdb   : > { %1942 = vmatprep.subr.mxu1 %v9734_v23 }
 0xcdc   : > { %1943 = vmatpush1.msra.mxu1 %v9740_v33 }
 0xcdd   : > { %1944 = vmatprep.subr.mxu1 %v9746_v24 }
 0xcde   : > { %1945 = vmatpush1.msra.mxu1 %v9752_v35 }
 0xcdf   : > { %8076 = vmatprep.subr.mxu1 %v9758_v39 }
 0xd97   : > { %v8075_v20 = vpop.f32.mrf.mxu1 }
 0xd99   : > { %v1806_v29 = vpop.f32.mrf.mxu1 }
 0xd9a   : > { %1879 = vmatprep.mubr.f32.mxu0 %v1806_v29 }
 0xd9b   : > { %1880 = vmatmul.mubr.f32.vlgmr.msra.gmra.mxu0 %v8585_v14  ;;  %v9936_v14 = vld [vmem:[%s11550_s7 + $0x8] sm:$0xff] }
 0xd9c   : > { %1884 = vmatprep.mubr.f32.mxu0 %v8075_v20  ;;  %7246 = vmatpush3.msra.mxu0 %v9205_v47  ;;  %v9797_v47 = vld [vmem:[%s11554_s11 + $0xf8] sm:$0xff]  ;;  %v9929_v20 = vld [vmem:[%s11550_s7] sm:$0xff] }
 0xd9d   : > { %7247 = vmatprep.subr.mxu0 %v9210_v48  ;;  %11714 = vst [vmem:[#allocation6_spill] sm:$0xff] %v9797_v47 }
 0xd9e   : > { %7248 = vmatpush3.msra.mxu0 %v9216_v49 }
 0xd9f   : > { %1885 = vmatmul.mubr.f32.gmra.mxu0 %v8587_v36  ;;  %7249 = vmatprep.subr.mxu0 %v9222_v50 }
 0xda0   : > { %7250 = vmatpush3.msra.mxu0 %v9228_v51 }
 0xda1   : > { %7251 = vmatprep.subr.mxu0 %v9234_v52 }
 0xda2   : > { %7252 = vmatpush3.msra.mxu0 %v9240_v53  ;;  %v9802_v53 = vstv %s1892_s21 }
 0xda3   : > { %7253 = vmatprep.subr.mxu0 %v9246_v54  ;;  %11715 = vst [vmem:[#allocation19_spill] sm:$0xff] %v9802_v53 }
 0xda4   : > { %7254 = vmatpush3.msra.mxu0 %v9252_v55 }
 0xda5   : > { %7255 = vmatprep.subr.mxu0 %v9258_v56 }
 0xda6   : > { %7256 = vmatpush3.msra.mxu0 %v9264_v57 }
 0xda7   : > { %7257 = vmatprep.subr.mxu0 %v9270_v58 }
 0xda8   : > { %7258 = vmatpush3.msra.mxu0 %v9276_v59 }
 0xda9   : > { %7259 = vmatprep.subr.mxu0 %v9282_v60 }
 0xdaa   : > { %7260 = vmatpush3.msra.mxu0 %v9288_v61 }
 0xdab   : > { %7261 = vmatprep.subr.mxu0 %v9294_v62 }
 0xdac   : > { %7262 = vmatpush3.msra.mxu0 %v9300_v63  ;;  %v9822_v63 = vld [vmem:[%s11549_s6 + $0x40] sm:$0xff] }
 0xdad   : > { %7263 = vmatprep.subr.mxu0 %v9306_v0  ;;  %v9849_v0 = vld [vmem:[%s11552_s9] sm:$0xff] }
 0xdae   : > { %7264 = vmatpush3.msra.mxu0 %v9312_v1  ;;  %11716 = vst [vmem:[#allocation15_spill] sm:$0xff] %v9849_v0 }
 0xdaf   : > { %7265 = vmatprep.subr.mxu0 %v9318_v2 }
 0xdb0   : > { %7266 = vmatpush3.msra.mxu0 %v9324_v3 }
 0xdb1   : > { %7267 = vmatprep.subr.mxu0 %v9330_v4 }
 0xdb2   : > { %7268 = vmatpush3.msra.mxu0 %v9336_v5 }
 0xdb3   : > { %7269 = vmatprep.subr.mxu0 %v9342_v6 }
 0xdb4   : > { %7270 = vmatpush3.msra.mxu0 %v9348_v7  ;;  %v9860_v7 = vld [vmem:[%s11552_s9 + $0x8] sm:$0xff] }
 0xdb5   : > { %7271 = vmatprep.subr.mxu0 %v9354_v8  ;;  %11717 = vst [vmem:[#allocation16_spill] sm:$0xff] %v9860_v7  ;;  %v9867_v8 = vld [vmem:[%s11552_s9 + $0x10] sm:$0xff] }
 0xdb6   : > { %7272 = vmatpush3.msra.mxu0 %v11699_v27  ;;  %11718 = vst [vmem:[#allocation17_spill] sm:$0xff] %v9867_v8 }
 0xdb7   : > { %7273 = vmatprep.subr.mxu0 %v11700_v28 }
 0xdb8   : > { %7274 = vmatpush3.msra.mxu0 %v11701_v41  ;;  %v9888_v41 = vld [vmem:[%s11551_s8 + $0x18] sm:$0xff] }
 0xdb9   : > { %7275 = vmatprep.subr.mxu0 %v11702_v42 }
 0xdba   : > { %7276 = vmatpush3.msra.mxu0 %v11693_v18 }
 0xdbb   : > { %7303 = vmatprep.subr.mxu0 %v9797_v47 }
 0xe5b   : > { %v7219_v48 = vpop.f32.mrf.mxu0 }
 0xe5d   : > { %v7220_v49 = vpop.f32.mrf.mxu0 }
 0xe5e   : > { %v7221_v50 = vadd.f32 %v7220_v49, %v7219_v48 }
 0xe5f   : > { %v7222_v51 = vpop.f32.mrf.mxu0 }
 0xe60   : > { %v1882_v52 = vadd.f32 %v7221_v50, %v9484_v30 }
 0xe61   : > { %v7223_v54 = vpop.f32.mrf.mxu0 }
 0xe62   : > { %v1901_v55 = vadd.f32 %v9671_v25, %v1882_v52  ;;  %v7224_v56 = vadd.f32 %v7223_v54, %v7222_v51  ;;  %v9943_v51 = vld [vmem:[%s11554_s11 + $0x78] sm:$0xff]  ;;  %v9949_v52 = vld [vmem:[%s11554_s11 + $0xf0] sm:$0xff] }
 0xe64   : > { %v1904_v57 = vmul.f32 %v9802_v53, %v1901_v55  ;;  %v1887_v58 = vadd.f32 %v7224_v56, %v9494_v46  ;;  %v9955_v55 = vld [vmem:[%s11554_s11 + $0x70] sm:$0xff]  ;;  %v9961_v56 = vld [vmem:[%s11554_s11 + $0xe8] sm:$0xff] }
 0xe66   : > { %v9808_v59 = vadd.f32 %v8938_v21, %v1904_v57  ;;  %v1902_v60 = vadd.f32 %v9680_v38, %v1887_v58  ;;  %v9831_v21 = vld [vmem:[%s11549_s6 + $0x28] sm:$0xff]  ;;  %v9973_v58 = vld [vmem:[%s11554_s11 + $0xe0] sm:$0xff] }
 0xe67   : > { %v9894_v38 = vld [vmem:[%s11551_s8 + $0x8] sm:$0xff] }
 0xe68   : > { %v1905_v61 = vmul.f32 %v9802_v53, %v1902_v60  ;;  %6866 = vmatmul.mubr.msk.f32.vlgmr.msra.gmra.mxu1 %vm100_vm0, %v9808_v59  ;;  %v9967_v57 = vld [vmem:[%s11554_s11 + $0x68] sm:$0xff]  ;;  %v9979_v60 = vld [vmem:[%s11554_s11 + $0x60] sm:$0xff] }
 0xe69   : > { %8077 = vmatpush3.msra.mxu1 %v9758_v39  ;;  %1984 = vmatprep.mubr.f32.mxu1 %v11680_v11 }
 0xe6a   : > { %v9817_v62 = vadd.f32 %v8934_v19, %v1905_v61  ;;  %8078 = vmatprep.subr.mxu1 %v9822_v63  ;;  %v9840_v19 = vld [vmem:[%s11549_s6 + $0x10] sm:$0xff]  ;;  %v9985_v61 = vld [vmem:[%s11554_s11 + $0xd8] sm:$0xff] }
 0xe6b   : > { %8079 = vmatpush3.msra.mxu1 %v9822_v63 }
 0xe6c   : > { %6867 = vmatmul.mubr.msk.f32.gmra.mxu1 %vm100_vm0, %v9817_v62  ;;  %8080 = vmatprep.subr.mxu1 %v9831_v21 }
 0xe6d   : > { %8081 = vmatpush3.msra.mxu1 %v9831_v21  ;;  %8084 = vmatprep.mubr.msk.f32.mxu1 %vm100_vm0, %v9808_v59 }
 0xe6e   : > { %8082 = vmatprep.subr.mxu1 %v9840_v19 }
 0xe6f   : > { %8083 = vmatpush3.msra.mxu1 %v9840_v19 }
 0xe70   : > { %8085 = vmatmul.mubr.msk.f32.vlgmr.msra.gmra.mxu1 %vm100_vm0, %v9817_v62 }
 0xe71   : > { %8095 = vmatprep.mubr.msk.f32.mxu1 %vm100_vm0, %v9849_v0 }
 0xf28   : > { %v9853_v1 = vpop.f32.mrf.mxu1 }
 0xf29   : > { %v2066_v29 = vadd.f32 %v9929_v20, %v9853_v1  ;;  %v9991_v1 = vld [vmem:[%s11554_s11 + $0x58] sm:$0xff] }
 0xf2a   : > { %v1982_v2 = vpop.f32.mrf.mxu1 }
 0xf2c   : > { %v9855_v3 = vpop.f32.mrf.mxu1 }
 0xf2d   : > { %v2067_v36 = vadd.f32 %v9936_v14, %v9855_v3  ;;  %v10003_v3 = vld [vmem:[%s11554_s11 + $0x50] sm:$0xff] }
 0xf2e   : > { %v1988_v4 = vpop.f32.mrf.mxu1 }
 0xf30   : > { %v8086_v5 = vpop.f32.mrf.mxu1 }
 0xf31   : > { %8087 = vmatprep.subr.mxu1 %v8086_v5 }
 0xf32   : > { %v2057_v6 = vpop.f32.mrf.mxu1  ;;  %8088 = vmatpush3.msra.mxu1 %v8086_v5  ;;  %v10015_v5 = vld [vmem:[%s11554_s11 + $0x48] sm:$0xff] }
 0xf33   : > { %8089 = vmatprep.subr.mxu1 %v2057_v6 }
 0xf34   : > { %8090 = vmatpush3.msra.mxu1 %v2057_v6  ;;  %v10021_v6 = vld [vmem:[%s11554_s11 + $0xc0] sm:$0xff] }
 0xf35   : > { %8091 = vmatprep.subr.mxu1 %v1988_v4 }
 0xf36   : > { %8092 = vmatpush3.msra.mxu1 %v1988_v4  ;;  %v10009_v4 = vld [vmem:[%s11554_s11 + $0xc8] sm:$0xff] }
 0xf37   : > { %8093 = vmatprep.subr.mxu1 %v1982_v2 }
 0xf38   : > { %8094 = vmatpush3.msra.mxu1 %v1982_v2  ;;  %v9997_v2 = vld [vmem:[%s11554_s11 + $0xd0] sm:$0xff] }
 0xf39   : > { %8096 = vmatmul.mubr.msk.f32.vlgmr.msra.gmra.mxu1 %vm100_vm0, %v9860_v7 }
 0xf3a   : > { %8098 = vmatprep.mubr.msk.f32.mxu1 %vm100_vm0, %v9867_v8 }
 0xf3d   : > { %8099 = vmatmul.mubr.msk.f32.gmra.mxu1 %vm100_vm0, %v9874_v37 }
 0xf3e   : > { %8109 = vmatprep.mubr.msk.f32.mxu1 %vm100_vm0, %v9881_v40 }
 0xff9   : > { %v8097_v18 = vpop.f32.mrf.mxu1 }
 0xffa   : > { %v2142_v45 = vadd.f32 %v9894_v38, %v8097_v18  ;;  %v10027_v18 = vld [vmem:[%s11554_s11 + $0x40] sm:$0xff] }
 0xffb   : > { %v2136_v27 = vpop.f32.mrf.mxu1 }
 0xffc   : > { %v2137_v16 = vadd.f32 %v9906_v31, %v2136_v27  ;;  %v10033_v27 = vld [vmem:[%s11554_s11 + $0xb8] sm:$0xff] }
 0xffd   : > { %v8100_v28 = vpop.f32.mrf.mxu1 }
 0xffe   : > { %v2152_v42 = vadd.f32 %v9888_v41, %v8100_v28  ;;  %v10039_v28 = vld [vmem:[%s11554_s11 + $0x38] sm:$0xff] }
 0xfff   : > { %v2146_v25 = vpop.f32.mrf.mxu1 }
0x1000   : > { %8588 = vtanh.f32 %v2152_v42  ;;  %v2147_v26 = vadd.f32 %v9900_v32, %v2146_v25  ;;  %v10045_v42 = vld [vmem:[%s11554_s11 + $0xb0] sm:$0xff] }
0x1001   : > { %v10051_v25 = vld [vmem:[%s11554_s11 + $0x30] sm:$0xff] }
0x1002   : > { %8590 = vtanh.f32 %v2147_v26  ;;  %v10063_v26 = vld [vmem:[%s11554_s11 + $0x28] sm:$0xff] }
0x1003   : > { %8592 = vtanh.f32 %v2142_v45  ;;  %v10057_v45 = vld [vmem:[%s11554_s11 + $0xa8] sm:$0xff] }
0x1004   : > { %8594 = vtanh.f32 %v2137_v16  ;;  %v10069_v16 = vld [vmem:[%s11554_s11 + $0xa0] sm:$0xff] }
0x1005   : > { %8596 = vtanh.f32 %v2066_v29  ;;  %11721 = vst [vmem:[#allocation21_spill] sm:$0xff] %v10069_v16  ;;  %v10099_v29 = vld [vmem:[%s11554_s11 + $0x10] sm:$0xff] }
0x1006   : > { %8598 = vtanh.f32 %v2067_v36  ;;  %11726 = vst [vmem:[#allocation10_spill] sm:$0xff] %v10099_v29  ;;  %v10105_v36 = vld [vmem:[%s11554_s11 + $0x88] sm:$0xff] }
0x1007   : > { %11727 = vst [vmem:[#allocation11_spill] sm:$0xff] %v10105_v36 }
0x100d   : > { %v8589_v34 = vpop.eup %8588 }
0x100e   : > { %8101 = vmatprep.subr.mxu1 %v8589_v34 }
0x100f   : > { %v8591_v22 = vpop.eup %8590  ;;  %8102 = vmatpush3.msra.mxu1 %v8589_v34  ;;  %v10075_v34 = vld [vmem:[%s11554_s11 + $0x20] sm:$0xff] }
0x1010   : > { %8103 = vmatprep.subr.mxu1 %v8591_v22  ;;  %v8593_v12 = vpop.eup %8592  ;;  %11722 = vst [vmem:[#allocation22_spill] sm:$0xff] %v10075_v34 }
0x1011   : > { %8104 = vmatpush3.msra.mxu1 %v8591_v22  ;;  %v8595_v43 = vpop.eup %8594  ;;  %v10081_v22 = vld [vmem:[%s11554_s11 + $0x98] sm:$0xff] }
0x1012   : > { %8105 = vmatprep.subr.mxu1 %v8593_v12  ;;  %v8597_v50 = vpop.eup %8596  ;;  %11723 = vst [vmem:[#allocation7_spill] sm:$0xff] %v10081_v22 }
0x1013   : > { %8106 = vmatpush3.msra.mxu1 %v8593_v12  ;;  %v8599_v54 = vpop.eup %8598  ;;  %v10087_v12 = vld [vmem:[%s11554_s11 + $0x18] sm:$0xff] }
0x1014   : > { %8107 = vmatprep.subr.mxu1 %v8595_v43  ;;  %11724 = vst [vmem:[#allocation8_spill] sm:$0xff] %v10087_v12 }
0x1015   : > { %8108 = vmatpush3.msra.mxu1 %v8595_v43  ;;  %v10093_v43 = vld [vmem:[%s11554_s11 + $0x90] sm:$0xff] }
0x1016   : > { %8110 = vmatmul.mubr.msk.f32.vlgmr.msra.gmra.mxu1 %vm100_vm0, %v9912_v9  ;;  %2343 = vmatprep.subr.mxu1 %v9709_v13  ;;  %11725 = vst [vmem:[#allocation9_spill] sm:$0xff] %v10093_v43 }
0x1017   : > { %2344 = vmatpush1.msra.mxu1 %v9715_v15  ;;  %2383 = vmatprep.mubr.f32.mxu1 %v11680_v11 }
0x1018   : > { %2345 = vmatprep.subr.mxu1 %v9722_v17 }
0x1019   : > { %2346 = vmatpush1.msra.mxu1 %v9728_v10 }
0x101a   : > { %2347 = vmatprep.subr.mxu1 %v9734_v23 }
0x101b   : > { %2348 = vmatpush1.msra.mxu1 %v9740_v33 }
0x101c   : > { %2349 = vmatprep.subr.mxu1 %v9746_v24 }
0x101d   : > { %2350 = vmatpush1.msra.mxu1 %v9752_v35 }
0x101e   : > { %8112 = vmatprep.subr.mxu1 %v9758_v39 }
0x10d6   : > { %v8111_v48 = vpop.f32.mrf.mxu1 }
0x10d8   : > { %v2225_v49 = vpop.f32.mrf.mxu1 }
0x10d9   : > { %2298 = vmatprep.mubr.f32.mxu0 %v2225_v49  ;;  %v10117_v49 = vld [vmem:[%s11554_s11 + $0x80] sm:$0xff] }
0x10da   : > { %2299 = vmatmul.mubr.f32.vlgmr.msra.gmra.mxu0 %v8597_v50  ;;  %11729 = vst [vmem:[#allocation13_spill] sm:$0xff] %v10117_v49  ;;  %v10123_v50 = vld [vmem:[%s11554_s11] sm:$0xff] }
0x10db   : > { %2303 = vmatprep.mubr.f32.mxu0 %v8111_v48  ;;  %7304 = vmatpush3.msra.mxu0 %v9943_v51  ;;  %v10111_v48 = vld [vmem:[%s11554_s11 + $0x8] sm:$0xff]  ;;  %11730 = vst [vmem:[#allocation23_spill] sm:$0xff] %v10123_v50 }
0x10dc   : > { %7305 = vmatprep.subr.mxu0 %v9949_v52  ;;  %11728 = vst [vmem:[#allocation12_spill] sm:$0xff] %v10111_v48 }
0x10dd   : > { %7306 = vmatpush3.msra.mxu0 %v9955_v55 }
0x10de   : > { %2304 = vmatmul.mubr.f32.gmra.mxu0 %v8599_v54  ;;  %7307 = vmatprep.subr.mxu0 %v9961_v56 }
0x10df   : > { %7308 = vmatpush3.msra.mxu0 %v9967_v57 }
0x10e0   : > { %7309 = vmatprep.subr.mxu0 %v9973_v58 }
0x10e1   : > { %7310 = vmatpush3.msra.mxu0 %v9979_v60 }
0x10e2   : > { %7311 = vmatprep.subr.mxu0 %v9985_v61 }
0x10e3   : > { %7312 = vmatpush3.msra.mxu0 %v9991_v1 }
0x10e4   : > { %7313 = vmatprep.subr.mxu0 %v9997_v2 }
0x10e5   : > { %7314 = vmatpush3.msra.mxu0 %v10003_v3 }
0x10e6   : > { %7315 = vmatprep.subr.mxu0 %v10009_v4 }
0x10e7   : > { %7316 = vmatpush3.msra.mxu0 %v10015_v5 }
0x10e8   : > { %7317 = vmatprep.subr.mxu0 %v10021_v6 }
0x10e9   : > { %7318 = vmatpush3.msra.mxu0 %v10027_v18 }
0x10ea   : > { %7319 = vmatprep.subr.mxu0 %v10033_v27 }
0x10eb   : > { %7320 = vmatpush3.msra.mxu0 %v10039_v28 }
0x10ec   : > { %7321 = vmatprep.subr.mxu0 %v10045_v42 }
0x10ed   : > { %7322 = vmatpush3.msra.mxu0 %v10051_v25 }
0x10ee   : > { %7323 = vmatprep.subr.mxu0 %v10057_v45 }
0x10ef   : > { %7324 = vmatpush3.msra.mxu0 %v10063_v26 }
0x10f0   : > { %7325 = vmatprep.subr.mxu0 %v10069_v16 }
0x10f1   : > { %7326 = vmatpush3.msra.mxu0 %v10075_v34 }
0x10f2   : > { %7327 = vmatprep.subr.mxu0 %v10081_v22 }
0x10f3   : > { %7328 = vmatpush3.msra.mxu0 %v10087_v12 }
0x10f4   : > { %7329 = vmatprep.subr.mxu0 %v10093_v43  ;;  %v11732_v43 = vld [vmem:[#allocation20_spill] sm:$0xff] }
0x10f5   : > { %7330 = vmatpush3.msra.mxu0 %v10099_v29 }
0x10f6   : > { %7331 = vmatprep.subr.mxu0 %v10105_v36 }
0x10f7   : > { %7332 = vmatpush3.msra.mxu0 %v10111_v48 }
0x10f8   : > { %7333 = vmatprep.subr.mxu0 %v10117_v49 }
0x10f9   : > { %7334 = vmatpush3.msra.mxu0 %v10123_v50 }
0x10fa   : > { %7361 = vmatprep.subr.mxu0 %v9797_v47 }
0x119a   : > { %v7277_v54 = vpop.f32.mrf.mxu0 }
0x119c   : > { %v7278_v53 = vpop.f32.mrf.mxu0 }
0x119d   : > { %v7279_v44 = vadd.f32 %v7278_v53, %v7277_v54 }
0x119e   : > { %v7280_v48 = vpop.f32.mrf.mxu0 }
0x119f   : > { %v10128_v36 = vadd.f32 %v7279_v44, %v9484_v30 }
0x11a0   : > { %v7281_v29 = vpop.f32.mrf.mxu0 }
0x11a1   : > { %11731 = vst [vmem:[#allocation24_spill] sm:$0xff] %v10128_v36  ;;  %v2309_v49 = vmul.f32 %v10128_v36, %v11732_v43  ;;  %v7282_v12 = vadd.f32 %v7281_v29, %v7280_v48 }
0x11a3   : > { %v2311_v22 = vadd.f32 %v2309_v49, %v9808_v59  ;;  %v10134_v34 = vadd.f32 %v7282_v12, %v9494_v46 }
0x11a5   : > { %11733 = vst [vmem:[#allocation25_spill] sm:$0xff] %v10134_v34  ;;  %v2310_v47 = vmul.f32 %v10134_v34, %v11732_v43  ;;  %6876 = vmatmul.mubr.msk.f32.vlgmr.msra.gmra.mxu1 %vm100_vm0, %v2311_v22 }
0x11a6   : > { %8113 = vmatpush3.msra.mxu1 %v9758_v39  ;;  %2389 = vmatprep.mubr.f32.mxu1 %v11680_v11 }
0x11a7   : > { %8114 = vmatprep.subr.mxu1 %v9822_v63  ;;  %v2312_v30 = vadd.f32 %v2310_v47, %v9817_v62 }
0x11a8   : > { %8115 = vmatpush3.msra.mxu1 %v9822_v63 }
0x11a9   : > { %6877 = vmatmul.mubr.msk.f32.gmra.mxu1 %vm100_vm0, %v2312_v30  ;;  %8116 = vmatprep.subr.mxu1 %v9831_v21 }
0x11aa   : > { %8117 = vmatpush3.msra.mxu1 %v9831_v21  ;;  %8120 = vmatprep.mubr.msk.f32.mxu1 %vm100_vm0, %v2311_v22 }
0x11ab   : > { %8118 = vmatprep.subr.mxu1 %v9840_v19 }
0x11ac   : > { %8119 = vmatpush3.msra.mxu1 %v9840_v19 }
0x11ad   : > { %8121 = vmatmul.mubr.msk.f32.vlgmr.msra.gmra.mxu1 %vm100_vm0, %v2312_v30 }
0x11ae   : > { %8131 = vmatprep.mubr.msk.f32.mxu1 %vm100_vm0, %v9849_v0 }
0x1265   : > { %v2385_v46 = vpop.f32.mrf.mxu1 }
0x1267   : > { %v2387_v44 = vpop.f32.mrf.mxu1 }
0x1269   : > { %v2391_v47 = vpop.f32.mrf.mxu1 }
0x126b   : > { %v2393_v53 = vpop.f32.mrf.mxu1 }
0x126d   : > { %v8122_v12 = vpop.f32.mrf.mxu1 }
0x126e   : > { %8123 = vmatprep.subr.mxu1 %v8122_v12 }
0x126f   : > { %v2462_v29 = vpop.f32.mrf.mxu1  ;;  %8124 = vmatpush3.msra.mxu1 %v8122_v12 }
0x1270   : > { %8125 = vmatprep.subr.mxu1 %v2462_v29 }
0x1271   : > { %8126 = vmatpush3.msra.mxu1 %v2462_v29 }
0x1272   : > { %8127 = vmatprep.subr.mxu1 %v2393_v53 }
0x1273   : > { %8128 = vmatpush3.msra.mxu1 %v2393_v53 }
0x1274   : > { %8129 = vmatprep.subr.mxu1 %v2387_v44 }
0x1275   : > { %8130 = vmatpush3.msra.mxu1 %v2387_v44 }
0x1276   : > { %8132 = vmatmul.mubr.msk.f32.vlgmr.msra.gmra.mxu1 %vm100_vm0, %v9860_v7 }
0x1277   : > { %8134 = vmatprep.mubr.msk.f32.mxu1 %vm100_vm0, %v9867_v8 }
0x127a   : > { %8135 = vmatmul.mubr.msk.f32.gmra.mxu1 %vm100_vm0, %v9874_v37 }
0x127b   : > { %8145 = vmatprep.mubr.msk.f32.mxu1 %vm100_vm0, %v9881_v40 }
0x1336   : > { %v8133_v22 = vpop.f32.mrf.mxu1 }
0x1337   : > { %v2547_v44 = vadd.f32 %v9894_v38, %v8133_v22 }
0x1338   : > { %v2541_v48 = vpop.f32.mrf.mxu1 }
0x1339   : > { %v2542_v12 = vadd.f32 %v9906_v31, %v2541_v48 }
0x133a   : > { %v8136_v49 = vpop.f32.mrf.mxu1 }
0x133b   : > { %v2557_v54 = vadd.f32 %v9888_v41, %v8136_v49 }
0x133c   : > { %v2551_v30 = vpop.f32.mrf.mxu1 }
0x133d   : > { %8600 = vtanh.f32 %v2557_v54  ;;  %v2552_v53 = vadd.f32 %v9900_v32, %v2551_v30 }
0x133f   : > { %8602 = vtanh.f32 %v2552_v53  ;;  %v11737_v53 = vld [vmem:[#allocation9_spill] sm:$0xff] }
0x1340   : > { %8604 = vtanh.f32 %v2547_v44  ;;  %v11736_v44 = vld [vmem:[#allocation8_spill] sm:$0xff] }
0x1341   : > { %8606 = vtanh.f32 %v2542_v12  ;;  %v11738_v12 = vld [vmem:[#allocation10_spill] sm:$0xff] }
0x134a   : > { %v8601_v29 = vpop.eup %8600 }
0x134b   : > { %8137 = vmatprep.subr.mxu1 %v8601_v29 }
0x134c   : > { %v8603_v34 = vpop.eup %8602  ;;  %8138 = vmatpush3.msra.mxu1 %v8601_v29  ;;  %v11739_v29 = vld [vmem:[#allocation11_spill] sm:$0xff] }
0x134d   : > { %8139 = vmatprep.subr.mxu1 %v8603_v34  ;;  %v8605_v36 = vpop.eup %8604 }
0x134e   : > { %8140 = vmatpush3.msra.mxu1 %v8603_v34  ;;  %v8607_v49 = vpop.eup %8606  ;;  %v2471_v34 = vadd.f32 %v9929_v20, %v2385_v46  ;;  %v11734_v46 = vld [vmem:[#allocation22_spill] sm:$0xff] }
0x134f   : > { %8141 = vmatprep.subr.mxu1 %v8605_v36 }
0x1350   : > { %8142 = vmatpush3.msra.mxu1 %v8605_v36  ;;  %8608 = vtanh.f32 %v2471_v34  ;;  %v2472_v36 = vadd.f32 %v9936_v14, %v2391_v47  ;;  %v11735_v47 = vld [vmem:[#allocation7_spill] sm:$0xff]  ;;  %v11741_v34 = vld [vmem:[#allocation13_spill] sm:$0xff] }
0x1351   : > { %8143 = vmatprep.subr.mxu1 %v8607_v49 }
0x1352   : > { %8144 = vmatpush3.msra.mxu1 %v8607_v49  ;;  %8610 = vtanh.f32 %v2472_v36  ;;  %v11740_v49 = vld [vmem:[#allocation12_spill] sm:$0xff]  ;;  %v11742_v36 = vld [vmem:[#allocation6_spill] sm:$0xff] }
0x1353   : > { %8146 = vmatmul.mubr.msk.f32.vlgmr.msra.gmra.mxu1 %vm100_vm0, %v9912_v9  ;;  %2748 = vmatprep.subr.mxu1 %v9709_v13 }
0x1354   : > { %2749 = vmatpush1.msra.mxu1 %v9715_v15  ;;  %2788 = vmatprep.mubr.f32.mxu1 %v11680_v11 }
0x1355   : > { %2750 = vmatprep.subr.mxu1 %v9722_v17 }
0x1356   : > { %2751 = vmatpush1.msra.mxu1 %v9728_v10 }
0x1357   : > { %2752 = vmatprep.subr.mxu1 %v9734_v23 }
0x1358   : > { %2753 = vmatpush1.msra.mxu1 %v9740_v33 }
0x1359   : > { %2754 = vmatprep.subr.mxu1 %v9746_v24 }
0x135a   : > { %2755 = vmatpush1.msra.mxu1 %v9752_v35 }
0x135b   : > { %8148 = vmatprep.subr.mxu1 %v9758_v39 }
0x135d   : > { %v8609_v54 = vpop.eup %8608 }
0x135f   : > { %v8611_v30 = vpop.eup %8610 }
0x1413   : > { %v8147_v22 = vpop.f32.mrf.mxu1 }
0x1415   : > { %v2630_v48 = vpop.f32.mrf.mxu1 }
0x1416   : > { %2703 = vmatprep.mubr.f32.mxu0 %v2630_v48 }
0x1417   : > { %2704 = vmatmul.mubr.f32.vlgmr.msra.gmra.mxu0 %v8609_v54 }
0x1418   : > { %2708 = vmatprep.mubr.f32.mxu0 %v8147_v22  ;;  %7362 = vmatpush3.msra.mxu0 %v9943_v51 }
0x1419   : > { %7363 = vmatprep.subr.mxu0 %v9949_v52 }
0x141a   : > { %7364 = vmatpush3.msra.mxu0 %v9955_v55 }
0x141b   : > { %2709 = vmatmul.mubr.f32.gmra.mxu0 %v8611_v30  ;;  %7365 = vmatprep.subr.mxu0 %v9961_v56 }
0x141c   : > { %7366 = vmatpush3.msra.mxu0 %v9967_v57 }
0x141d   : > { %7367 = vmatprep.subr.mxu0 %v9973_v58 }
0x141e   : > { %7368 = vmatpush3.msra.mxu0 %v9979_v60 }
0x141f   : > { %7369 = vmatprep.subr.mxu0 %v9985_v61 }
0x1420   : > { %7370 = vmatpush3.msra.mxu0 %v9991_v1 }
0x1421   : > { %7371 = vmatprep.subr.mxu0 %v9997_v2 }
0x1422   : > { %7372 = vmatpush3.msra.mxu0 %v10003_v3 }
0x1423   : > { %7373 = vmatprep.subr.mxu0 %v10009_v4 }
0x1424   : > { %7374 = vmatpush3.msra.mxu0 %v10015_v5 }
0x1425   : > { %7375 = vmatprep.subr.mxu0 %v10021_v6 }
0x1426   : > { %7376 = vmatpush3.msra.mxu0 %v10027_v18 }
0x1427   : > { %7377 = vmatprep.subr.mxu0 %v10033_v27 }
0x1428   : > { %7378 = vmatpush3.msra.mxu0 %v10039_v28 }
0x1429   : > { %7379 = vmatprep.subr.mxu0 %v10045_v42 }
0x142a   : > { %7380 = vmatpush3.msra.mxu0 %v10051_v25 }
0x142b   : > { %7381 = vmatprep.subr.mxu0 %v10057_v45 }
0x142c   : > { %7382 = vmatpush3.msra.mxu0 %v10063_v26 }
0x142d   : > { %7383 = vmatprep.subr.mxu0 %v10069_v16 }
0x142e   : > { %7384 = vmatpush3.msra.mxu0 %v11734_v46 }
0x142f   : > { %7385 = vmatprep.subr.mxu0 %v11735_v47 }
0x1430   : > { %7386 = vmatpush3.msra.mxu0 %v11736_v44 }
0x1431   : > { %7387 = vmatprep.subr.mxu0 %v11737_v53  ;;  %v10214_v53 = vld [vmem:[%s11555_s12] sm:$0xff] }
0x1432   : > { %7388 = vmatpush3.msra.mxu0 %v11738_v12 }
0x1433   : > { %7389 = vmatprep.subr.mxu0 %v11739_v29 }
0x1434   : > { %7390 = vmatpush3.msra.mxu0 %v11740_v49 }
0x1435   : > { %7391 = vmatprep.subr.mxu0 %v11741_v34 }
0x1436   : > { %7392 = vmatpush3.msra.mxu0 %v10123_v50 }
0x1437   : > { %7419 = vmatprep.subr.mxu0 %v11742_v36 }
0x14d7   : > { %v7335_v22 = vpop.f32.mrf.mxu0 }
0x14d9   : > { %v7336_v48 = vpop.f32.mrf.mxu0 }
0x14da   : > { %v7337_v54 = vadd.f32 %v7336_v48, %v7335_v22  ;;  %v10225_v22 = vld [vmem:[%s11555_s12 + $0x8] sm:$0xff] }
0x14db   : > { %v7338_v30 = vpop.f32.mrf.mxu0 }
0x14dc   : > { %v10217_v12 = vadd.f32 %v10214_v53, %v7337_v54 }
0x14dd   : > { %v7339_v29 = vpop.f32.mrf.mxu0 }
0x14de   : > { %v2714_v34 = vmul.f32 %v10217_v12, %v11732_v43  ;;  %v7340_v49 = vadd.f32 %v7339_v29, %v7338_v30 }
0x14e0   : > { %v2716_v50 = vadd.f32 %v2714_v34, %v9808_v59  ;;  %v10228_v48 = vadd.f32 %v10225_v22, %v7340_v49 }
0x14e2   : > { %v2715_v36 = vmul.f32 %v10228_v48, %v11732_v43  ;;  %6886 = vmatmul.mubr.msk.f32.vlgmr.msra.gmra.mxu1 %vm100_vm0, %v2716_v50 }
0x14e3   : > { %8149 = vmatpush3.msra.mxu1 %v9758_v39  ;;  %2794 = vmatprep.mubr.f32.mxu1 %v11680_v11 }
0x14e4   : > { %8150 = vmatprep.subr.mxu1 %v9822_v63  ;;  %v2717_v29 = vadd.f32 %v2715_v36, %v9817_v62 }
0x14e5   : > { %8151 = vmatpush3.msra.mxu1 %v9822_v63 }
0x14e6   : > { %6887 = vmatmul.mubr.msk.f32.gmra.mxu1 %vm100_vm0, %v2717_v29  ;;  %8152 = vmatprep.subr.mxu1 %v9831_v21 }
0x14e7   : > { %8153 = vmatpush3.msra.mxu1 %v9831_v21  ;;  %8156 = vmatprep.mubr.msk.f32.mxu1 %vm100_vm0, %v2716_v50 }
0x14e8   : > { %8154 = vmatprep.subr.mxu1 %v9840_v19 }
0x14e9   : > { %8155 = vmatpush3.msra.mxu1 %v9840_v19 }
0x14ea   : > { %8157 = vmatmul.mubr.msk.f32.vlgmr.msra.gmra.mxu1 %vm100_vm0, %v2717_v29 }
0x14eb   : > { %8167 = vmatprep.mubr.msk.f32.mxu1 %vm100_vm0, %v9849_v0 }
0x15a2   : > { %v2790_v49 = vpop.f32.mrf.mxu1 }
0x15a4   : > { %v2792_v34 = vpop.f32.mrf.mxu1 }
0x15a6   : > { %v2796_v36 = vpop.f32.mrf.mxu1 }
0x15a8   : > { %v2798_v54 = vpop.f32.mrf.mxu1 }
0x15aa   : > { %v8158_v30 = vpop.f32.mrf.mxu1 }
0x15ab   : > { %8159 = vmatprep.subr.mxu1 %v8158_v30 }
0x15ac   : > { %v2867_v43 = vpop.f32.mrf.mxu1  ;;  %8160 = vmatpush3.msra.mxu1 %v8158_v30 }
0x15ad   : > { %8161 = vmatprep.subr.mxu1 %v2867_v43 }
0x15ae   : > { %8162 = vmatpush3.msra.mxu1 %v2867_v43 }
0x15af   : > { %8163 = vmatprep.subr.mxu1 %v2798_v54 }
0x15b0   : > { %8164 = vmatpush3.msra.mxu1 %v2798_v54 }
0x15b1   : > { %8165 = vmatprep.subr.mxu1 %v2792_v34 }
0x15b2   : > { %8166 = vmatpush3.msra.mxu1 %v2792_v34 }
0x15b3   : > { %8168 = vmatmul.mubr.msk.f32.vlgmr.msra.gmra.mxu1 %vm100_vm0, %v9860_v7 }
0x15b4   : > { %8170 = vmatprep.mubr.msk.f32.mxu1 %vm100_vm0, %v9867_v8 }
0x15b7   : > { %8171 = vmatmul.mubr.msk.f32.gmra.mxu1 %vm100_vm0, %v9874_v37 }
0x15b8   : > { %8181 = vmatprep.mubr.msk.f32.mxu1 %vm100_vm0, %v9881_v40 }
0x1673   : > { %v8169_v50 = vpop.f32.mrf.mxu1 }
0x1674   : > { %v2952_v34 = vadd.f32 %v9894_v38, %v8169_v50 }
0x1675   : > { %v2946_v29 = vpop.f32.mrf.mxu1 }
0x1676   : > { %v2947_v0 = vadd.f32 %v9906_v31, %v2946_v29  ;;  %v11745_v29 = vld [vmem:[#allocation11_spill] sm:$0xff] }
0x1677   : > { %v8172_v30 = vpop.f32.mrf.mxu1 }
0x1678   : > { %v2962_v43 = vadd.f32 %v9888_v41, %v8172_v30 }
0x1679   : > { %v2956_v54 = vpop.f32.mrf.mxu1 }
0x167a   : > { %8612 = vtanh.f32 %v2962_v43  ;;  %v2957_v7 = vadd.f32 %v9900_v32, %v2956_v54  ;;  %v11746_v43 = vld [vmem:[#allocation12_spill] sm:$0xff]  ;;  %v11747_v54 = vld [vmem:[#allocation13_spill] sm:$0xff] }
0x167c   : > { %8614 = vtanh.f32 %v2957_v7  ;;  %v2877_v7 = vadd.f32 %v9936_v14, %v2796_v36  ;;  %v11744_v36 = vld [vmem:[#allocation10_spill] sm:$0xff] }
0x167d   : > { %8616 = vtanh.f32 %v2952_v34  ;;  %v11748_v34 = vld [vmem:[#allocation23_spill] sm:$0xff] }
0x167e   : > { %8618 = vtanh.f32 %v2947_v0  ;;  %v2876_v0 = vadd.f32 %v9929_v20, %v2790_v49  ;;  %v11743_v49 = vld [vmem:[#allocation9_spill] sm:$0xff] }
0x1680   : > { %8620 = vtanh.f32 %v2876_v0 }
0x1681   : > { %8622 = vtanh.f32 %v2877_v7  ;;  %v3524_v7 = vmul.f32 2.0, %v10217_v12  ;;  %v11752_v12 = vld [vmem:[#allocation25_spill] sm:$0xff] }
0x1687   : > { %v8613_v37 = vpop.eup %8612 }
0x1688   : > { %8173 = vmatprep.subr.mxu1 %v8613_v37 }
0x1689   : > { %v8615_v8 = vpop.eup %8614  ;;  %8174 = vmatpush3.msra.mxu1 %v8613_v37 }
0x168a   : > { %8175 = vmatprep.subr.mxu1 %v8615_v8  ;;  %v8617_v40 = vpop.eup %8616 }
0x168b   : > { %8176 = vmatpush3.msra.mxu1 %v8615_v8  ;;  %v8619_v30 = vpop.eup %8618 }
0x168c   : > { %8177 = vmatprep.subr.mxu1 %v8617_v40 }
0x168d   : > { %8178 = vmatpush3.msra.mxu1 %v8617_v40  ;;  %v8621_v40 = vpop.eup %8620 }
0x168e   : > { %8179 = vmatprep.subr.mxu1 %v8619_v30  ;;  %v8623_v50 = vpop.eup %8622 }
0x168f   : > { %8180 = vmatpush3.msra.mxu1 %v8619_v30  ;;  %v11749_v30 = vld [vmem:[#allocation6_spill] sm:$0xff] }
0x1690   : > { %8182 = vmatmul.mubr.msk.f32.vlgmr.msra.gmra.mxu1 %vm100_vm0, %v9912_v9  ;;  %3153 = vmatprep.subr.mxu1 %v9709_v13 }
0x1691   : > { %3154 = vmatpush1.msra.mxu1 %v9715_v15  ;;  %3193 = vmatprep.mubr.f32.mxu1 %v11680_v11 }
0x1692   : > { %3155 = vmatprep.subr.mxu1 %v9722_v17 }
0x1693   : > { %3156 = vmatpush1.msra.mxu1 %v9728_v10 }
0x1694   : > { %3157 = vmatprep.subr.mxu1 %v9734_v23 }
0x1695   : > { %3158 = vmatpush1.msra.mxu1 %v9740_v33 }
0x1696   : > { %3159 = vmatprep.subr.mxu1 %v9746_v24 }
0x1697   : > { %3160 = vmatpush1.msra.mxu1 %v9752_v35 }
0x1698   : > { %8184 = vmatprep.subr.mxu1 %v9758_v39 }
0x1750   : > { %v8183_v8 = vpop.f32.mrf.mxu1 }
0x1752   : > { %v3035_v37 = vpop.f32.mrf.mxu1 }
0x1753   : > { %3108 = vmatprep.mubr.f32.mxu0 %v3035_v37 }
0x1754   : > { %3109 = vmatmul.mubr.f32.vlgmr.msra.gmra.mxu0 %v8621_v40 }
0x1755   : > { %3113 = vmatprep.mubr.f32.mxu0 %v8183_v8  ;;  %7420 = vmatpush3.msra.mxu0 %v9943_v51 }
0x1756   : > { %7421 = vmatprep.subr.mxu0 %v9949_v52 }
0x1757   : > { %7422 = vmatpush3.msra.mxu0 %v9955_v55 }
0x1758   : > { %3114 = vmatmul.mubr.f32.gmra.mxu0 %v8623_v50  ;;  %7423 = vmatprep.subr.mxu0 %v9961_v56 }
0x1759   : > { %7424 = vmatpush3.msra.mxu0 %v9967_v57 }
0x175a   : > { %7425 = vmatprep.subr.mxu0 %v9973_v58 }
0x175b   : > { %7426 = vmatpush3.msra.mxu0 %v9979_v60 }
0x175c   : > { %7427 = vmatprep.subr.mxu0 %v9985_v61 }
0x175d   : > { %7428 = vmatpush3.msra.mxu0 %v9991_v1 }
0x175e   : > { %7429 = vmatprep.subr.mxu0 %v9997_v2 }
0x175f   : > { %7430 = vmatpush3.msra.mxu0 %v10003_v3 }
0x1760   : > { %7431 = vmatprep.subr.mxu0 %v10009_v4 }
0x1761   : > { %7432 = vmatpush3.msra.mxu0 %v10015_v5 }
0x1762   : > { %7433 = vmatprep.subr.mxu0 %v10021_v6 }
0x1763   : > { %7434 = vmatpush3.msra.mxu0 %v10027_v18 }
0x1764   : > { %7435 = vmatprep.subr.mxu0 %v10033_v27 }
0x1765   : > { %7436 = vmatpush3.msra.mxu0 %v10039_v28 }
0x1766   : > { %7437 = vmatprep.subr.mxu0 %v10045_v42 }
0x1767   : > { %7438 = vmatpush3.msra.mxu0 %v10051_v25 }
0x1768   : > { %7439 = vmatprep.subr.mxu0 %v10057_v45 }
0x1769   : > { %7440 = vmatpush3.msra.mxu0 %v10063_v26 }
0x176a   : > { %7441 = vmatprep.subr.mxu0 %v10069_v16 }
0x176b   : > { %7442 = vmatpush3.msra.mxu0 %v11734_v46 }
0x176c   : > { %7443 = vmatprep.subr.mxu0 %v11735_v47 }
0x176d   : > { %7444 = vmatpush3.msra.mxu0 %v11736_v44 }
0x176e   : > { %7445 = vmatprep.subr.mxu0 %v11743_v49  ;;  %v11750_v49 = vld [vmem:[#allocation24_spill] sm:$0xff] }
0x176f   : > { %7446 = vmatpush3.msra.mxu0 %v11744_v36  ;;  %v3526_v36 = vadd.f32 %v3524_v7, %v11750_v49  ;;  %v11755_v7 = vld [vmem:[#allocation17_spill] sm:$0xff] }
0x1770   : > { %7447 = vmatprep.subr.mxu0 %v11745_v29  ;;  %v3525_v29 = vmul.f32 2.0, %v10228_v48 }
0x1771   : > { %7448 = vmatpush3.msra.mxu0 %v11746_v43  ;;  %v11751_v43 = vld [vmem:[#allocation5_spill] sm:$0xff] }
0x1772   : > { %7449 = vmatprep.subr.mxu0 %v11747_v54 }
0x1773   : > { %7450 = vmatpush3.msra.mxu0 %v11748_v34 }
0x1774   : > { %7477 = vmatprep.subr.mxu0 %v11749_v30 }
0x1814   : > { %v7393_v0 = vpop.f32.mrf.mxu0 }
0x1816   : > { %v7394_v8 = vpop.f32.mrf.mxu0 }
0x1817   : > { %v7395_v37 = vadd.f32 %v7394_v8, %v7393_v0  ;;  %v3527_v0 = vadd.f32 %v3525_v29, %v11752_v12 }
0x1818   : > { %v7396_v40 = vpop.f32.mrf.mxu0 }
0x1819   : > { %v3111_v50 = vadd.f32 %v10214_v53, %v7395_v37 }
0x181a   : > { %v7397_v44 = vpop.f32.mrf.mxu0 }
0x181b   : > { %v3119_v47 = vmul.f32 %v3111_v50, %v11751_v43  ;;  %v3528_v54 = vmul.f32 2.0, %v3111_v50  ;;  %v7398_v46 = vadd.f32 %v7397_v44, %v7396_v40  ;;  %v11756_v40 = vld [vmem:[#allocation18_spill] sm:$0xff] }
0x181c   : > { %v11757_v50 = vld [vmem:[#allocation14_spill] sm:$0xff] }
0x181d   : > { %v3121_v34 = vadd.f32 %v3119_v47, %v9808_v59  ;;  %v3116_v30 = vadd.f32 %v10225_v22, %v7398_v46  ;;  %v10312_v16 = vadd.f32 %v3528_v54, %v3526_v36  ;;  %v11753_v46 = vld [vmem:[#allocation15_spill] sm:$0xff] }
0x181f   : > { %v3120_v8 = vmul.f32 %v3116_v30, %v11751_v43  ;;  %v3529_v37 = vmul.f32 2.0, %v3116_v30  ;;  %6896 = vmatmul.mubr.msk.f32.vlgmr.msra.gmra.mxu1 %vm100_vm0, %v3121_v34 }
0x1820   : > { %8185 = vmatpush3.msra.mxu1 %v9758_v39  ;;  %3199 = vmatprep.mubr.f32.mxu1 %v11680_v11 }
0x1821   : > { %8186 = vmatprep.subr.mxu1 %v9822_v63  ;;  %v3122_v44 = vadd.f32 %v3120_v8, %v9817_v62  ;;  %v10321_v47 = vadd.f32 %v3529_v37, %v3527_v0 }
0x1822   : > { %8187 = vmatpush3.msra.mxu1 %v9822_v63 }
0x1823   : > { %6897 = vmatmul.mubr.msk.f32.gmra.mxu1 %vm100_vm0, %v3122_v44  ;;  %8188 = vmatprep.subr.mxu1 %v9831_v21 }
0x1824   : > { %8189 = vmatpush3.msra.mxu1 %v9831_v21  ;;  %8192 = vmatprep.mubr.msk.f32.mxu1 %vm100_vm0, %v3121_v34  ;;  %v11754_v34 = vld [vmem:[#allocation16_spill] sm:$0xff] }
0x1825   : > { %8190 = vmatprep.subr.mxu1 %v9840_v19 }
0x1826   : > { %8191 = vmatpush3.msra.mxu1 %v9840_v19 }
0x1827   : > { %8193 = vmatmul.mubr.msk.f32.vlgmr.msra.gmra.mxu1 %vm100_vm0, %v3122_v44 }
0x1828   : > { %8203 = vmatprep.mubr.msk.f32.mxu1 %vm100_vm0, %v11753_v46 }
0x18df   : > { %v3195_v48 = vpop.f32.mrf.mxu1 }
0x18e1   : > { %v3197_v49 = vpop.f32.mrf.mxu1 }
0x18e3   : > { %v3201_v36 = vpop.f32.mrf.mxu1 }
0x18e5   : > { %v3203_v29 = vpop.f32.mrf.mxu1 }
0x18e7   : > { %v8194_v54 = vpop.f32.mrf.mxu1 }
0x18e8   : > { %8195 = vmatprep.subr.mxu1 %v8194_v54 }
0x18e9   : > { %v3272_v30 = vpop.f32.mrf.mxu1  ;;  %8196 = vmatpush3.msra.mxu1 %v8194_v54 }
0x18ea   : > { %8197 = vmatprep.subr.mxu1 %v3272_v30 }
0x18eb   : > { %8198 = vmatpush3.msra.mxu1 %v3272_v30 }
0x18ec   : > { %8199 = vmatprep.subr.mxu1 %v3203_v29 }
0x18ed   : > { %8200 = vmatpush3.msra.mxu1 %v3203_v29 }
0x18ee   : > { %8201 = vmatprep.subr.mxu1 %v3197_v49 }
0x18ef   : > { %8202 = vmatpush3.msra.mxu1 %v3197_v49 }
0x18f0   : > { %8204 = vmatmul.mubr.msk.f32.vlgmr.msra.gmra.mxu1 %vm100_vm0, %v11754_v34 }
0x18f1   : > { %8206 = vmatprep.mubr.msk.f32.mxu1 %vm100_vm0, %v11755_v7 }
0x18f4   : > { %8207 = vmatmul.mubr.msk.f32.gmra.mxu1 %vm100_vm0, %v11756_v40 }
0x18f5   : > { %8217 = vmatprep.mubr.msk.f32.mxu1 %vm100_vm0, %v11757_v50 }
0x19b0   : > { %v8205_v12 = vpop.f32.mrf.mxu1 }
0x19b1   : > { %v3357_v49 = vadd.f32 %v9894_v38, %v8205_v12  ;;  %v11765_v12 = vld [vmem:[#allocation12_spill] sm:$0xff] }
0x19b2   : > { %v3351_v0 = vpop.f32.mrf.mxu1 }
0x19b3   : > { %v3352_v54 = vadd.f32 %v9906_v31, %v3351_v0  ;;  %v11766_v0 = vld [vmem:[#allocation13_spill] sm:$0xff] }
0x19b4   : > { %v8208_v8 = vpop.f32.mrf.mxu1 }
0x19b5   : > { %v3367_v37 = vadd.f32 %v9888_v41, %v8208_v8 }
0x19b6   : > { %v3361_v44 = vpop.f32.mrf.mxu1 }
0x19b7   : > { %8624 = vtanh.f32 %v3367_v37  ;;  %v3362_v29 = vadd.f32 %v9900_v32, %v3361_v44  ;;  %v11767_v37 = vld [vmem:[#allocation23_spill] sm:$0xff]  ;;  %v11768_v44 = vld [vmem:[#allocation6_spill] sm:$0xff] }
0x19b9   : > { %8626 = vtanh.f32 %v3362_v29 }
0x19ba   : > { %8628 = vtanh.f32 %v3357_v49 }
0x19bb   : > { %8630 = vtanh.f32 %v3352_v54 }
0x19c4   : > { %v8625_v30 = vpop.eup %8624 }
0x19c5   : > { %8209 = vmatprep.subr.mxu1 %v8625_v30 }
0x19c6   : > { %v8627_v43 = vpop.eup %8626  ;;  %8210 = vmatpush3.msra.mxu1 %v8625_v30 }
0x19c7   : > { %8211 = vmatprep.subr.mxu1 %v8627_v43  ;;  %v8629_v50 = vpop.eup %8628 }
0x19c8   : > { %8212 = vmatpush3.msra.mxu1 %v8627_v43  ;;  %v8631_v8 = vpop.eup %8630 }
0x19c9   : > { %8213 = vmatprep.subr.mxu1 %v8629_v50 }
0x19ca   : > { %8214 = vmatpush3.msra.mxu1 %v8629_v50 }
0x19cb   : > { %8215 = vmatprep.subr.mxu1 %v8631_v8 }
0x19cc   : > { %8216 = vmatpush3.msra.mxu1 %v8631_v8 }
0x19cd   : > { %8218 = vmatmul.mubr.msk.f32.vlgmr.msra.gmra.mxu1 %vm100_vm0, %v9912_v9  ;;  %3568 = vmatprep.subr.mxu1 %v9709_v13  ;;  %v3281_v13 = vadd.f32 %v9929_v20, %v3195_v48  ;;  %v11763_v48 = vld [vmem:[#allocation10_spill] sm:$0xff] }
0x19ce   : > { %3569 = vmatpush1.msra.mxu1 %v9715_v15  ;;  %3608 = vmatprep.mubr.f32.mxu1 %v11680_v11  ;;  %v3282_v15 = vadd.f32 %v9936_v14, %v3201_v36  ;;  %v11764_v36 = vld [vmem:[#allocation11_spill] sm:$0xff] }
0x19cf   : > { %3570 = vmatprep.subr.mxu1 %v9722_v17  ;;  %8632 = vtanh.f32 %v3281_v13 }
0x19d0   : > { %3571 = vmatpush1.msra.mxu1 %v9728_v10  ;;  %8634 = vtanh.f32 %v3282_v15 }
0x19d1   : > { %3572 = vmatprep.subr.mxu1 %v9734_v23  ;;  %v11758_v23 = vld [vmem:[#allocation21_spill] sm:$0xff] }
0x19d2   : > { %3573 = vmatpush1.msra.mxu1 %v9740_v33  ;;  %v11759_v33 = vld [vmem:[#allocation22_spill] sm:$0xff] }
0x19d3   : > { %3574 = vmatprep.subr.mxu1 %v9746_v24  ;;  %v11760_v24 = vld [vmem:[#allocation7_spill] sm:$0xff] }
0x19d4   : > { %3575 = vmatpush1.msra.mxu1 %v9752_v35  ;;  %v11761_v35 = vld [vmem:[#allocation8_spill] sm:$0xff] }
0x19d5   : > { %8220 = vmatprep.subr.mxu1 %v9758_v39  ;;  %v11762_v39 = vld [vmem:[#allocation9_spill] sm:$0xff] }
0x19dc   : > { %v8633_v50 = vpop.eup %8632 }
0x19dd   : > { %v8635_v10 = vpop.eup %8634 }
0x1a8d   : > { %v8219_v43 = vpop.f32.mrf.mxu1 }
0x1a8f   : > { %v3440_v17 = vpop.f32.mrf.mxu1 }
0x1a90   : > { %3513 = vmatprep.mubr.f32.mxu0 %v3440_v17  ;;  %v11769_v17 = vld [vmem:[#allocation19_spill] sm:$0xff] }
0x1a91   : > { %3514 = vmatmul.mubr.f32.vlgmr.msra.gmra.mxu0 %v8633_v50 }
0x1a92   : > { %3518 = vmatprep.mubr.f32.mxu0 %v8219_v43  ;;  %7478 = vmatpush3.msra.mxu0 %v9943_v51 }
0x1a93   : > { %7479 = vmatprep.subr.mxu0 %v9949_v52 }
0x1a94   : > { %7480 = vmatpush3.msra.mxu0 %v9955_v55 }
0x1a95   : > { %3519 = vmatmul.mubr.f32.gmra.mxu0 %v8635_v10  ;;  %7481 = vmatprep.subr.mxu0 %v9961_v56 }
0x1a96   : > { %7482 = vmatpush3.msra.mxu0 %v9967_v57 }
0x1a97   : > { %7483 = vmatprep.subr.mxu0 %v9973_v58 }
0x1a98   : > { %7484 = vmatpush3.msra.mxu0 %v9979_v60 }
0x1a99   : > { %7485 = vmatprep.subr.mxu0 %v9985_v61 }
0x1a9a   : > { %7486 = vmatpush3.msra.mxu0 %v9991_v1 }
0x1a9b   : > { %7487 = vmatprep.subr.mxu0 %v9997_v2 }
0x1a9c   : > { %7488 = vmatpush3.msra.mxu0 %v10003_v3 }
0x1a9d   : > { %7489 = vmatprep.subr.mxu0 %v10009_v4 }
0x1a9e   : > { %7490 = vmatpush3.msra.mxu0 %v10015_v5 }
0x1a9f   : > { %7491 = vmatprep.subr.mxu0 %v10021_v6 }
0x1aa0   : > { %7492 = vmatpush3.msra.mxu0 %v10027_v18 }
0x1aa1   : > { %7493 = vmatprep.subr.mxu0 %v10033_v27 }
0x1aa2   : > { %7494 = vmatpush3.msra.mxu0 %v10039_v28 }
0x1aa3   : > { %7495 = vmatprep.subr.mxu0 %v10045_v42 }
0x1aa4   : > { %7496 = vmatpush3.msra.mxu0 %v10051_v25 }
0x1aa5   : > { %7497 = vmatprep.subr.mxu0 %v10057_v45 }
0x1aa6   : > { %7498 = vmatpush3.msra.mxu0 %v10063_v26 }
0x1aa7   : > { %7499 = vmatprep.subr.mxu0 %v11758_v23 }
0x1aa8   : > { %7500 = vmatpush3.msra.mxu0 %v11759_v33 }
0x1aa9   : > { %7501 = vmatprep.subr.mxu0 %v11760_v24 }
0x1aaa   : > { %7502 = vmatpush3.msra.mxu0 %v11761_v35 }
0x1aab   : > { %7503 = vmatprep.subr.mxu0 %v11762_v39 }
0x1aac   : > { %7504 = vmatpush3.msra.mxu0 %v11763_v48 }
0x1aad   : > { %7505 = vmatprep.subr.mxu0 %v11764_v36 }
0x1aae   : > { %7506 = vmatpush3.msra.mxu0 %v11765_v12 }
0x1aaf   : > { %7507 = vmatprep.subr.mxu0 %v11766_v0 }
0x1ab0   : > { %7508 = vmatpush3.msra.mxu0 %v11767_v37 }
0x1ab1   : > { %7535 = vmatprep.subr.mxu0 %v11768_v44 }
0x1b51   : > { %v7451_v49 = vpop.f32.mrf.mxu0 }
0x1b53   : > { %v7452_v29 = vpop.f32.mrf.mxu0 }
0x1b54   : > { %v7453_v54 = vadd.f32 %v7452_v29, %v7451_v49  ;;  %v10405_v49 = vld [vmem:[%s11549_s6 + $0x58] sm:$0xff] }
0x1b55   : > { %v7454_v30 = vpop.f32.mrf.mxu0 }
0x1b56   : > { %v3516_v8 = vadd.f32 %v10214_v53, %v7453_v54 }
0x1b57   : > { %v7455_v13 = vpop.f32.mrf.mxu0 }
0x1b58   : > { %v3532_v15 = vadd.f32 %v10312_v16, %v3516_v8  ;;  %v7456_v43 = vadd.f32 %v7455_v13, %v7454_v30 }
0x1b5a   : > { %v3534_v50 = vmul.f32 %v3532_v15, %v11769_v17  ;;  %v3521_v10 = vadd.f32 %v10225_v22, %v7456_v43 }
0x1b5c   : > { %v10396_v0 = vadd.f32 %v3534_v50, %v9808_v59  ;;  %v3533_v37 = vadd.f32 %v10321_v47, %v3521_v10  ;;  %v10468_v50 = vld [vmem:[%s11549_s6 + $0x20] sm:$0xff]  ;;  %v10474_v10 = vld [vmem:[%s11549_s6 + $0x18] sm:$0xff] }
0x1b5e   : > { %v3535_v44 = vmul.f32 %v3533_v37, %v11769_v17  ;;  %6906 = vmatmul.mubr.msk.f32.vlgmr.msra.gmra.mxu1 %vm100_vm0, %v10396_v0  ;;  %v10845_v17 = vld [vmem:[%s11554_s11] sm:$0xff] }
0x1b5f   : > { %8221 = vmatpush3.msra.mxu1 %v10405_v49  ;;  %3614 = vmatprep.mubr.f32.mxu1 %v11680_v11 }
0x1b60   : > { %v10410_v16 = vadd.f32 %v3535_v44, %v9817_v62  ;;  %8222 = vmatprep.subr.mxu1 %v9822_v63  ;;  %v10480_v44 = vld [vmem:[%s11549_s6 + $0x8] sm:$0xff] }
0x1b61   : > { %8223 = vmatpush3.msra.mxu1 %v9822_v63 }
0x1b62   : > { %6907 = vmatmul.mubr.msk.f32.gmra.mxu1 %vm100_vm0, %v10410_v16  ;;  %8224 = vmatprep.subr.mxu1 %v9831_v21 }
0x1b63   : > { %8225 = vmatpush3.msra.mxu1 %v9831_v21  ;;  %8228 = vmatprep.mubr.msk.f32.mxu1 %vm100_vm0, %v10396_v0 }
0x1b64   : > { %8226 = vmatprep.subr.mxu1 %v9840_v19 }
0x1b65   : > { %8227 = vmatpush3.msra.mxu1 %v9840_v19  ;;  %v11770_v19 = vld [vmem:[#allocation14_spill] sm:$0xff] }
0x1b66   : > { %8229 = vmatmul.mubr.msk.f32.vlgmr.msra.gmra.mxu1 %vm100_vm0, %v10410_v16  ;;  %11789 = vst [vmem:[#allocation14_spill] sm:$0xff] %v10845_v17 }
0x1b67   : > { %8239 = vmatprep.mubr.msk.f32.mxu1 %vm100_vm0, %v11753_v46 }
0x1c1e   : > { %v3610_v59 = vpop.f32.mrf.mxu1 }
0x1c20   : > { %v3612_v62 = vpop.f32.mrf.mxu1 }
0x1c22   : > { %v3616_v63 = vpop.f32.mrf.mxu1 }
0x1c24   : > { %v3618_v47 = vpop.f32.mrf.mxu1 }
0x1c26   : > { %v8230_v37 = vpop.f32.mrf.mxu1 }
0x1c27   : > { %8231 = vmatprep.subr.mxu1 %v8230_v37 }
0x1c28   : > { %v3687_v21 = vpop.f32.mrf.mxu1  ;;  %8232 = vmatpush3.msra.mxu1 %v8230_v37  ;;  %v3697_v37 = vadd.f32 %v9936_v14, %v3616_v63  ;;  %v11772_v14 = vld [vmem:[#allocation23_spill] sm:$0xff] }
0x1c29   : > { %8233 = vmatprep.subr.mxu1 %v3687_v21 }
0x1c2a   : > { %8234 = vmatpush3.msra.mxu1 %v3687_v21 }
0x1c2b   : > { %8235 = vmatprep.subr.mxu1 %v3618_v47 }
0x1c2c   : > { %8236 = vmatpush3.msra.mxu1 %v3618_v47  ;;  %v3696_v47 = vadd.f32 %v9929_v20, %v3610_v59  ;;  %v11771_v20 = vld [vmem:[#allocation13_spill] sm:$0xff] }
0x1c2d   : > { %8237 = vmatprep.subr.mxu1 %v3612_v62 }
0x1c2e   : > { %8238 = vmatpush3.msra.mxu1 %v3612_v62  ;;  %v10486_v62 = vld [vmem:[%s11549_s6] sm:$0xff] }
0x1c2f   : > { %8240 = vmatmul.mubr.msk.f32.vlgmr.msra.gmra.mxu1 %vm100_vm0, %v11754_v34 }
0x1c30   : > { %8242 = vmatprep.mubr.msk.f32.mxu1 %vm100_vm0, %v11755_v7 }
0x1c33   : > { %8243 = vmatmul.mubr.msk.f32.gmra.mxu1 %vm100_vm0, %v11756_v40 }
0x1c34   : > { %8253 = vmatprep.mubr.msk.f32.mxu1 %vm100_vm0, %v11770_v19 }
0x1cef   : > { %v8241_v46 = vpop.f32.mrf.mxu1 }
0x1cf0   : > { %v3772_v13 = vadd.f32 %v9894_v38, %v8241_v46  ;;  %v10443_v38 = vld [vmem:[%s11549_s6 + $0x50] sm:$0xff] }
0x1cf1   : > { %v3766_v29 = vpop.f32.mrf.mxu1 }
0x1cf2   : > { %v3767_v15 = vadd.f32 %v9906_v31, %v3766_v29  ;;  %v10456_v31 = vld [vmem:[%s11549_s6 + $0x38] sm:$0xff] }
0x1cf3   : > { %v8244_v54 = vpop.f32.mrf.mxu1 }
0x1cf4   : > { %v3782_v30 = vadd.f32 %v9888_v41, %v8244_v54  ;;  %v10610_v54 = vld [vmem:[%s11551_s8 + $0x18] sm:$0xff] }
0x1cf5   : > { %v3776_v8 = vpop.f32.mrf.mxu1 }
0x1cf6   : > { %8636 = vtanh.f32 %v3782_v30  ;;  %v3777_v34 = vadd.f32 %v9900_v32, %v3776_v8  ;;  %v10449_v32 = vld [vmem:[%s11549_s6 + $0x48] sm:$0xff] }
0x1cf8   : > { %8638 = vtanh.f32 %v3777_v34 }
0x1cf9   : > { %8640 = vtanh.f32 %v3772_v13  ;;  %v10616_v13 = vld [vmem:[%s11551_s8 + $0x8] sm:$0xff] }
0x1cfa   : > { %8642 = vtanh.f32 %v3767_v15  ;;  %v10622_v15 = vld [vmem:[%s11551_s8 + $0x10] sm:$0xff] }
0x1cfb   : > { %8644 = vtanh.f32 %v3696_v47 }
0x1cfc   : > { %8646 = vtanh.f32 %v3697_v37 }
0x1d03   : > { %v8637_v7 = vpop.eup %8636 }
0x1d04   : > { %8245 = vmatprep.subr.mxu1 %v8637_v7 }
0x1d05   : > { %v8639_v40 = vpop.eup %8638  ;;  %8246 = vmatpush3.msra.mxu1 %v8637_v7 }
0x1d06   : > { %8247 = vmatprep.subr.mxu1 %v8639_v40  ;;  %v8641_v43 = vpop.eup %8640 }
0x1d07   : > { %8248 = vmatpush3.msra.mxu1 %v8639_v40  ;;  %v8643_v41 = vpop.eup %8642  ;;  %v10628_v40 = vld [vmem:[%s11551_s8] sm:$0xff] }
0x1d08   : > { %8249 = vmatprep.subr.mxu1 %v8641_v43  ;;  %v8645_v46 = vpop.eup %8644 }
0x1d09   : > { %8250 = vmatpush3.msra.mxu1 %v8641_v43  ;;  %v8647_v29 = vpop.eup %8646 }
0x1d0a   : > { %8251 = vmatprep.subr.mxu1 %v8643_v41 }
0x1d0b   : > { %8252 = vmatpush3.msra.mxu1 %v8643_v41 }
0x1d0c   : > { %8254 = vmatmul.mubr.msk.f32.vlgmr.msra.gmra.mxu1 %vm100_vm0, %v9912_v9  ;;  %3973 = vmatprep.subr.mxu1 %v10443_v38  ;;  %v10462_v9 = vld [vmem:[%s11549_s6 + $0x30] sm:$0xff] }
0x1d0d   : > { %3974 = vmatpush1.msra.mxu1 %v10449_v32  ;;  %4013 = vmatprep.mubr.f32.mxu1 %v11680_v11 }
0x1d0e   : > { %3975 = vmatprep.subr.mxu1 %v10456_v31 }
0x1d0f   : > { %3976 = vmatpush1.msra.mxu1 %v10462_v9 }
0x1d10   : > { %3977 = vmatprep.subr.mxu1 %v10468_v50 }
0x1d11   : > { %3978 = vmatpush1.msra.mxu1 %v10474_v10 }
0x1d12   : > { %3979 = vmatprep.subr.mxu1 %v10480_v44 }
0x1d13   : > { %3980 = vmatpush1.msra.mxu1 %v10486_v62 }
0x1d14   : > { %8256 = vmatprep.subr.mxu1 %v10405_v49 }
0x1dcc   : > { %v8255_v21 = vpop.f32.mrf.mxu1 }
0x1dce   : > { %v3855_v19 = vpop.f32.mrf.mxu1 }
0x1dcf   : > { %3928 = vmatprep.mubr.f32.mxu0 %v3855_v19  ;;  %v10634_v19 = vld [vmem:[%s11553_s10 + $0x8] sm:$0xff] }
0x1dd0   : > { %3929 = vmatmul.mubr.f32.vlgmr.msra.gmra.mxu0 %v8645_v46  ;;  %v10651_v46 = vld [vmem:[%s11550_s7] sm:$0xff] }
0x1dd1   : > { %3933 = vmatprep.mubr.f32.mxu0 %v8255_v21  ;;  %7536 = vmatpush3.msra.mxu0 %v9943_v51  ;;  %v10526_v51 = vld [vmem:[%s11554_s11 + $0xf8] sm:$0xff] }
0x1dd2   : > { %7537 = vmatprep.subr.mxu0 %v9949_v52  ;;  %11773 = vst [vmem:[#allocation24_spill] sm:$0xff] %v10526_v51 }
0x1dd3   : > { %7538 = vmatpush3.msra.mxu0 %v9955_v55 }
0x1dd4   : > { %3934 = vmatmul.mubr.f32.gmra.mxu0 %v8647_v29  ;;  %7539 = vmatprep.subr.mxu0 %v9961_v56 }
0x1dd5   : > { %7540 = vmatpush3.msra.mxu0 %v9967_v57 }
0x1dd6   : > { %7541 = vmatprep.subr.mxu0 %v9973_v58 }
0x1dd7   : > { %7542 = vmatpush3.msra.mxu0 %v9979_v60 }
0x1dd8   : > { %7543 = vmatprep.subr.mxu0 %v9985_v61  ;;  %v11775_v61 = vld [vmem:[#allocation20_spill] sm:$0xff] }
0x1dd9   : > { %7544 = vmatpush3.msra.mxu0 %v9991_v1 }
0x1dda   : > { %7545 = vmatprep.subr.mxu0 %v9997_v2 }
0x1ddb   : > { %7546 = vmatpush3.msra.mxu0 %v10003_v3 }
0x1ddc   : > { %7547 = vmatprep.subr.mxu0 %v10009_v4 }
0x1ddd   : > { %7548 = vmatpush3.msra.mxu0 %v10015_v5 }
0x1dde   : > { %7549 = vmatprep.subr.mxu0 %v10021_v6  ;;  %v10546_v6 = vld [vmem:[%s11549_s6 + $0x40] sm:$0xff] }
0x1ddf   : > { %7550 = vmatpush3.msra.mxu0 %v10027_v18 }
0x1de0   : > { %7551 = vmatprep.subr.mxu0 %v10033_v27  ;;  %v10555_v27 = vld [vmem:[%s11549_s6 + $0x28] sm:$0xff] }
0x1de1   : > { %7552 = vmatpush3.msra.mxu0 %v10039_v28  ;;  %v10563_v28 = vld [vmem:[%s11549_s6 + $0x10] sm:$0xff] }
0x1de2   : > { %7553 = vmatprep.subr.mxu0 %v10045_v42  ;;  %v10571_v42 = vld [vmem:[%s11552_s9] sm:$0xff] }
0x1de3   : > { %7554 = vmatpush3.msra.mxu0 %v10051_v25 }
0x1de4   : > { %7555 = vmatprep.subr.mxu0 %v10057_v45 }
0x1de5   : > { %7556 = vmatpush3.msra.mxu0 %v10063_v26 }
0x1de6   : > { %7557 = vmatprep.subr.mxu0 %v11758_v23 }
0x1de7   : > { %7558 = vmatpush3.msra.mxu0 %v11759_v33 }
0x1de8   : > { %7559 = vmatprep.subr.mxu0 %v11760_v24 }
0x1de9   : > { %7560 = vmatpush3.msra.mxu0 %v11761_v35  ;;  %v10582_v35 = vld [vmem:[%s11552_s9 + $0x8] sm:$0xff] }
0x1dea   : > { %7561 = vmatprep.subr.mxu0 %v11762_v39  ;;  %v10589_v39 = vld [vmem:[%s11552_s9 + $0x10] sm:$0xff] }
0x1deb   : > { %7562 = vmatpush3.msra.mxu0 %v11763_v48  ;;  %v10596_v48 = vld [vmem:[%s11552_s9 + $0x18] sm:$0xff] }
0x1dec   : > { %7563 = vmatprep.subr.mxu0 %v11764_v36  ;;  %v10603_v36 = vld [vmem:[%s11553_s10] sm:$0xff] }
0x1ded   : > { %7564 = vmatpush3.msra.mxu0 %v11765_v12  ;;  %11777 = vst [vmem:[#allocation16_spill] sm:$0xff] %v10603_v36 }
0x1dee   : > { %7565 = vmatprep.subr.mxu0 %v11771_v20  ;;  %v10658_v20 = vld [vmem:[%s11550_s7 + $0x8] sm:$0xff] }
0x1def   : > { %7566 = vmatpush3.msra.mxu0 %v11772_v14 }
0x1df0   : > { %7593 = vmatprep.subr.mxu0 %v10526_v51 }
0x1e90   : > { %v7509_v52 = vpop.f32.mrf.mxu0 }
0x1e92   : > { %v7510_v55 = vpop.f32.mrf.mxu0 }
0x1e93   : > { %v7511_v56 = vadd.f32 %v7510_v55, %v7509_v52 }
0x1e94   : > { %v7512_v57 = vpop.f32.mrf.mxu0 }
0x1e95   : > { %v10530_v58 = vadd.f32 %v10214_v53, %v7511_v56 }
0x1e96   : > { %v7513_v60 = vpop.f32.mrf.mxu0 }
0x1e97   : > { %11774 = vst [vmem:[#allocation25_spill] sm:$0xff] %v10530_v58  ;;  %v3939_v1 = vmul.f32 %v10530_v58, %v11775_v61  ;;  %v7514_v2 = vadd.f32 %v7513_v60, %v7512_v57  ;;  %v10665_v57 = vld [vmem:[%s11554_s11 + $0x78] sm:$0xff]  ;;  %v10671_v60 = vld [vmem:[%s11554_s11 + $0xf0] sm:$0xff] }
0x1e99   : > { %v3941_v3 = vadd.f32 %v3939_v1, %v10396_v0  ;;  %v10536_v4 = vadd.f32 %v10225_v22, %v7514_v2  ;;  %v10677_v2 = vld [vmem:[%s11554_s11 + $0x70] sm:$0xff] }
0x1e9b   : > { %11776 = vst [vmem:[#allocation15_spill] sm:$0xff] %v10536_v4  ;;  %v3940_v5 = vmul.f32 %v10536_v4, %v11775_v61  ;;  %6916 = vmatmul.mubr.msk.f32.vlgmr.msra.gmra.mxu1 %vm100_vm0, %v3941_v3 }
0x1e9c   : > { %8257 = vmatpush3.msra.mxu1 %v10405_v49  ;;  %4019 = vmatprep.mubr.f32.mxu1 %v11680_v11 }
0x1e9d   : > { %8258 = vmatprep.subr.mxu1 %v10546_v6  ;;  %v3942_v18 = vadd.f32 %v3940_v5, %v10410_v16  ;;  %v10689_v5 = vld [vmem:[%s11554_s11 + $0x68] sm:$0xff] }
0x1e9e   : > { %8259 = vmatpush3.msra.mxu1 %v10546_v6 }
0x1e9f   : > { %6917 = vmatmul.mubr.msk.f32.gmra.mxu1 %vm100_vm0, %v3942_v18  ;;  %8260 = vmatprep.subr.mxu1 %v10555_v27 }
0x1ea0   : > { %8261 = vmatpush3.msra.mxu1 %v10555_v27  ;;  %8264 = vmatprep.mubr.msk.f32.mxu1 %vm100_vm0, %v3941_v3  ;;  %v10683_v3 = vld [vmem:[%s11554_s11 + $0xe8] sm:$0xff] }
0x1ea1   : > { %8262 = vmatprep.subr.mxu1 %v10563_v28 }
0x1ea2   : > { %8263 = vmatpush3.msra.mxu1 %v10563_v28 }
0x1ea3   : > { %8265 = vmatmul.mubr.msk.f32.vlgmr.msra.gmra.mxu1 %vm100_vm0, %v3942_v18  ;;  %v10695_v18 = vld [vmem:[%s11554_s11 + $0xe0] sm:$0xff] }
0x1ea4   : > { %8275 = vmatprep.mubr.msk.f32.mxu1 %vm100_vm0, %v10571_v42 }
0x1f5b   : > { %v10575_v25 = vpop.f32.mrf.mxu1 }
0x1f5c   : > { %v4101_v29 = vadd.f32 %v10651_v46, %v10575_v25  ;;  %v10701_v25 = vld [vmem:[%s11554_s11 + $0x60] sm:$0xff] }
0x1f5d   : > { %v4017_v45 = vpop.f32.mrf.mxu1 }
0x1f5f   : > { %v10577_v26 = vpop.f32.mrf.mxu1 }
0x1f60   : > { %v4102_v14 = vadd.f32 %v10658_v20, %v10577_v26  ;;  %v10713_v26 = vld [vmem:[%s11554_s11 + $0x58] sm:$0xff] }
0x1f61   : > { %v4023_v23 = vpop.f32.mrf.mxu1 }
0x1f63   : > { %v8266_v33 = vpop.f32.mrf.mxu1 }
0x1f64   : > { %8267 = vmatprep.subr.mxu1 %v8266_v33 }
0x1f65   : > { %v4092_v24 = vpop.f32.mrf.mxu1  ;;  %8268 = vmatpush3.msra.mxu1 %v8266_v33  ;;  %v10725_v33 = vld [vmem:[%s11554_s11 + $0x50] sm:$0xff] }
0x1f66   : > { %8269 = vmatprep.subr.mxu1 %v4092_v24 }
0x1f67   : > { %8270 = vmatpush3.msra.mxu1 %v4092_v24  ;;  %v10731_v24 = vld [vmem:[%s11554_s11 + $0xc8] sm:$0xff] }
0x1f68   : > { %8271 = vmatprep.subr.mxu1 %v4023_v23 }
0x1f69   : > { %8272 = vmatpush3.msra.mxu1 %v4023_v23  ;;  %v10719_v23 = vld [vmem:[%s11554_s11 + $0xd0] sm:$0xff] }
0x1f6a   : > { %8273 = vmatprep.subr.mxu1 %v4017_v45 }
0x1f6b   : > { %8274 = vmatpush3.msra.mxu1 %v4017_v45  ;;  %v10707_v45 = vld [vmem:[%s11554_s11 + $0xd8] sm:$0xff] }
0x1f6c   : > { %8276 = vmatmul.mubr.msk.f32.vlgmr.msra.gmra.mxu1 %vm100_vm0, %v10582_v35 }
0x1f6d   : > { %8278 = vmatprep.mubr.msk.f32.mxu1 %vm100_vm0, %v10589_v39 }
0x1f70   : > { %8279 = vmatmul.mubr.msk.f32.gmra.mxu1 %vm100_vm0, %v10596_v48 }
0x1f71   : > { %8289 = vmatprep.mubr.msk.f32.mxu1 %vm100_vm0, %v10603_v36 }
0x202c   : > { %v8277_v12 = vpop.f32.mrf.mxu1 }
0x202d   : > { %v4177_v34 = vadd.f32 %v10616_v13, %v8277_v12  ;;  %v10737_v12 = vld [vmem:[%s11554_s11 + $0x48] sm:$0xff] }
0x202e   : > { %v4171_v59 = vpop.f32.mrf.mxu1 }
0x202f   : > { %v4172_v43 = vadd.f32 %v10628_v40, %v4171_v59  ;;  %v10743_v59 = vld [vmem:[%s11554_s11 + $0xc0] sm:$0xff] }
0x2030   : > { %v8280_v63 = vpop.f32.mrf.mxu1 }
0x2031   : > { %v4187_v30 = vadd.f32 %v10610_v54, %v8280_v63  ;;  %v10749_v63 = vld [vmem:[%s11554_s11 + $0x40] sm:$0xff] }
0x2032   : > { %v4181_v8 = vpop.f32.mrf.mxu1 }
0x2033   : > { %8648 = vtanh.f32 %v4187_v30  ;;  %v4182_v7 = vadd.f32 %v10622_v15, %v4181_v8  ;;  %v10755_v30 = vld [vmem:[%s11554_s11 + $0xb8] sm:$0xff] }
0x2034   : > { %v10761_v8 = vld [vmem:[%s11554_s11 + $0x38] sm:$0xff] }
0x2035   : > { %8650 = vtanh.f32 %v4182_v7  ;;  %v10773_v7 = vld [vmem:[%s11554_s11 + $0x30] sm:$0xff] }
0x2036   : > { %8652 = vtanh.f32 %v4177_v34  ;;  %v10767_v34 = vld [vmem:[%s11554_s11 + $0xb0] sm:$0xff] }
0x2037   : > { %8654 = vtanh.f32 %v4172_v43  ;;  %v10779_v43 = vld [vmem:[%s11554_s11 + $0xa8] sm:$0xff] }
0x2038   : > { %8656 = vtanh.f32 %v4101_v29  ;;  %11778 = vst [vmem:[#allocation17_spill] sm:$0xff] %v10779_v43  ;;  %v10809_v29 = vld [vmem:[%s11554_s11 + $0x18] sm:$0xff] }
0x2039   : > { %8658 = vtanh.f32 %v4102_v14  ;;  %11783 = vst [vmem:[#allocation8_spill] sm:$0xff] %v10809_v29  ;;  %v10815_v14 = vld [vmem:[%s11554_s11 + $0x90] sm:$0xff] }
0x203a   : > { %11784 = vst [vmem:[#allocation9_spill] sm:$0xff] %v10815_v14 }
0x2040   : > { %v8649_v41 = vpop.eup %8648 }
0x2041   : > { %8281 = vmatprep.subr.mxu1 %v8649_v41 }
0x2042   : > { %v8651_v47 = vpop.eup %8650  ;;  %8282 = vmatpush3.msra.mxu1 %v8649_v41  ;;  %v10785_v41 = vld [vmem:[%s11554_s11 + $0x28] sm:$0xff] }
0x2043   : > { %8283 = vmatprep.subr.mxu1 %v8651_v47  ;;  %v8653_v37 = vpop.eup %8652  ;;  %11779 = vst [vmem:[#allocation18_spill] sm:$0xff] %v10785_v41 }
0x2044   : > { %8284 = vmatpush3.msra.mxu1 %v8651_v47  ;;  %v8655_v21 = vpop.eup %8654  ;;  %v10791_v47 = vld [vmem:[%s11554_s11 + $0xa0] sm:$0xff] }
0x2045   : > { %8285 = vmatprep.subr.mxu1 %v8653_v37  ;;  %v8657_v56 = vpop.eup %8656  ;;  %11780 = vst [vmem:[#allocation21_spill] sm:$0xff] %v10791_v47 }
0x2046   : > { %8286 = vmatpush3.msra.mxu1 %v8653_v37  ;;  %v8659_v1 = vpop.eup %8658  ;;  %v10797_v37 = vld [vmem:[%s11554_s11 + $0x20] sm:$0xff] }
0x2047   : > { %8287 = vmatprep.subr.mxu1 %v8655_v21  ;;  %11781 = vst [vmem:[#allocation22_spill] sm:$0xff] %v10797_v37 }
0x2048   : > { %8288 = vmatpush3.msra.mxu1 %v8655_v21  ;;  %v10803_v21 = vld [vmem:[%s11554_s11 + $0x98] sm:$0xff] }
0x2049   : > { %8290 = vmatmul.mubr.msk.f32.vlgmr.msra.gmra.mxu1 %vm100_vm0, %v10634_v19  ;;  %4378 = vmatprep.subr.mxu1 %v10443_v38  ;;  %11782 = vst [vmem:[#allocation7_spill] sm:$0xff] %v10803_v21 }
0x204a   : > { %4379 = vmatpush1.msra.mxu1 %v10449_v32  ;;  %4418 = vmatprep.mubr.f32.mxu1 %v11680_v11 }
0x204b   : > { %4380 = vmatprep.subr.mxu1 %v10456_v31 }
0x204c   : > { %4381 = vmatpush1.msra.mxu1 %v10462_v9 }
0x204d   : > { %4382 = vmatprep.subr.mxu1 %v10468_v50 }
0x204e   : > { %4383 = vmatpush1.msra.mxu1 %v10474_v10 }
0x204f   : > { %4384 = vmatprep.subr.mxu1 %v10480_v44 }
0x2050   : > { %4385 = vmatpush1.msra.mxu1 %v10486_v62 }
0x2051   : > { %8292 = vmatprep.subr.mxu1 %v10405_v49 }
0x2109   : > { %v8291_v52 = vpop.f32.mrf.mxu1 }
0x210b   : > { %v4260_v55 = vpop.f32.mrf.mxu1 }
0x210c   : > { %4333 = vmatprep.mubr.f32.mxu0 %v4260_v55  ;;  %v10827_v55 = vld [vmem:[%s11554_s11 + $0x88] sm:$0xff] }
0x210d   : > { %4334 = vmatmul.mubr.f32.vlgmr.msra.gmra.mxu0 %v8657_v56  ;;  %11786 = vst [vmem:[#allocation11_spill] sm:$0xff] %v10827_v55  ;;  %v10833_v56 = vld [vmem:[%s11554_s11 + $0x8] sm:$0xff] }
0x210e   : > { %4338 = vmatprep.mubr.f32.mxu0 %v8291_v52  ;;  %7594 = vmatpush3.msra.mxu0 %v10665_v57  ;;  %v10821_v52 = vld [vmem:[%s11554_s11 + $0x10] sm:$0xff]  ;;  %11787 = vst [vmem:[#allocation12_spill] sm:$0xff] %v10833_v56 }
0x210f   : > { %7595 = vmatprep.subr.mxu0 %v10671_v60  ;;  %11785 = vst [vmem:[#allocation10_spill] sm:$0xff] %v10821_v52 }
0x2110   : > { %7596 = vmatpush3.msra.mxu0 %v10677_v2 }
0x2111   : > { %4339 = vmatmul.mubr.f32.gmra.mxu0 %v8659_v1  ;;  %7597 = vmatprep.subr.mxu0 %v10683_v3  ;;  %v10839_v1 = vld [vmem:[%s11554_s11 + $0x80] sm:$0xff] }
0x2112   : > { %7598 = vmatpush3.msra.mxu0 %v10689_v5  ;;  %11788 = vst [vmem:[#allocation6_spill] sm:$0xff] %v10839_v1 }
0x2113   : > { %7599 = vmatprep.subr.mxu0 %v10695_v18 }
0x2114   : > { %7600 = vmatpush3.msra.mxu0 %v10701_v25 }
0x2115   : > { %7601 = vmatprep.subr.mxu0 %v10707_v45 }
0x2116   : > { %7602 = vmatpush3.msra.mxu0 %v10713_v26 }
0x2117   : > { %7603 = vmatprep.subr.mxu0 %v10719_v23 }
0x2118   : > { %7604 = vmatpush3.msra.mxu0 %v10725_v33 }
0x2119   : > { %7605 = vmatprep.subr.mxu0 %v10731_v24 }
0x211a   : > { %7606 = vmatpush3.msra.mxu0 %v10737_v12 }
0x211b   : > { %7607 = vmatprep.subr.mxu0 %v10743_v59 }
0x211c   : > { %7608 = vmatpush3.msra.mxu0 %v10749_v63 }
0x211d   : > { %7609 = vmatprep.subr.mxu0 %v10755_v30 }
0x211e   : > { %7610 = vmatpush3.msra.mxu0 %v10761_v8 }
0x211f   : > { %7611 = vmatprep.subr.mxu0 %v10767_v34 }
0x2120   : > { %7612 = vmatpush3.msra.mxu0 %v10773_v7 }
0x2121   : > { %7613 = vmatprep.subr.mxu0 %v10779_v43 }
0x2122   : > { %7614 = vmatpush3.msra.mxu0 %v10785_v41 }
0x2123   : > { %7615 = vmatprep.subr.mxu0 %v10791_v47 }
0x2124   : > { %7616 = vmatpush3.msra.mxu0 %v10797_v37 }
0x2125   : > { %7617 = vmatprep.subr.mxu0 %v10803_v21 }
0x2126   : > { %7618 = vmatpush3.msra.mxu0 %v10809_v29 }
0x2127   : > { %7619 = vmatprep.subr.mxu0 %v10815_v14 }
0x2128   : > { %7620 = vmatpush3.msra.mxu0 %v10821_v52 }
0x2129   : > { %7621 = vmatprep.subr.mxu0 %v10827_v55 }
0x212a   : > { %7622 = vmatpush3.msra.mxu0 %v10833_v56 }
0x212b   : > { %7623 = vmatprep.subr.mxu0 %v10839_v1 }
0x212c   : > { %7624 = vmatpush3.msra.mxu0 %v10845_v17 }
0x212d   : > { %7651 = vmatprep.subr.mxu0 %v10526_v51 }
0x21cd   : > { %v7567_v4 = vpop.f32.mrf.mxu0 }
0x21cf   : > { %v7568_v58 = vpop.f32.mrf.mxu0 }
0x21d0   : > { %v7569_v55 = vadd.f32 %v7568_v58, %v7567_v4 }
0x21d1   : > { %v7570_v56 = vpop.f32.mrf.mxu0 }
0x21d2   : > { %v10850_v52 = vadd.f32 %v10214_v53, %v7569_v55 }
0x21d3   : > { %v7571_v14 = vpop.f32.mrf.mxu0 }
0x21d4   : > { %v4344_v1 = vmul.f32 %v10850_v52, %v11775_v61  ;;  %v7572_v29 = vadd.f32 %v7571_v14, %v7570_v56 }
0x21d6   : > { %v4346_v21 = vadd.f32 %v4344_v1, %v10396_v0  ;;  %v10856_v37 = vadd.f32 %v10225_v22, %v7572_v29 }
0x21d8   : > { %v4345_v51 = vmul.f32 %v10856_v37, %v11775_v61  ;;  %6926 = vmatmul.mubr.msk.f32.vlgmr.msra.gmra.mxu1 %vm100_vm0, %v4346_v21 }
0x21d9   : > { %8293 = vmatpush3.msra.mxu1 %v10405_v49  ;;  %4424 = vmatprep.mubr.f32.mxu1 %v11680_v11 }
0x21da   : > { %v4347_v53 = vadd.f32 %v4345_v51, %v10410_v16  ;;  %8294 = vmatprep.subr.mxu1 %v10546_v6 }
0x21db   : > { %8295 = vmatpush3.msra.mxu1 %v10546_v6 }
0x21dc   : > { %6927 = vmatmul.mubr.msk.f32.gmra.mxu1 %vm100_vm0, %v4347_v53  ;;  %8296 = vmatprep.subr.mxu1 %v10555_v27 }
0x21dd   : > { %8297 = vmatpush3.msra.mxu1 %v10555_v27  ;;  %8300 = vmatprep.mubr.msk.f32.mxu1 %vm100_vm0, %v4346_v21 }
0x21de   : > { %8298 = vmatprep.subr.mxu1 %v10563_v28 }
0x21df   : > { %8299 = vmatpush3.msra.mxu1 %v10563_v28 }
0x21e0   : > { %8301 = vmatmul.mubr.msk.f32.vlgmr.msra.gmra.mxu1 %vm100_vm0, %v4347_v53 }
0x21e1   : > { %8311 = vmatprep.mubr.msk.f32.mxu1 %vm100_vm0, %v10571_v42 }
0x2298   : > { %v4420_v22 = vpop.f32.mrf.mxu1 }
0x229a   : > { %v4422_v51 = vpop.f32.mrf.mxu1 }
0x229c   : > { %v4426_v58 = vpop.f32.mrf.mxu1 }
0x229e   : > { %v4428_v4 = vpop.f32.mrf.mxu1 }
0x22a0   : > { %v8302_v29 = vpop.f32.mrf.mxu1 }
0x22a1   : > { %8303 = vmatprep.subr.mxu1 %v8302_v29 }
0x22a2   : > { %v4497_v14 = vpop.f32.mrf.mxu1  ;;  %8304 = vmatpush3.msra.mxu1 %v8302_v29 }
0x22a3   : > { %8305 = vmatprep.subr.mxu1 %v4497_v14 }
0x22a4   : > { %8306 = vmatpush3.msra.mxu1 %v4497_v14 }
0x22a5   : > { %8307 = vmatprep.subr.mxu1 %v4428_v4 }
0x22a6   : > { %8308 = vmatpush3.msra.mxu1 %v4428_v4 }
0x22a7   : > { %8309 = vmatprep.subr.mxu1 %v4422_v51 }
0x22a8   : > { %8310 = vmatpush3.msra.mxu1 %v4422_v51 }
0x22a9   : > { %8312 = vmatmul.mubr.msk.f32.vlgmr.msra.gmra.mxu1 %vm100_vm0, %v10582_v35 }
0x22aa   : > { %8314 = vmatprep.mubr.msk.f32.mxu1 %vm100_vm0, %v10589_v39 }
0x22ad   : > { %8315 = vmatmul.mubr.msk.f32.gmra.mxu1 %vm100_vm0, %v10596_v48 }
0x22ae   : > { %8325 = vmatprep.mubr.msk.f32.mxu1 %vm100_vm0, %v10603_v36 }
0x2369   : > { %v8313_v21 = vpop.f32.mrf.mxu1 }
0x236a   : > { %v4582_v51 = vadd.f32 %v10616_v13, %v8313_v21 }
0x236b   : > { %v4576_v55 = vpop.f32.mrf.mxu1 }
0x236c   : > { %v4577_v29 = vadd.f32 %v10628_v40, %v4576_v55 }
0x236d   : > { %v8316_v56 = vpop.f32.mrf.mxu1 }
0x236e   : > { %v4592_v1 = vadd.f32 %v10610_v54, %v8316_v56 }
0x236f   : > { %v4586_v53 = vpop.f32.mrf.mxu1 }
0x2370   : > { %8660 = vtanh.f32 %v4592_v1  ;;  %v4587_v4 = vadd.f32 %v10622_v15, %v4586_v53 }
0x2372   : > { %8662 = vtanh.f32 %v4587_v4  ;;  %v11793_v4 = vld [vmem:[#allocation9_spill] sm:$0xff] }
0x2373   : > { %8664 = vtanh.f32 %v4582_v51  ;;  %v11792_v51 = vld [vmem:[#allocation8_spill] sm:$0xff] }
0x2374   : > { %8666 = vtanh.f32 %v4577_v29  ;;  %v11794_v29 = vld [vmem:[#allocation10_spill] sm:$0xff] }
0x237d   : > { %v8661_v14 = vpop.eup %8660 }
0x237e   : > { %8317 = vmatprep.subr.mxu1 %v8661_v14 }
0x237f   : > { %v8663_v61 = vpop.eup %8662  ;;  %8318 = vmatpush3.msra.mxu1 %v8661_v14  ;;  %v11795_v14 = vld [vmem:[#allocation11_spill] sm:$0xff] }
0x2380   : > { %8319 = vmatprep.subr.mxu1 %v8663_v61  ;;  %v8665_v36 = vpop.eup %8664 }
0x2381   : > { %8320 = vmatpush3.msra.mxu1 %v8663_v61  ;;  %v8667_v56 = vpop.eup %8666  ;;  %v4506_v61 = vadd.f32 %v10651_v46, %v4420_v22  ;;  %v11790_v22 = vld [vmem:[#allocation22_spill] sm:$0xff] }
0x2382   : > { %8321 = vmatprep.subr.mxu1 %v8665_v36 }
0x2383   : > { %8322 = vmatpush3.msra.mxu1 %v8665_v36  ;;  %8668 = vtanh.f32 %v4506_v61  ;;  %v4507_v36 = vadd.f32 %v10658_v20, %v4426_v58  ;;  %v11791_v58 = vld [vmem:[#allocation7_spill] sm:$0xff]  ;;  %v11797_v61 = vld [vmem:[#allocation6_spill] sm:$0xff] }
0x2384   : > { %8323 = vmatprep.subr.mxu1 %v8667_v56 }
0x2385   : > { %8324 = vmatpush3.msra.mxu1 %v8667_v56  ;;  %8670 = vtanh.f32 %v4507_v36  ;;  %v11796_v56 = vld [vmem:[#allocation12_spill] sm:$0xff] }
0x2386   : > { %8326 = vmatmul.mubr.msk.f32.vlgmr.msra.gmra.mxu1 %vm100_vm0, %v10634_v19  ;;  %4783 = vmatprep.subr.mxu1 %v10443_v38  ;;  %v11798_v36 = vld [vmem:[#allocation24_spill] sm:$0xff] }
0x2387   : > { %4784 = vmatpush1.msra.mxu1 %v10449_v32  ;;  %4823 = vmatprep.mubr.f32.mxu1 %v11680_v11 }
0x2388   : > { %4785 = vmatprep.subr.mxu1 %v10456_v31 }
0x2389   : > { %4786 = vmatpush1.msra.mxu1 %v10462_v9 }
0x238a   : > { %4787 = vmatprep.subr.mxu1 %v10468_v50 }
0x238b   : > { %4788 = vmatpush1.msra.mxu1 %v10474_v10 }
0x238c   : > { %4789 = vmatprep.subr.mxu1 %v10480_v44 }
0x238d   : > { %4790 = vmatpush1.msra.mxu1 %v10486_v62 }
0x238e   : > { %8328 = vmatprep.subr.mxu1 %v10405_v49 }
0x2390   : > { %v8669_v1 = vpop.eup %8668 }
0x2392   : > { %v8671_v53 = vpop.eup %8670 }
0x2446   : > { %v8327_v21 = vpop.f32.mrf.mxu1 }
0x2448   : > { %v4665_v55 = vpop.f32.mrf.mxu1 }
0x2449   : > { %4738 = vmatprep.mubr.f32.mxu0 %v4665_v55  ;;  %v5154_v55 = vmul.f32 2.0, %v10850_v52 }
0x244a   : > { %4739 = vmatmul.mubr.f32.vlgmr.msra.gmra.mxu0 %v8669_v1 }
0x244b   : > { %4743 = vmatprep.mubr.f32.mxu0 %v8327_v21  ;;  %7652 = vmatpush3.msra.mxu0 %v10665_v57 }
0x244c   : > { %7653 = vmatprep.subr.mxu0 %v10671_v60 }
0x244d   : > { %7654 = vmatpush3.msra.mxu0 %v10677_v2 }
0x244e   : > { %4744 = vmatmul.mubr.f32.gmra.mxu0 %v8671_v53  ;;  %7655 = vmatprep.subr.mxu0 %v10683_v3 }
0x244f   : > { %7656 = vmatpush3.msra.mxu0 %v10689_v5 }
0x2450   : > { %7657 = vmatprep.subr.mxu0 %v10695_v18 }
0x2451   : > { %7658 = vmatpush3.msra.mxu0 %v10701_v25 }
0x2452   : > { %7659 = vmatprep.subr.mxu0 %v10707_v45 }
0x2453   : > { %7660 = vmatpush3.msra.mxu0 %v10713_v26 }
0x2454   : > { %7661 = vmatprep.subr.mxu0 %v10719_v23 }
0x2455   : > { %7662 = vmatpush3.msra.mxu0 %v10725_v33 }
0x2456   : > { %7663 = vmatprep.subr.mxu0 %v10731_v24 }
0x2457   : > { %7664 = vmatpush3.msra.mxu0 %v10737_v12 }
0x2458   : > { %7665 = vmatprep.subr.mxu0 %v10743_v59 }
0x2459   : > { %7666 = vmatpush3.msra.mxu0 %v10749_v63 }
0x245a   : > { %7667 = vmatprep.subr.mxu0 %v10755_v30 }
0x245b   : > { %7668 = vmatpush3.msra.mxu0 %v10761_v8 }
0x245c   : > { %7669 = vmatprep.subr.mxu0 %v10767_v34 }
0x245d   : > { %7670 = vmatpush3.msra.mxu0 %v10773_v7 }
0x245e   : > { %7671 = vmatprep.subr.mxu0 %v10779_v43 }
0x245f   : > { %7672 = vmatpush3.msra.mxu0 %v10785_v41 }
0x2460   : > { %7673 = vmatprep.subr.mxu0 %v10791_v47 }
0x2461   : > { %7674 = vmatpush3.msra.mxu0 %v11790_v22 }
0x2462   : > { %7675 = vmatprep.subr.mxu0 %v11791_v58  ;;  %v11800_v58 = vld [vmem:[#allocation5_spill] sm:$0xff] }
0x2463   : > { %7676 = vmatpush3.msra.mxu0 %v11792_v51 }
0x2464   : > { %7677 = vmatprep.subr.mxu0 %v11793_v4 }
0x2465   : > { %7678 = vmatpush3.msra.mxu0 %v11794_v29  ;;  %v10937_v29 = vld [vmem:[%s11555_s12] sm:$0xff] }
0x2466   : > { %7679 = vmatprep.subr.mxu0 %v11795_v14 }
0x2467   : > { %7680 = vmatpush3.msra.mxu0 %v11796_v56  ;;  %v11799_v56 = vld [vmem:[#allocation25_spill] sm:$0xff] }
0x2468   : > { %7681 = vmatprep.subr.mxu0 %v11797_v61  ;;  %v5156_v4 = vadd.f32 %v5154_v55, %v11799_v56 }
0x2469   : > { %7682 = vmatpush3.msra.mxu0 %v10845_v17  ;;  %v5155_v17 = vmul.f32 2.0, %v10856_v37 }
0x246a   : > { %7709 = vmatprep.subr.mxu0 %v11798_v36 }
0x250a   : > { %v7625_v21 = vpop.f32.mrf.mxu0 }
0x250c   : > { %v7626_v1 = vpop.f32.mrf.mxu0 }
0x250d   : > { %v7627_v53 = vadd.f32 %v7626_v1, %v7625_v21  ;;  %v10947_v21 = vld [vmem:[%s11555_s12 + $0x8] sm:$0xff] }
0x250e   : > { %v7628_v51 = vpop.f32.mrf.mxu0 }
0x250f   : > { %v4741_v14 = vadd.f32 %v10937_v29, %v7627_v53  ;;  %v11801_v53 = vld [vmem:[#allocation15_spill] sm:$0xff] }
0x2510   : > { %v7629_v61 = vpop.f32.mrf.mxu0  ;;  %v5157_v56 = vadd.f32 %v5155_v17, %v11801_v53 }
0x2511   : > { %v4749_v36 = vmul.f32 %v4741_v14, %v11800_v58  ;;  %v5158_v22 = vmul.f32 2.0, %v4741_v14  ;;  %v7630_v47 = vadd.f32 %v7629_v61, %v7628_v51 }
0x2513   : > { %v4751_v52 = vadd.f32 %v4749_v36, %v10396_v0  ;;  %v4746_v1 = vadd.f32 %v10947_v21, %v7630_v47  ;;  %v10950_v41 = vadd.f32 %v5158_v22, %v5156_v4 }
0x2515   : > { %v4750_v55 = vmul.f32 %v4746_v1, %v11800_v58  ;;  %v5159_v37 = vmul.f32 2.0, %v4746_v1  ;;  %6936 = vmatmul.mubr.msk.f32.vlgmr.msra.gmra.mxu1 %vm100_vm0, %v4751_v52 }
0x2516   : > { %8329 = vmatpush3.msra.mxu1 %v10405_v49  ;;  %4829 = vmatprep.mubr.f32.mxu1 %v11680_v11 }
0x2517   : > { %v4752_v51 = vadd.f32 %v4750_v55, %v10410_v16  ;;  %8330 = vmatprep.subr.mxu1 %v10546_v6  ;;  %v10959_v14 = vadd.f32 %v5159_v37, %v5157_v56 }
0x2518   : > { %8331 = vmatpush3.msra.mxu1 %v10546_v6 }
0x2519   : > { %6937 = vmatmul.mubr.msk.f32.gmra.mxu1 %vm100_vm0, %v4752_v51  ;;  %8332 = vmatprep.subr.mxu1 %v10555_v27 }
0x251a   : > { %8333 = vmatpush3.msra.mxu1 %v10555_v27  ;;  %8336 = vmatprep.mubr.msk.f32.mxu1 %vm100_vm0, %v4751_v52  ;;  %v11802_v52 = vld [vmem:[#allocation16_spill] sm:$0xff] }
0x251b   : > { %8334 = vmatprep.subr.mxu1 %v10563_v28 }
0x251c   : > { %8335 = vmatpush3.msra.mxu1 %v10563_v28 }
0x251d   : > { %8337 = vmatmul.mubr.msk.f32.vlgmr.msra.gmra.mxu1 %vm100_vm0, %v4752_v51 }
0x251e   : > { %8347 = vmatprep.mubr.msk.f32.mxu1 %vm100_vm0, %v10571_v42 }
0x25d5   : > { %v4825_v17 = vpop.f32.mrf.mxu1 }
0x25d7   : > { %v4827_v47 = vpop.f32.mrf.mxu1 }
0x25d9   : > { %v4831_v22 = vpop.f32.mrf.mxu1 }
0x25db   : > { %v4833_v4 = vpop.f32.mrf.mxu1 }
0x25dd   : > { %v8338_v61 = vpop.f32.mrf.mxu1 }
0x25de   : > { %8339 = vmatprep.subr.mxu1 %v8338_v61 }
0x25df   : > { %v4902_v36 = vpop.f32.mrf.mxu1  ;;  %8340 = vmatpush3.msra.mxu1 %v8338_v61 }
0x25e0   : > { %8341 = vmatprep.subr.mxu1 %v4902_v36 }
0x25e1   : > { %8342 = vmatpush3.msra.mxu1 %v4902_v36 }
0x25e2   : > { %8343 = vmatprep.subr.mxu1 %v4833_v4 }
0x25e3   : > { %8344 = vmatpush3.msra.mxu1 %v4833_v4 }
0x25e4   : > { %8345 = vmatprep.subr.mxu1 %v4827_v47 }
0x25e5   : > { %8346 = vmatpush3.msra.mxu1 %v4827_v47 }
0x25e6   : > { %8348 = vmatmul.mubr.msk.f32.vlgmr.msra.gmra.mxu1 %vm100_vm0, %v10582_v35 }
0x25e7   : > { %8350 = vmatprep.mubr.msk.f32.mxu1 %vm100_vm0, %v10589_v39 }
0x25ea   : > { %8351 = vmatmul.mubr.msk.f32.gmra.mxu1 %vm100_vm0, %v10596_v48 }
0x25eb   : > { %8361 = vmatprep.mubr.msk.f32.mxu1 %vm100_vm0, %v11802_v52 }
0x26a6   : > { %v8349_v1 = vpop.f32.mrf.mxu1 }
0x26a7   : > { %v4987_v51 = vadd.f32 %v10616_v13, %v8349_v1  ;;  %v4912_v1 = vadd.f32 %v10658_v20, %v4831_v22  ;;  %v11804_v22 = vld [vmem:[#allocation21_spill] sm:$0xff] }
0x26a8   : > { %v4981_v53 = vpop.f32.mrf.mxu1 }
0x26a9   : > { %v4982_v4 = vadd.f32 %v10628_v40, %v4981_v53 }
0x26aa   : > { %v8352_v56 = vpop.f32.mrf.mxu1 }
0x26ab   : > { %v4997_v55 = vadd.f32 %v10610_v54, %v8352_v56 }
0x26ac   : > { %v4991_v37 = vpop.f32.mrf.mxu1 }
0x26ad   : > { %8672 = vtanh.f32 %v4997_v55  ;;  %v4992_v47 = vadd.f32 %v10622_v15, %v4991_v37 }
0x26af   : > { %8674 = vtanh.f32 %v4992_v47  ;;  %v11805_v47 = vld [vmem:[#allocation22_spill] sm:$0xff] }
0x26b0   : > { %8676 = vtanh.f32 %v4987_v51 }
0x26b1   : > { %8678 = vtanh.f32 %v4982_v4  ;;  %v11806_v4 = vld [vmem:[#allocation7_spill] sm:$0xff] }
0x26ba   : > { %v8673_v61 = vpop.eup %8672 }
0x26bb   : > { %8353 = vmatprep.subr.mxu1 %v8673_v61 }
0x26bc   : > { %v8675_v36 = vpop.eup %8674  ;;  %8354 = vmatpush3.msra.mxu1 %v8673_v61  ;;  %v11807_v61 = vld [vmem:[#allocation8_spill] sm:$0xff] }
0x26bd   : > { %8355 = vmatprep.subr.mxu1 %v8675_v36  ;;  %v8677_v58 = vpop.eup %8676 }
0x26be   : > { %8356 = vmatpush3.msra.mxu1 %v8675_v36  ;;  %v8679_v56 = vpop.eup %8678  ;;  %v11808_v36 = vld [vmem:[#allocation9_spill] sm:$0xff] }
0x26bf   : > { %8357 = vmatprep.subr.mxu1 %v8677_v58 }
0x26c0   : > { %8358 = vmatpush3.msra.mxu1 %v8677_v58  ;;  %v4911_v58 = vadd.f32 %v10651_v46, %v4825_v17  ;;  %v11803_v17 = vld [vmem:[#allocation18_spill] sm:$0xff] }
0x26c1   : > { %8359 = vmatprep.subr.mxu1 %v8679_v56 }
0x26c2   : > { %8360 = vmatpush3.msra.mxu1 %v8679_v56  ;;  %8680 = vtanh.f32 %v4911_v58  ;;  %v11809_v56 = vld [vmem:[#allocation10_spill] sm:$0xff]  ;;  %v11810_v58 = vld [vmem:[#allocation11_spill] sm:$0xff] }
0x26c3   : > { %8362 = vmatmul.mubr.msk.f32.vlgmr.msra.gmra.mxu1 %vm100_vm0, %v10634_v19  ;;  %5198 = vmatprep.subr.mxu1 %v10443_v38  ;;  %8682 = vtanh.f32 %v4912_v1  ;;  %v11811_v1 = vld [vmem:[#allocation12_spill] sm:$0xff] }
0x26c4   : > { %5199 = vmatpush1.msra.mxu1 %v10449_v32  ;;  %5238 = vmatprep.mubr.f32.mxu1 %v11680_v11 }
0x26c5   : > { %5200 = vmatprep.subr.mxu1 %v10456_v31 }
0x26c6   : > { %5201 = vmatpush1.msra.mxu1 %v10462_v9 }
0x26c7   : > { %5202 = vmatprep.subr.mxu1 %v10468_v50 }
0x26c8   : > { %5203 = vmatpush1.msra.mxu1 %v10474_v10 }
0x26c9   : > { %5204 = vmatprep.subr.mxu1 %v10480_v44 }
0x26ca   : > { %5205 = vmatpush1.msra.mxu1 %v10486_v62 }
0x26cb   : > { %8364 = vmatprep.subr.mxu1 %v10405_v49 }
0x26cf   : > { %v8681_v37 = vpop.eup %8680 }
0x26d0   : > { %v8683_v51 = vpop.eup %8682 }
0x2783   : > { %v8363_v53 = vpop.f32.mrf.mxu1 }
0x2785   : > { %v5070_v55 = vpop.f32.mrf.mxu1 }
0x2786   : > { %5143 = vmatprep.mubr.f32.mxu0 %v5070_v55  ;;  %v11813_v55 = vld [vmem:[#allocation14_spill] sm:$0xff] }
0x2787   : > { %5144 = vmatmul.mubr.f32.vlgmr.msra.gmra.mxu0 %v8681_v37  ;;  %v11814_v37 = vld [vmem:[#allocation24_spill] sm:$0xff] }
0x2788   : > { %5148 = vmatprep.mubr.f32.mxu0 %v8363_v53  ;;  %7710 = vmatpush3.msra.mxu0 %v10665_v57  ;;  %v11812_v53 = vld [vmem:[#allocation6_spill] sm:$0xff] }
0x2789   : > { %7711 = vmatprep.subr.mxu0 %v10671_v60 }
0x278a   : > { %7712 = vmatpush3.msra.mxu0 %v10677_v2 }
0x278b   : > { %5149 = vmatmul.mubr.f32.gmra.mxu0 %v8683_v51  ;;  %7713 = vmatprep.subr.mxu0 %v10683_v3 }
0x278c   : > { %7714 = vmatpush3.msra.mxu0 %v10689_v5 }
0x278d   : > { %7715 = vmatprep.subr.mxu0 %v10695_v18 }
0x278e   : > { %7716 = vmatpush3.msra.mxu0 %v10701_v25 }
0x278f   : > { %7717 = vmatprep.subr.mxu0 %v10707_v45 }
0x2790   : > { %7718 = vmatpush3.msra.mxu0 %v10713_v26 }
0x2791   : > { %7719 = vmatprep.subr.mxu0 %v10719_v23 }
0x2792   : > { %7720 = vmatpush3.msra.mxu0 %v10725_v33 }
0x2793   : > { %7721 = vmatprep.subr.mxu0 %v10731_v24 }
0x2794   : > { %7722 = vmatpush3.msra.mxu0 %v10737_v12 }
0x2795   : > { %7723 = vmatprep.subr.mxu0 %v10743_v59 }
0x2796   : > { %7724 = vmatpush3.msra.mxu0 %v10749_v63 }
0x2797   : > { %7725 = vmatprep.subr.mxu0 %v10755_v30 }
0x2798   : > { %7726 = vmatpush3.msra.mxu0 %v10761_v8 }
0x2799   : > { %7727 = vmatprep.subr.mxu0 %v10767_v34 }
0x279a   : > { %7728 = vmatpush3.msra.mxu0 %v10773_v7 }
0x279b   : > { %7729 = vmatprep.subr.mxu0 %v10779_v43  ;;  %v11815_v43 = vld [vmem:[#allocation19_spill] sm:$0xff] }
0x279c   : > { %7730 = vmatpush3.msra.mxu0 %v11803_v17 }
0x279d   : > { %7731 = vmatprep.subr.mxu0 %v11804_v22 }
0x279e   : > { %7732 = vmatpush3.msra.mxu0 %v11805_v47 }
0x279f   : > { %7733 = vmatprep.subr.mxu0 %v11806_v4 }
0x27a0   : > { %7734 = vmatpush3.msra.mxu0 %v11807_v61 }
0x27a1   : > { %7735 = vmatprep.subr.mxu0 %v11808_v36 }
0x27a2   : > { %7736 = vmatpush3.msra.mxu0 %v11809_v56 }
0x27a3   : > { %7737 = vmatprep.subr.mxu0 %v11810_v58 }
0x27a4   : > { %7738 = vmatpush3.msra.mxu0 %v11811_v1 }
0x27a5   : > { %7739 = vmatprep.subr.mxu0 %v11812_v53 }
0x27a6   : > { %7740 = vmatpush3.msra.mxu0 %v11813_v55 }
0x27a7   : > { %7767 = vmatprep.subr.mxu0 %v11814_v37 }
0x2847   : > { %v7683_v51 = vpop.f32.mrf.mxu0 }
0x2849   : > { %v7684_v47 = vpop.f32.mrf.mxu0 }
0x284a   : > { %v7685_v22 = vadd.f32 %v7684_v47, %v7683_v51 }
0x284b   : > { %v7686_v4 = vpop.f32.mrf.mxu0 }
0x284c   : > { %v5146_v61 = vadd.f32 %v10937_v29, %v7685_v22 }
0x284d   : > { %v7687_v17 = vpop.f32.mrf.mxu0 }
0x284e   : > { %v5162_v36 = vadd.f32 %v10950_v41, %v5146_v61  ;;  %v7688_v56 = vadd.f32 %v7687_v17, %v7686_v4 }
0x2850   : > { %v5164_v58 = vmul.f32 %v5162_v36, %v11815_v43  ;;  %v5151_v1 = vadd.f32 %v10947_v21, %v7688_v56 }
0x2852   : > { %v11034_v53 = vadd.f32 %v5164_v58, %v10396_v0  ;;  %v5163_v55 = vadd.f32 %v10959_v14, %v5151_v1 }
0x2854   : > { %v5165_v37 = vmul.f32 %v5163_v55, %v11815_v43  ;;  %6946 = vmatmul.mubr.msk.f32.vlgmr.msra.gmra.mxu1 %vm100_vm0, %v11034_v53 }
0x2855   : > { %8365 = vmatpush3.msra.mxu1 %v10405_v49  ;;  %5244 = vmatprep.mubr.f32.mxu1 %v11680_v11 }
0x2856   : > { %v11043_v41 = vadd.f32 %v5165_v37, %v10410_v16  ;;  %8366 = vmatprep.subr.mxu1 %v10546_v6 }
0x2857   : > { %8367 = vmatpush3.msra.mxu1 %v10546_v6 }
0x2858   : > { %6947 = vmatmul.mubr.msk.f32.gmra.mxu1 %vm100_vm0, %v11043_v41  ;;  %8368 = vmatprep.subr.mxu1 %v10555_v27 }
0x2859   : > { %8369 = vmatpush3.msra.mxu1 %v10555_v27  ;;  %8372 = vmatprep.mubr.msk.f32.mxu1 %vm100_vm0, %v11034_v53 }
0x285a   : > { %8370 = vmatprep.subr.mxu1 %v10563_v28 }
0x285b   : > { %8371 = vmatpush3.msra.mxu1 %v10563_v28 }
0x285c   : > { %8373 = vmatmul.mubr.msk.f32.vlgmr.msra.gmra.mxu1 %vm100_vm0, %v11043_v41 }
0x285d   : > { %8383 = vmatprep.mubr.msk.f32.mxu1 %vm100_vm0, %v10571_v42 }
0x2914   : > { %v5240_v0 = vpop.f32.mrf.mxu1 }
0x2916   : > { %v5242_v49 = vpop.f32.mrf.mxu1 }
0x2918   : > { %v5246_v16 = vpop.f32.mrf.mxu1 }
0x291a   : > { %v5248_v14 = vpop.f32.mrf.mxu1 }
0x291c   : > { %v8374_v17 = vpop.f32.mrf.mxu1 }
0x291d   : > { %8375 = vmatprep.subr.mxu1 %v8374_v17 }
0x291e   : > { %v5317_v22 = vpop.f32.mrf.mxu1  ;;  %8376 = vmatpush3.msra.mxu1 %v8374_v17  ;;  %v11819_v17 = vld [vmem:[#allocation22_spill] sm:$0xff] }
0x291f   : > { %8377 = vmatprep.subr.mxu1 %v5317_v22 }
0x2920   : > { %8378 = vmatpush3.msra.mxu1 %v5317_v22  ;;  %v11820_v22 = vld [vmem:[#allocation7_spill] sm:$0xff] }
0x2921   : > { %8379 = vmatprep.subr.mxu1 %v5248_v14 }
0x2922   : > { %8380 = vmatpush3.msra.mxu1 %v5248_v14 }
0x2923   : > { %8381 = vmatprep.subr.mxu1 %v5242_v49 }
0x2924   : > { %8382 = vmatpush3.msra.mxu1 %v5242_v49 }
0x2925   : > { %8384 = vmatmul.mubr.msk.f32.vlgmr.msra.gmra.mxu1 %vm100_vm0, %v10582_v35 }
0x2926   : > { %8386 = vmatprep.mubr.msk.f32.mxu1 %vm100_vm0, %v10589_v39 }
0x2929   : > { %8387 = vmatmul.mubr.msk.f32.gmra.mxu1 %vm100_vm0, %v10596_v48 }
0x292a   : > { %8397 = vmatprep.mubr.msk.f32.mxu1 %vm100_vm0, %v11802_v52 }
0x29e5   : > { %v8385_v47 = vpop.f32.mrf.mxu1 }
0x29e6   : > { %v5402_v58 = vadd.f32 %v10616_v13, %v8385_v47  ;;  %v11821_v47 = vld [vmem:[#allocation8_spill] sm:$0xff] }
0x29e7   : > { %v5396_v4 = vpop.f32.mrf.mxu1 }
0x29e8   : > { %v5397_v55 = vadd.f32 %v10628_v40, %v5396_v4  ;;  %v11822_v4 = vld [vmem:[#allocation9_spill] sm:$0xff] }
0x29e9   : > { %v8388_v61 = vpop.f32.mrf.mxu1 }
0x29ea   : > { %v5412_v36 = vadd.f32 %v10610_v54, %v8388_v61  ;;  %v11823_v61 = vld [vmem:[#allocation10_spill] sm:$0xff] }
0x29eb   : > { %v5406_v56 = vpop.f32.mrf.mxu1 }
0x29ec   : > { %8684 = vtanh.f32 %v5412_v36  ;;  %v5407_v1 = vadd.f32 %v10622_v15, %v5406_v56  ;;  %v11824_v36 = vld [vmem:[#allocation11_spill] sm:$0xff]  ;;  %v11825_v56 = vld [vmem:[#allocation12_spill] sm:$0xff] }
0x29ee   : > { %8686 = vtanh.f32 %v5407_v1  ;;  %v11827_v1 = vld [vmem:[#allocation14_spill] sm:$0xff] }
0x29ef   : > { %8688 = vtanh.f32 %v5402_v58  ;;  %v11826_v58 = vld [vmem:[#allocation6_spill] sm:$0xff] }
0x29f0   : > { %8690 = vtanh.f32 %v5397_v55  ;;  %v11828_v55 = vld [vmem:[#allocation24_spill] sm:$0xff] }
0x29f9   : > { %v8685_v37 = vpop.eup %8684 }
0x29fa   : > { %8389 = vmatprep.subr.mxu1 %v8685_v37 }
0x29fb   : > { %v8687_v51 = vpop.eup %8686  ;;  %8390 = vmatpush3.msra.mxu1 %v8685_v37 }
0x29fc   : > { %8391 = vmatprep.subr.mxu1 %v8687_v51  ;;  %v8689_v49 = vpop.eup %8688 }
0x29fd   : > { %8392 = vmatpush3.msra.mxu1 %v8687_v51  ;;  %v8691_v14 = vpop.eup %8690 }
0x29fe   : > { %8393 = vmatprep.subr.mxu1 %v8689_v49 }
0x29ff   : > { %8394 = vmatpush3.msra.mxu1 %v8689_v49 }
0x2a00   : > { %8395 = vmatprep.subr.mxu1 %v8691_v14 }
0x2a01   : > { %8396 = vmatpush3.msra.mxu1 %v8691_v14 }
0x2a02   : > { %8398 = vmatmul.mubr.msk.f32.vlgmr.msra.gmra.mxu1 %vm100_vm0, %v10634_v19  ;;  %5603 = vmatprep.subr.mxu1 %v10443_v38  ;;  %v11085_v38 = vld [vmem:[%s11549_s6 + $0x58] sm:$0xff] }
0x2a03   : > { %5604 = vmatpush1.msra.mxu1 %v10449_v32  ;;  %5643 = vmatprep.mubr.f32.mxu1 %v11680_v11  ;;  %v5326_v32 = vadd.f32 %v10651_v46, %v5240_v0  ;;  %v11817_v0 = vld [vmem:[#allocation18_spill] sm:$0xff] }
0x2a04   : > { %5605 = vmatprep.subr.mxu1 %v10456_v31  ;;  %v5327_v31 = vadd.f32 %v10658_v20, %v5246_v16  ;;  %v11818_v16 = vld [vmem:[#allocation21_spill] sm:$0xff] }
0x2a05   : > { %5606 = vmatpush1.msra.mxu1 %v10462_v9  ;;  %8692 = vtanh.f32 %v5326_v32 }
0x2a06   : > { %5607 = vmatprep.subr.mxu1 %v10468_v50  ;;  %8694 = vtanh.f32 %v5327_v31 }
0x2a07   : > { %5608 = vmatpush1.msra.mxu1 %v10474_v10 }
0x2a08   : > { %5609 = vmatprep.subr.mxu1 %v10480_v44 }
0x2a09   : > { %5610 = vmatpush1.msra.mxu1 %v10486_v62  ;;  %v11816_v62 = vld [vmem:[#allocation17_spill] sm:$0xff] }
0x2a0a   : > { %8400 = vmatprep.subr.mxu1 %v11085_v38 }
0x2a12   : > { %v8693_v10 = vpop.eup %8692 }
0x2a13   : > { %v8695_v44 = vpop.eup %8694 }
0x2ac2   : > { %v8399_v9 = vpop.f32.mrf.mxu1 }
0x2ac4   : > { %v5485_v50 = vpop.f32.mrf.mxu1 }
0x2ac5   : > { %5558 = vmatprep.mubr.f32.mxu0 %v5485_v50 }
0x2ac6   : > { %5559 = vmatmul.mubr.f32.vlgmr.msra.gmra.mxu0 %v8693_v10 }
0x2ac7   : > { %5563 = vmatprep.mubr.f32.mxu0 %v8399_v9  ;;  %7768 = vmatpush3.msra.mxu0 %v10665_v57  ;;  %v11829_v9 = vld [vmem:[#allocation20_spill] sm:$0xff] }
0x2ac8   : > { %7769 = vmatprep.subr.mxu0 %v10671_v60 }
0x2ac9   : > { %7770 = vmatpush3.msra.mxu0 %v10677_v2 }
0x2aca   : > { %5564 = vmatmul.mubr.f32.gmra.mxu0 %v8695_v44  ;;  %7771 = vmatprep.subr.mxu0 %v10683_v3 }
0x2acb   : > { %7772 = vmatpush3.msra.mxu0 %v10689_v5 }
0x2acc   : > { %7773 = vmatprep.subr.mxu0 %v10695_v18 }
0x2acd   : > { %7774 = vmatpush3.msra.mxu0 %v10701_v25 }
0x2ace   : > { %7775 = vmatprep.subr.mxu0 %v10707_v45 }
0x2acf   : > { %7776 = vmatpush3.msra.mxu0 %v10713_v26 }
0x2ad0   : > { %7777 = vmatprep.subr.mxu0 %v10719_v23 }
0x2ad1   : > { %7778 = vmatpush3.msra.mxu0 %v10725_v33 }
0x2ad2   : > { %7779 = vmatprep.subr.mxu0 %v10731_v24 }
0x2ad3   : > { %7780 = vmatpush3.msra.mxu0 %v10737_v12 }
0x2ad4   : > { %7781 = vmatprep.subr.mxu0 %v10743_v59 }
0x2ad5   : > { %7782 = vmatpush3.msra.mxu0 %v10749_v63 }
0x2ad6   : > { %7783 = vmatprep.subr.mxu0 %v10755_v30 }
0x2ad7   : > { %7784 = vmatpush3.msra.mxu0 %v10761_v8 }
0x2ad8   : > { %7785 = vmatprep.subr.mxu0 %v10767_v34 }
0x2ad9   : > { %7786 = vmatpush3.msra.mxu0 %v10773_v7 }
0x2ada   : > { %7787 = vmatprep.subr.mxu0 %v11816_v62 }
0x2adb   : > { %7788 = vmatpush3.msra.mxu0 %v11817_v0 }
0x2adc   : > { %7789 = vmatprep.subr.mxu0 %v11818_v16 }
0x2add   : > { %7790 = vmatpush3.msra.mxu0 %v11819_v17 }
0x2ade   : > { %7791 = vmatprep.subr.mxu0 %v11820_v22 }
0x2adf   : > { %7792 = vmatpush3.msra.mxu0 %v11821_v47 }
0x2ae0   : > { %7793 = vmatprep.subr.mxu0 %v11822_v4 }
0x2ae1   : > { %7794 = vmatpush3.msra.mxu0 %v11823_v61 }
0x2ae2   : > { %7795 = vmatprep.subr.mxu0 %v11824_v36 }
0x2ae3   : > { %7796 = vmatpush3.msra.mxu0 %v11825_v56 }
0x2ae4   : > { %7797 = vmatprep.subr.mxu0 %v11826_v58 }
0x2ae5   : > { %7798 = vmatpush3.msra.mxu0 %v11827_v1 }
0x2ae6   : > { %7825 = vmatprep.subr.mxu0 %v11828_v55 }
0x2b86   : > { %v7741_v37 = vpop.f32.mrf.mxu0 }
0x2b88   : > { %v7742_v51 = vpop.f32.mrf.mxu0 }
0x2b89   : > { %v7743_v49 = vadd.f32 %v7742_v51, %v7741_v37 }
0x2b8a   : > { %v7744_v14 = vpop.f32.mrf.mxu0 }
0x2b8b   : > { %v11123_v32 = vadd.f32 %v10937_v29, %v7743_v49 }
0x2b8c   : > { %v7745_v31 = vpop.f32.mrf.mxu0 }
0x2b8d   : > { %v5569_v50 = vmul.f32 %v11123_v32, %v11829_v9  ;;  %v7746_v10 = vadd.f32 %v7745_v31, %v7744_v14 }
0x2b8f   : > { %v5571_v44 = vadd.f32 %v5569_v50, %v11034_v53  ;;  %v11129_v43 = vadd.f32 %v10947_v21, %v7746_v10 }
0x2b91   : > { %v5570_v55 = vmul.f32 %v11129_v43, %v11829_v9  ;;  %6956 = vmatmul.mubr.msk.f32.vlgmr.msra.gmra.mxu1 %vm100_vm0, %v5571_v44 }
0x2b92   : > { %8401 = vmatpush3.msra.mxu1 %v11085_v38  ;;  %5649 = vmatprep.mubr.f32.mxu1 %v11680_v11 }
0x2b93   : > { %v5572_v37 = vadd.f32 %v5570_v55, %v11043_v41  ;;  %8402 = vmatprep.subr.mxu1 %v10546_v6 }
0x2b94   : > { %8403 = vmatpush3.msra.mxu1 %v10546_v6 }
0x2b95   : > { %6957 = vmatmul.mubr.msk.f32.gmra.mxu1 %vm100_vm0, %v5572_v37  ;;  %8404 = vmatprep.subr.mxu1 %v10555_v27 }
0x2b96   : > { %8405 = vmatpush3.msra.mxu1 %v10555_v27  ;;  %8408 = vmatprep.mubr.msk.f32.mxu1 %vm100_vm0, %v5571_v44 }
0x2b97   : > { %8406 = vmatprep.subr.mxu1 %v10563_v28 }
0x2b98   : > { %8407 = vmatpush3.msra.mxu1 %v10563_v28 }
0x2b99   : > { %8409 = vmatmul.mubr.msk.f32.vlgmr.msra.gmra.mxu1 %vm100_vm0, %v5572_v37 }
0x2b9a   : > { %8419 = vmatprep.mubr.msk.f32.mxu1 %vm100_vm0, %v10571_v42 }
0x2c51   : > { %v5645_v51 = vpop.f32.mrf.mxu1 }
0x2c53   : > { %v5647_v49 = vpop.f32.mrf.mxu1 }
0x2c55   : > { %v5651_v6 = vpop.f32.mrf.mxu1 }
0x2c57   : > { %v5653_v14 = vpop.f32.mrf.mxu1 }
0x2c59   : > { %v8410_v31 = vpop.f32.mrf.mxu1 }
0x2c5a   : > { %8411 = vmatprep.subr.mxu1 %v8410_v31 }
0x2c5b   : > { %v5722_v50 = vpop.f32.mrf.mxu1  ;;  %8412 = vmatpush3.msra.mxu1 %v8410_v31  ;;  %v11202_v31 = vld [vmem:[%s11549_s6 + $0x8] sm:$0xff] }
0x2c5c   : > { %8413 = vmatprep.subr.mxu1 %v5722_v50 }
0x2c5d   : > { %8414 = vmatpush3.msra.mxu1 %v5722_v50  ;;  %v11208_v50 = vld [vmem:[%s11549_s6] sm:$0xff] }
0x2c5e   : > { %8415 = vmatprep.subr.mxu1 %v5653_v14 }
0x2c5f   : > { %8416 = vmatpush3.msra.mxu1 %v5653_v14  ;;  %v11196_v14 = vld [vmem:[%s11549_s6 + $0x18] sm:$0xff] }
0x2c60   : > { %8417 = vmatprep.subr.mxu1 %v5647_v49 }
0x2c61   : > { %8418 = vmatpush3.msra.mxu1 %v5647_v49  ;;  %v11190_v49 = vld [vmem:[%s11549_s6 + $0x20] sm:$0xff] }
0x2c62   : > { %8420 = vmatmul.mubr.msk.f32.vlgmr.msra.gmra.mxu1 %vm100_vm0, %v10582_v35 }
0x2c63   : > { %8422 = vmatprep.mubr.msk.f32.mxu1 %vm100_vm0, %v10589_v39 }
0x2c66   : > { %8423 = vmatmul.mubr.msk.f32.gmra.mxu1 %vm100_vm0, %v10596_v48 }
0x2c67   : > { %8433 = vmatprep.mubr.msk.f32.mxu1 %vm100_vm0, %v11802_v52 }
0x2d22   : > { %v8421_v27 = vpop.f32.mrf.mxu1 }
0x2d23   : > { %v5807_v55 = vadd.f32 %v10616_v13, %v8421_v27  ;;  %v11165_v13 = vld [vmem:[%s11549_s6 + $0x50] sm:$0xff]  ;;  %v5731_v27 = vadd.f32 %v10651_v46, %v5645_v51  ;;  %v8857_v46 = vld [vmem:[%s11554_s11 + $0xf8] sm:$0xff] }
0x2d24   : > { %v5801_v28 = vpop.f32.mrf.mxu1 }
0x2d25   : > { %v5802_v37 = vadd.f32 %v10628_v40, %v5801_v28  ;;  %v11178_v40 = vld [vmem:[%s11549_s6 + $0x38] sm:$0xff]  ;;  %v5732_v28 = vadd.f32 %v10658_v20, %v5651_v6  ;;  %v11341_v6 = vld [vmem:[%s11551_s8 + $0x10] sm:$0xff] }
0x2d26   : > { %v8424_v42 = vpop.f32.mrf.mxu1 }
0x2d27   : > { %v5817_v10 = vadd.f32 %v10610_v54, %v8424_v42 }
0x2d28   : > { %v5811_v44 = vpop.f32.mrf.mxu1 }
0x2d29   : > { %8696 = vtanh.f32 %v5817_v10  ;;  %v5812_v35 = vadd.f32 %v10622_v15, %v5811_v44  ;;  %v11171_v15 = vld [vmem:[%s11549_s6 + $0x48] sm:$0xff] }
0x2d2b   : > { %8698 = vtanh.f32 %v5812_v35 }
0x2d2c   : > { %8700 = vtanh.f32 %v5807_v55 }
0x2d2d   : > { %8702 = vtanh.f32 %v5802_v37  ;;  %v11347_v37 = vld [vmem:[%s11551_s8] sm:$0xff] }
0x2d2e   : > { %8704 = vtanh.f32 %v5731_v27 }
0x2d2f   : > { %8706 = vtanh.f32 %v5732_v28  ;;  %v11353_v28 = vld [vmem:[%s11553_s10 + $0x8] sm:$0xff] }
0x2d36   : > { %v8697_v39 = vpop.eup %8696 }
0x2d37   : > { %8425 = vmatprep.subr.mxu1 %v8697_v39 }
0x2d38   : > { %v8699_v48 = vpop.eup %8698  ;;  %8426 = vmatpush3.msra.mxu1 %v8697_v39 }
0x2d39   : > { %8427 = vmatprep.subr.mxu1 %v8699_v48  ;;  %v8701_v52 = vpop.eup %8700 }
0x2d3a   : > { %8428 = vmatpush3.msra.mxu1 %v8699_v48  ;;  %v8703_v54 = vpop.eup %8702 }
0x2d3b   : > { %8429 = vmatprep.subr.mxu1 %v8701_v52  ;;  %v8705_v44 = vpop.eup %8704 }
0x2d3c   : > { %8430 = vmatpush3.msra.mxu1 %v8701_v52  ;;  %v8707_v55 = vpop.eup %8706 }
0x2d3d   : > { %8431 = vmatprep.subr.mxu1 %v8703_v54 }
0x2d3e   : > { %8432 = vmatpush3.msra.mxu1 %v8703_v54 }
0x2d3f   : > { %8434 = vmatmul.mubr.msk.f32.vlgmr.msra.gmra.mxu1 %vm100_vm0, %v10634_v19  ;;  %6008 = vmatprep.subr.mxu1 %v11165_v13  ;;  %v11184_v19 = vld [vmem:[%s11549_s6 + $0x30] sm:$0xff] }
0x2d40   : > { %6009 = vmatpush1.msra.mxu1 %v11171_v15  ;;  %6048 = vmatprep.mubr.f32.mxu1 %v11680_v11 }
0x2d41   : > { %6010 = vmatprep.subr.mxu1 %v11178_v40 }
0x2d42   : > { %6011 = vmatpush1.msra.mxu1 %v11184_v19 }
0x2d43   : > { %6012 = vmatprep.subr.mxu1 %v11190_v49 }
0x2d44   : > { %6013 = vmatpush1.msra.mxu1 %v11196_v14 }
0x2d45   : > { %6014 = vmatprep.subr.mxu1 %v11202_v31 }
0x2d46   : > { %6015 = vmatpush1.msra.mxu1 %v11208_v50 }
0x2d47   : > { %8436 = vmatprep.subr.mxu1 %v11085_v38 }
0x2dff   : > { %v8435_v42 = vpop.f32.mrf.mxu1 }
0x2e01   : > { %v5890_v10 = vpop.f32.mrf.mxu1 }
0x2e02   : > { %5963 = vmatprep.mubr.f32.mxu0 %v5890_v10 }
0x2e03   : > { %5964 = vmatmul.mubr.f32.vlgmr.msra.gmra.mxu0 %v8705_v44  ;;  %v8875_v44 = vld [vmem:[%s11554_s11 + $0x70] sm:$0xff] }
0x2e04   : > { %5968 = vmatprep.mubr.f32.mxu0 %v8435_v42  ;;  %7826 = vmatpush3.msra.mxu0 %v10665_v57  ;;  %v8874_v42 = vld [vmem:[%s11554_s11 + $0xf0] sm:$0xff] }
0x2e05   : > { %7827 = vmatprep.subr.mxu0 %v10671_v60 }
0x2e06   : > { %7828 = vmatpush3.msra.mxu0 %v10677_v2 }
0x2e07   : > { %5969 = vmatmul.mubr.f32.gmra.mxu0 %v8707_v55  ;;  %7829 = vmatprep.subr.mxu0 %v10683_v3  ;;  %v8876_v55 = vld [vmem:[%s11554_s11 + $0xe8] sm:$0xff] }
0x2e08   : > { %7830 = vmatpush3.msra.mxu0 %v10689_v5 }
0x2e09   : > { %7831 = vmatprep.subr.mxu0 %v10695_v18 }
0x2e0a   : > { %7832 = vmatpush3.msra.mxu0 %v10701_v25 }
0x2e0b   : > { %7833 = vmatprep.subr.mxu0 %v10707_v45 }
0x2e0c   : > { %7834 = vmatpush3.msra.mxu0 %v10713_v26 }
0x2e0d   : > { %7835 = vmatprep.subr.mxu0 %v10719_v23 }
0x2e0e   : > { %7836 = vmatpush3.msra.mxu0 %v10725_v33 }
0x2e0f   : > { %7837 = vmatprep.subr.mxu0 %v10731_v24  ;;  %v11266_v24 = vld [vmem:[%s11549_s6 + $0x40] sm:$0xff] }
0x2e10   : > { %7838 = vmatpush3.msra.mxu0 %v10737_v12  ;;  %v11274_v12 = vld [vmem:[%s11549_s6 + $0x28] sm:$0xff] }
0x2e11   : > { %7839 = vmatprep.subr.mxu0 %v10743_v59  ;;  %v11282_v59 = vld [vmem:[%s11549_s6 + $0x10] sm:$0xff] }
0x2e12   : > { %7840 = vmatpush3.msra.mxu0 %v10749_v63  ;;  %v11290_v63 = vld [vmem:[%s11552_s9] sm:$0xff] }
0x2e13   : > { %7841 = vmatprep.subr.mxu0 %v10755_v30 }
0x2e14   : > { %7842 = vmatpush3.msra.mxu0 %v10761_v8 }
0x2e15   : > { %7843 = vmatprep.subr.mxu0 %v10767_v34 }
0x2e16   : > { %7844 = vmatpush3.msra.mxu0 %v10773_v7 }
0x2e17   : > { %7845 = vmatprep.subr.mxu0 %v11816_v62 }
0x2e18   : > { %7846 = vmatpush3.msra.mxu0 %v11817_v0 }
0x2e19   : > { %7847 = vmatprep.subr.mxu0 %v11818_v16  ;;  %v11301_v16 = vld [vmem:[%s11552_s9 + $0x8] sm:$0xff] }
0x2e1a   : > { %7848 = vmatpush3.msra.mxu0 %v11819_v17  ;;  %v11308_v17 = vld [vmem:[%s11552_s9 + $0x10] sm:$0xff] }
0x2e1b   : > { %7849 = vmatprep.subr.mxu0 %v11820_v22  ;;  %v11315_v22 = vld [vmem:[%s11552_s9 + $0x18] sm:$0xff] }
0x2e1c   : > { %7850 = vmatpush3.msra.mxu0 %v11821_v47  ;;  %v11322_v47 = vld [vmem:[%s11553_s10] sm:$0xff] }
0x2e1d   : > { %7851 = vmatprep.subr.mxu0 %v11822_v4 }
0x2e1e   : > { %7852 = vmatpush3.msra.mxu0 %v11823_v61 }
0x2e1f   : > { %7853 = vmatprep.subr.mxu0 %v11824_v36 }
0x2e20   : > { %7854 = vmatpush3.msra.mxu0 %v11825_v56  ;;  %v11329_v56 = vld [vmem:[%s11551_s8 + $0x18] sm:$0xff] }
0x2e21   : > { %7855 = vmatprep.subr.mxu0 %v11826_v58 }
0x2e22   : > { %7856 = vmatpush3.msra.mxu0 %v11827_v1 }
0x2e23   : > { %7883 = vmatprep.subr.mxu0 %v8857_v46  ;;  %v8877_v46 = vld [vmem:[%s11554_s11 + $0x68] sm:$0xff] }
0x2ec3   : > { %v7799_v20 = vpop.f32.mrf.mxu0 }
0x2ec5   : > { %v7800_v57 = vpop.f32.mrf.mxu0 }
0x2ec6   : > { %v7801_v60 = vadd.f32 %v7800_v57, %v7799_v20  ;;  %v8878_v20 = vld [vmem:[%s11554_s11 + $0xe0] sm:$0xff] }
0x2ec7   : > { %v7802_v2 = vpop.f32.mrf.mxu0  ;;  %v8879_v57 = vld [vmem:[%s11554_s11 + $0x60] sm:$0xff] }
0x2ec8   : > { %v11249_v3 = vadd.f32 %v10937_v29, %v7801_v60  ;;  %v8880_v60 = vld [vmem:[%s11554_s11 + $0xd8] sm:$0xff] }
0x2ec9   : > { %v7803_v5 = vpop.f32.mrf.mxu0 }
0x2eca   : > { %v5974_v18 = vmul.f32 %v11249_v3, %v11829_v9  ;;  %v7804_v25 = vadd.f32 %v7803_v5, %v7802_v2  ;;  %v8881_v2 = vld [vmem:[%s11554_s11 + $0x58] sm:$0xff]  ;;  %v8882_v5 = vld [vmem:[%s11554_s11 + $0xd0] sm:$0xff] }
0x2ecc   : > { %v5976_v45 = vadd.f32 %v5974_v18, %v11034_v53  ;;  %v11255_v26 = vadd.f32 %v10947_v21, %v7804_v25  ;;  %v8883_v18 = vld [vmem:[%s11554_s11 + $0x50] sm:$0xff]  ;;  %v8884_v25 = vld [vmem:[%s11554_s11 + $0xc8] sm:$0xff] }
0x2ece   : > { %v5975_v23 = vmul.f32 %v11255_v26, %v11829_v9  ;;  %6966 = vmatmul.mubr.msk.f32.vlgmr.msra.gmra.mxu1 %vm100_vm0, %v5976_v45  ;;  %v11335_v9 = vld [vmem:[%s11551_s8 + $0x8] sm:$0xff] }
0x2ecf   : > { %8437 = vmatpush3.msra.mxu1 %v11085_v38  ;;  %6054 = vmatprep.mubr.f32.mxu1 %v11680_v11 }
0x2ed0   : > { %v5977_v33 = vadd.f32 %v5975_v23, %v11043_v41  ;;  %8438 = vmatprep.subr.mxu1 %v11266_v24  ;;  %v8886_v23 = vld [vmem:[%s11554_s11 + $0xc0] sm:$0xff] }
0x2ed1   : > { %8439 = vmatpush3.msra.mxu1 %v11266_v24 }
0x2ed2   : > { %6967 = vmatmul.mubr.msk.f32.gmra.mxu1 %vm100_vm0, %v5977_v33  ;;  %8440 = vmatprep.subr.mxu1 %v11274_v12 }
0x2ed3   : > { %8441 = vmatpush3.msra.mxu1 %v11274_v12  ;;  %8444 = vmatprep.mubr.msk.f32.mxu1 %vm100_vm0, %v5976_v45  ;;  %v8885_v45 = vld [vmem:[%s11554_s11 + $0x48] sm:$0xff] }
0x2ed4   : > { %8442 = vmatprep.subr.mxu1 %v11282_v59 }
0x2ed5   : > { %8443 = vmatpush3.msra.mxu1 %v11282_v59 }
0x2ed6   : > { %8445 = vmatmul.mubr.msk.f32.vlgmr.msra.gmra.mxu1 %vm100_vm0, %v5977_v33  ;;  %v8887_v33 = vld [vmem:[%s11554_s11 + $0x40] sm:$0xff] }
0x2ed7   : > { %8455 = vmatprep.mubr.msk.f32.mxu1 %vm100_vm0, %v11290_v63 }
0x2f8e   : > { %v11294_v30 = vpop.f32.mrf.mxu1 }
0x2f90   : > { %v6052_v8 = vpop.f32.mrf.mxu1 }
0x2f92   : > { %v11296_v34 = vpop.f32.mrf.mxu1 }
0x2f94   : > { %v6058_v7 = vpop.f32.mrf.mxu1 }
0x2f96   : > { %v8446_v62 = vpop.f32.mrf.mxu1 }
0x2f97   : > { %8447 = vmatprep.subr.mxu1 %v8446_v62 }
0x2f98   : > { %v6127_v0 = vpop.f32.mrf.mxu1  ;;  %8448 = vmatpush3.msra.mxu1 %v8446_v62  ;;  %v8892_v62 = vld [vmem:[%s11554_s11 + $0xa8] sm:$0xff] }
0x2f99   : > { %8449 = vmatprep.subr.mxu1 %v6127_v0 }
0x2f9a   : > { %8450 = vmatpush3.msra.mxu1 %v6127_v0  ;;  %v8893_v0 = vld [vmem:[%s11554_s11 + $0x28] sm:$0xff] }
0x2f9b   : > { %8451 = vmatprep.subr.mxu1 %v6058_v7 }
0x2f9c   : > { %8452 = vmatpush3.msra.mxu1 %v6058_v7  ;;  %v8891_v7 = vld [vmem:[%s11554_s11 + $0x30] sm:$0xff] }
0x2f9d   : > { %8453 = vmatprep.subr.mxu1 %v6052_v8 }
0x2f9e   : > { %8454 = vmatpush3.msra.mxu1 %v6052_v8  ;;  %v8889_v8 = vld [vmem:[%s11554_s11 + $0x38] sm:$0xff] }
0x2f9f   : > { %8456 = vmatmul.mubr.msk.f32.vlgmr.msra.gmra.mxu1 %vm100_vm0, %v11301_v16 }
0x2fa0   : > { %8458 = vmatprep.mubr.msk.f32.mxu1 %vm100_vm0, %v11308_v17 }
0x2fa3   : > { %8459 = vmatmul.mubr.msk.f32.gmra.mxu1 %vm100_vm0, %v11315_v22 }
0x2fa4   : > { %8469 = vmatprep.mubr.msk.f32.mxu1 %vm100_vm0, %v11322_v47 }
0x305f   : > { %v8457_v4 = vpop.f32.mrf.mxu1 }
0x3060   : > { %v6212_v51 = vadd.f32 %v11335_v9, %v8457_v4  ;;  %v8894_v4 = vld [vmem:[%s11554_s11 + $0xa0] sm:$0xff] }
0x3061   : > { %v6206_v61 = vpop.f32.mrf.mxu1 }
0x3062   : > { %v6207_v39 = vadd.f32 %v11347_v37, %v6206_v61  ;;  %v8895_v61 = vld [vmem:[%s11554_s11 + $0x20] sm:$0xff] }
0x3063   : > { %v8460_v36 = vpop.f32.mrf.mxu1 }
0x3064   : > { %v6222_v58 = vadd.f32 %v11329_v56, %v8460_v36  ;;  %v8896_v36 = vld [vmem:[%s11554_s11 + $0x98] sm:$0xff] }
0x3065   : > { %v6216_v1 = vpop.f32.mrf.mxu1 }
0x3066   : > { %8708 = vtanh.f32 %v6222_v58  ;;  %v6217_v35 = vadd.f32 %v11341_v6, %v6216_v1  ;;  %v8897_v58 = vld [vmem:[%s11554_s11 + $0x18] sm:$0xff]  ;;  %v8898_v1 = vld [vmem:[%s11554_s11 + $0x90] sm:$0xff] }
0x3068   : > { %8710 = vtanh.f32 %v6217_v35  ;;  %v8900_v35 = vld [vmem:[%s11554_s11 + $0x88] sm:$0xff] }
0x3069   : > { %8712 = vtanh.f32 %v6212_v51  ;;  %v8899_v51 = vld [vmem:[%s11554_s11 + $0x10] sm:$0xff] }
0x306a   : > { %8714 = vtanh.f32 %v6207_v39  ;;  %v8901_v39 = vld [vmem:[%s11554_s11 + $0x8] sm:$0xff] }
0x3073   : > { %v8709_v48 = vpop.eup %8708 }
0x3074   : > { %8461 = vmatprep.subr.mxu1 %v8709_v48 }
0x3075   : > { %v8711_v52 = vpop.eup %8710  ;;  %8462 = vmatpush3.msra.mxu1 %v8709_v48  ;;  %v8902_v48 = vld [vmem:[%s11554_s11 + $0x80] sm:$0xff] }
0x3076   : > { %8463 = vmatprep.subr.mxu1 %v8711_v52  ;;  %v8713_v54 = vpop.eup %8712 }
0x3077   : > { %8464 = vmatpush3.msra.mxu1 %v8711_v52  ;;  %v8715_v27 = vpop.eup %8714  ;;  %v8903_v52 = vld [vmem:[%s11554_s11] sm:$0xff] }
0x3078   : > { %8465 = vmatprep.subr.mxu1 %v8713_v54 }
0x3079   : > { %8466 = vmatpush3.msra.mxu1 %v8713_v54 }
0x307a   : > { %8467 = vmatprep.subr.mxu1 %v8715_v27 }
0x307b   : > { %8468 = vmatpush3.msra.mxu1 %v8715_v27  ;;  %v6784_v27 = vmul.f32 2.0, %v11249_v3 }
0x307c   : > { %8470 = vmatmul.mubr.msk.f32.vlgmr.msra.gmra.mxu1 %vm100_vm0, %v11353_v28  ;;  %6413 = vmatprep.subr.mxu1 %v11165_v13  ;;  %v11370_v13 = vld [vmem:[%s11550_s7] sm:$0xff] }
0x307d   : > { %6414 = vmatpush1.msra.mxu1 %v11171_v15  ;;  %6453 = vmatprep.mubr.f32.mxu1 %v11680_v11  ;;  %v6136_v15 = vadd.f32 %v11370_v13, %v11294_v30  ;;  %v8888_v30 = vld [vmem:[%s11554_s11 + $0xb8] sm:$0xff] }
0x307e   : > { %6415 = vmatprep.subr.mxu1 %v11178_v40  ;;  %v11377_v40 = vld [vmem:[%s11550_s7 + $0x8] sm:$0xff] }
0x307f   : > { %6416 = vmatpush1.msra.mxu1 %v11184_v19  ;;  %8716 = vtanh.f32 %v6136_v15  ;;  %v6137_v19 = vadd.f32 %v11377_v40, %v11296_v34  ;;  %v8890_v34 = vld [vmem:[%s11554_s11 + $0xb0] sm:$0xff] }
0x3080   : > { %6417 = vmatprep.subr.mxu1 %v11190_v49 }
0x3081   : > { %6418 = vmatpush1.msra.mxu1 %v11196_v14  ;;  %8718 = vtanh.f32 %v6137_v19 }
0x3082   : > { %6419 = vmatprep.subr.mxu1 %v11202_v31 }
0x3083   : > { %6420 = vmatpush1.msra.mxu1 %v11208_v50  ;;  %v8873_v50 = vld [vmem:[%s11554_s11 + $0x78] sm:$0xff] }
0x3084   : > { %8472 = vmatprep.subr.mxu1 %v11085_v38 }
0x308c   : > { %v8717_v31 = vpop.eup %8716 }
0x308e   : > { %v8719_v10 = vpop.eup %8718 }
0x313c   : > { %v8471_v49 = vpop.f32.mrf.mxu1 }
0x313e   : > { %v6295_v14 = vpop.f32.mrf.mxu1 }
0x313f   : > { %6368 = vmatprep.mubr.f32.mxu0 %v6295_v14 }
0x3140   : > { %6369 = vmatmul.mubr.f32.vlgmr.msra.gmra.mxu0 %v8717_v31  ;;  %v6786_v31 = vadd.f32 %v6784_v27, %v11123_v32 }
0x3141   : > { %6373 = vmatprep.mubr.f32.mxu0 %v8471_v49  ;;  %7884 = vmatpush3.msra.mxu0 %v8873_v50 }
0x3142   : > { %7885 = vmatprep.subr.mxu0 %v8874_v42  ;;  %v6785_v42 = vmul.f32 2.0, %v11255_v26 }
0x3143   : > { %7886 = vmatpush3.msra.mxu0 %v8875_v44 }
0x3144   : > { %6374 = vmatmul.mubr.f32.gmra.mxu0 %v8719_v10  ;;  %7887 = vmatprep.subr.mxu0 %v8876_v55  ;;  %v11830_v10 = vld [vmem:[#allocation5_spill] sm:$0xff]  ;;  %v6787_v3 = vadd.f32 %v6785_v42, %v11129_v43 }
0x3145   : > { %7888 = vmatpush3.msra.mxu0 %v8877_v46 }
0x3146   : > { %7889 = vmatprep.subr.mxu0 %v8878_v20 }
0x3147   : > { %7890 = vmatpush3.msra.mxu0 %v8879_v57 }
0x3148   : > { %7891 = vmatprep.subr.mxu0 %v8880_v60 }
0x3149   : > { %7892 = vmatpush3.msra.mxu0 %v8881_v2 }
0x314a   : > { %7893 = vmatprep.subr.mxu0 %v8882_v5 }
0x314b   : > { %7894 = vmatpush3.msra.mxu0 %v8883_v18 }
0x314c   : > { %7895 = vmatprep.subr.mxu0 %v8884_v25 }
0x314d   : > { %7896 = vmatpush3.msra.mxu0 %v8885_v45 }
0x314e   : > { %7897 = vmatprep.subr.mxu0 %v8886_v23 }
0x314f   : > { %7898 = vmatpush3.msra.mxu0 %v8887_v33 }
0x3150   : > { %7899 = vmatprep.subr.mxu0 %v8888_v30 }
0x3151   : > { %7900 = vmatpush3.msra.mxu0 %v8889_v8 }
0x3152   : > { %7901 = vmatprep.subr.mxu0 %v8890_v34 }
0x3153   : > { %7902 = vmatpush3.msra.mxu0 %v8891_v7 }
0x3154   : > { %7903 = vmatprep.subr.mxu0 %v8892_v62 }
0x3155   : > { %7904 = vmatpush3.msra.mxu0 %v8893_v0 }
0x3156   : > { %7905 = vmatprep.subr.mxu0 %v8894_v4 }
0x3157   : > { %7906 = vmatpush3.msra.mxu0 %v8895_v61 }
0x3158   : > { %7907 = vmatprep.subr.mxu0 %v8896_v36  ;;  %v11831_v36 = vld [vmem:[#allocation19_spill] sm:$0xff] }
0x3159   : > { %7908 = vmatpush3.msra.mxu0 %v8897_v58 }
0x315a   : > { %7909 = vmatprep.subr.mxu0 %v8898_v1  ;;  %v8905_v1 = vld [vmem:[%s11555_s12 + $0x8] sm:$0xff] }
0x315b   : > { %7910 = vmatpush3.msra.mxu0 %v8899_v51 }
0x315c   : > { %7911 = vmatprep.subr.mxu0 %v8900_v35 }
0x315d   : > { %7912 = vmatpush3.msra.mxu0 %v8901_v39 }
0x315e   : > { %7913 = vmatprep.subr.mxu0 %v8902_v48 }
0x315f   : > { %7914 = vmatpush3.msra.mxu0 %v8903_v52 }
0x3200   : > { %v7857_v54 = vpop.f32.mrf.mxu0 }
0x3202   : > { %v7858_v15 = vpop.f32.mrf.mxu0 }
0x3203   : > { %v7859_v19 = vadd.f32 %v7858_v15, %v7857_v54 }
0x3204   : > { %v7860_v49 = vpop.f32.mrf.mxu0 }
0x3205   : > { %v6371_v14 = vadd.f32 %v10937_v29, %v7859_v19 }
0x3206   : > { %v7861_v50 = vpop.f32.mrf.mxu0 }
0x3207   : > { %v6379_v44 = vmul.f32 %v6371_v14, %v11830_v10  ;;  %v6788_v55 = vmul.f32 2.0, %v6371_v14  ;;  %v7862_v46 = vadd.f32 %v7861_v50, %v7860_v49 }
0x3209   : > { %v6381_v20 = vadd.f32 %v6379_v44, %v11034_v53  ;;  %v6376_v57 = vadd.f32 %v10947_v21, %v7862_v46  ;;  %v11481_v60 = vadd.f32 %v6788_v55, %v6786_v31 }
0x320b   : > { %v6380_v2 = vmul.f32 %v6376_v57, %v11830_v10  ;;  %v6789_v29 = vmul.f32 2.0, %v6376_v57  ;;  %6976 = vmatmul.mubr.msk.f32.vlgmr.msra.gmra.mxu1 %vm100_vm0, %v6381_v20 }
0x320c   : > { %8473 = vmatpush3.msra.mxu1 %v11085_v38  ;;  %6459 = vmatprep.mubr.f32.mxu1 %v11680_v11 }
0x320d   : > { %v6382_v32 = vadd.f32 %v6380_v2, %v11043_v41  ;;  %8474 = vmatprep.subr.mxu1 %v11266_v24  ;;  %v11490_v26 = vadd.f32 %v6789_v29, %v6787_v3 }
0x320e   : > { %8475 = vmatpush3.msra.mxu1 %v11266_v24 }
0x320f   : > { %6977 = vmatmul.mubr.msk.f32.gmra.mxu1 %vm100_vm0, %v6382_v32  ;;  %8476 = vmatprep.subr.mxu1 %v11274_v12 }
0x3210   : > { %8477 = vmatpush3.msra.mxu1 %v11274_v12  ;;  %8480 = vmatprep.mubr.msk.f32.mxu1 %vm100_vm0, %v6381_v20 }
0x3211   : > { %8478 = vmatprep.subr.mxu1 %v11282_v59 }
0x3212   : > { %8479 = vmatpush3.msra.mxu1 %v11282_v59 }
0x3213   : > { %8481 = vmatmul.mubr.msk.f32.vlgmr.msra.gmra.mxu1 %vm100_vm0, %v6382_v32 }
0x3214   : > { %8491 = vmatprep.mubr.msk.f32.mxu1 %vm100_vm0, %v11290_v63 }
0x32cb   : > { %v6455_v11 = vpop.f32.mrf.mxu1 }
0x32cd   : > { %v6457_v43 = vpop.f32.mrf.mxu1 }
0x32cf   : > { %v6461_v21 = vpop.f32.mrf.mxu1 }
0x32d1   : > { %v6463_v38 = vpop.f32.mrf.mxu1 }
0x32d3   : > { %v8482_v24 = vpop.f32.mrf.mxu1 }
0x32d4   : > { %8483 = vmatprep.subr.mxu1 %v8482_v24 }
0x32d5   : > { %v6532_v5 = vpop.f32.mrf.mxu1  ;;  %8484 = vmatpush3.msra.mxu1 %v8482_v24 }
0x32d6   : > { %8485 = vmatprep.subr.mxu1 %v6532_v5 }
0x32d7   : > { %8486 = vmatpush3.msra.mxu1 %v6532_v5 }
0x32d8   : > { %8487 = vmatprep.subr.mxu1 %v6463_v38 }
0x32d9   : > { %8488 = vmatpush3.msra.mxu1 %v6463_v38 }
0x32da   : > { %8489 = vmatprep.subr.mxu1 %v6457_v43 }
0x32db   : > { %8490 = vmatpush3.msra.mxu1 %v6457_v43 }
0x32dc   : > { %8492 = vmatmul.mubr.msk.f32.vlgmr.msra.gmra.mxu1 %vm100_vm0, %v11301_v16 }
0x32dd   : > { %8494 = vmatprep.mubr.msk.f32.mxu1 %vm100_vm0, %v11308_v17 }
0x32e0   : > { %8495 = vmatmul.mubr.msk.f32.gmra.mxu1 %vm100_vm0, %v11315_v22 }
0x32e1   : > { %8505 = vmatprep.mubr.msk.f32.mxu1 %vm100_vm0, %v11322_v47 }
0x339c   : > { %v8493_v12 = vpop.f32.mrf.mxu1 }
0x339d   : > { %v6617_v45 = vadd.f32 %v11335_v9, %v8493_v12  ;;  %v6541_v9 = vadd.f32 %v11370_v13, %v6455_v11 }
0x339e   : > { %v6611_v59 = vpop.f32.mrf.mxu1 }
0x339f   : > { %v6612_v23 = vadd.f32 %v11347_v37, %v6611_v59 }
0x33a0   : > { %v8496_v63 = vpop.f32.mrf.mxu1 }
0x33a1   : > { %v6627_v18 = vadd.f32 %v11329_v56, %v8496_v63 }
0x33a2   : > { %v6621_v25 = vpop.f32.mrf.mxu1 }
0x33a3   : > { %8720 = vtanh.f32 %v6627_v18  ;;  %v6622_v16 = vadd.f32 %v11341_v6, %v6621_v25  ;;  %v6542_v6 = vadd.f32 %v11377_v40, %v6461_v21 }
0x33a5   : > { %8722 = vtanh.f32 %v6622_v16 }
0x33a6   : > { %8724 = vtanh.f32 %v6617_v45 }
0x33a7   : > { %8726 = vtanh.f32 %v6612_v23 }
0x33a8   : > { %8728 = vtanh.f32 %v6541_v9 }
0x33a9   : > { %8730 = vtanh.f32 %v6542_v6 }
0x33b0   : > { %v8721_v17 = vpop.eup %8720 }
0x33b1   : > { %8497 = vmatprep.subr.mxu1 %v8721_v17 }
0x33b2   : > { %v8723_v22 = vpop.eup %8722  ;;  %8498 = vmatpush3.msra.mxu1 %v8721_v17 }
0x33b3   : > { %8499 = vmatprep.subr.mxu1 %v8723_v22  ;;  %v8725_v47 = vpop.eup %8724 }
0x33b4   : > { %8500 = vmatpush3.msra.mxu1 %v8723_v22  ;;  %v8727_v56 = vpop.eup %8726 }
0x33b5   : > { %8501 = vmatprep.subr.mxu1 %v8725_v47  ;;  %v8729_v30 = vpop.eup %8728 }
0x33b6   : > { %8502 = vmatpush3.msra.mxu1 %v8725_v47  ;;  %v8731_v8 = vpop.eup %8730 }
0x33b7   : > { %8503 = vmatprep.subr.mxu1 %v8727_v56 }
0x33b8   : > { %8504 = vmatpush3.msra.mxu1 %v8727_v56 }
0x33b9   : > { %8506 = vmatmul.mubr.msk.f32.vlgmr.msra.gmra.mxu1 %vm100_vm0, %v11353_v28  ;;  %v8904_v28 = vld [vmem:[%s11555_s12] sm:$0xff] }
0x3479   : > { %v8507_v37 = vpop.f32.mrf.mxu1 }
0x347b   : > { %v6700_v33 = vpop.f32.mrf.mxu1 }
0x347c   : > { %6773 = vmatprep.mubr.f32.mxu0 %v6700_v33 }
0x347d   : > { %6774 = vmatmul.mubr.f32.vlgmr.msra.gmra.mxu0 %v8729_v30 }
0x347e   : > { %6778 = vmatprep.mubr.f32.mxu0 %v8507_v37 }
0x3481   : > { %6779 = vmatmul.mubr.f32.gmra.mxu0 %v8731_v8 }
0x353d   : > { %v7915_v34 = vpop.f32.mrf.mxu0 }
0x353f   : > { %v7916_v7 = vpop.f32.mrf.mxu0 }
0x3540   : > { %v7917_v62 = vadd.f32 %v7916_v7, %v7915_v34 }
0x3541   : > { %v7918_v0 = vpop.f32.mrf.mxu0 }
0x3542   : > { %v6776_v13 = vadd.f32 %v8904_v28, %v7917_v62 }
0x3543   : > { %v7919_v40 = vpop.f32.mrf.mxu0 }
0x3544   : > { %v6792_v4 = vadd.f32 %v11481_v60, %v6776_v13  ;;  %v7920_v61 = vadd.f32 %v7919_v40, %v7918_v0 }
0x3546   : > { %v6794_v58 = vmul.f32 %v6792_v4, %v11831_v36  ;;  %v6781_v51 = vadd.f32 %v8905_v1, %v7920_v61 }
0x3548   : > { %v6796_v21 = vadd.f32 %v6794_v58, %v11034_v53   ;;  %v6793_v35 = vadd.f32 %v11490_v26, %v6781_v51 }
0x354a   : > { %6800 = vst.msk [vmem:[%s6799_s1] sm:$0xff] %vm100_vm0, %v6796_v21  ;;  %v6795_v39 = vmul.f32 %v6793_v35, %v11831_v36  ;;  %188 = sbr.rel (!%p186_p5) target bundleno = 361 (0x169), region = 84 }
0x354c   : > { %v6797_v19 = vadd.f32 %v6795_v39, %v11043_v41  }
0x354e   : > { %6801 = vst.msk [vmem:[%s6799_s1 + $0x8] sm:$0xff] %vm100_vm0, %v6797_v19 }
0x354f   :  { %6806 = vsyncpa [#allocation3], 1 }

</bundles_post_ra>
